<compile_context>
chip_gen: v6e
topology: v6e:2x2x1
jax: 0.10.0
libtpu: 0.0.40
codegen_flags: <defaults>
</compile_context>

<pallas_src>
import functools
import math

import jax
import jax.numpy as jnp
from jax.experimental import pallas as pl
from jax.experimental.pallas import tpu as pltpu

LN_EPS = 1e-12  # BERT default layer-norm eps


def _layernorm(x, gamma, beta):
    mu = jnp.mean(x, axis=-1, keepdims=True)
    var = jnp.mean(jnp.square(x - mu), axis=-1, keepdims=True)
    inv = jax.lax.rsqrt(var + LN_EPS)
    return (x - mu) * inv * gamma + beta


# ---------------------------------------------------------------------------
# Fused encoder-stack kernel: grid = (batch_tile, layer)
#   - batch axis  : "parallel"  (megacore sharding)
#   - layer axis  : "arbitrary" (weights of layer l+1 prefetched during layer l)
#   - hidden state lives in a persistent VMEM scratch (x_sc); only the CLS row
#     is written to HBM, at the last layer.
# ---------------------------------------------------------------------------
def encoder_stack_kernel(emb_ref, bias_ref, embln_ref,
                         wqkv_ref, bqkv_ref, wo_ref, w1_ref, b1_ref, w2_ref,
                         vech_ref, o_ref, x_sc, *, num_heads, head_dim):
    l = pl.program_id(1)
    n_layers = pl.num_programs(1)
    f32, bf16 = jnp.float32, jnp.bfloat16

    # Layer 0: fold the embedding LayerNorm in; result lands in the persistent
    # VMEM scratch that carries the hidden state across layers.
    @pl.when(l == 0)
    def _():
        x_sc[...] = _layernorm(emb_ref[...].astype(f32),
                               embln_ref[0:1, :], embln_ref[1:2, :])

    x = x_sc[...]                              # (Bt, S, H) fp32, resident
    Bt, S, H = x.shape
    nh, hd = num_heads, head_dim
    bias = bias_ref[...]                       # (Bt, 1, S) additive mask

    # Packed per-layer H-sized vectors: [bo, ln1_g, ln1_b, b2, ln2_g, ln2_b]
    vech = vech_ref[0]                         # (6, H) fp32
    bo, ln1_g, ln1_b = vech[0:1, :], vech[1:2, :], vech[2:3, :]
    b2, ln2_g, ln2_b = vech[3:4, :], vech[4:5, :], vech[5:6, :]

    x2 = x.reshape(Bt * S, H)                  # fp32 residual path (2-D)
    x2b = x2.astype(bf16)                      # matmul input

    # --- Fused QKV projection: one full-width (Bt*S, H) x (H, 3H) matmul ----
    qkv = jnp.dot(x2b, wqkv_ref[0],
                  preferred_element_type=f32) + bqkv_ref[0]       # (Bt*S, 3H)
    qkv = qkv.reshape(Bt, S, 3 * H)
    # 1/sqrt(head_dim) is folded into wq / bq at init time.

    # --- Attention: per-head scores/softmax/context (head_dim contraction is
    #     inherently 64-wide), batched over the Bt examples ------------------
    ctx_parts = []
    for h in range(nh):
        q_h = qkv[:, :, h * hd:(h + 1) * hd].astype(bf16)
        k_h = qkv[:, :, H + h * hd:H + (h + 1) * hd].astype(bf16)
        v_h = qkv[:, :, 2 * H + h * hd:2 * H + (h + 1) * hd].astype(bf16)

        s = jnp.einsum('bqd,bkd->bqk', q_h, k_h,
                       preferred_element_type=f32)                # (Bt, S, S)
        s = s + bias                                              # mask bias
        s = s - jnp.max(s, axis=-1, keepdims=True)
        p = jnp.exp(s)
        p = p * pl.reciprocal(jnp.sum(p, axis=-1, keepdims=True), approx=True)
        ctx_parts.append(jnp.einsum('bqk,bkd->bqd', p.astype(bf16), v_h,
                                    preferred_element_type=f32))  # (Bt, S, hd)

    ctx = jnp.concatenate(ctx_parts, axis=-1)                     # (Bt, S, H)

    # --- Output projection: single (Bt*S, H) x (H, H) matmul (K = H) --------
    attn = jnp.dot(ctx.reshape(Bt * S, H).astype(bf16), wo_ref[0],
                   preferred_element_type=f32) + bo               # (Bt*S, H)

    h1 = _layernorm(x2 + attn, ln1_g, ln1_b)

    # --- FFN (bf16 matmuls, fp32 elementwise) -------------------------------
    ffn = jnp.dot(h1.astype(bf16), w1_ref[0],
                  preferred_element_type=f32) + b1_ref[0]
    # TODO(synk): HF BERT uses exact erf-GELU; tanh approximation used here.
    ffn = jax.nn.gelu(ffn, approximate=True)
    ffn = jnp.dot(ffn.astype(bf16), w2_ref[0],
                  preferred_element_type=f32) + b2

    out = _layernorm(h1 + ffn, ln2_g, ln2_b)                      # (Bt*S, H)
    out3 = out.reshape(Bt, S, H)
    x_sc[...] = out3

    # Only the CLS rows leave VMEM, and only at the last layer.
    @pl.when(l == n_layers - 1)
    def _():
        o_ref[...] = out3[:, 0:1, :]


_STACK_ORDER = ('wqkv', 'bqkv', 'wo', 'w1', 'b1', 'w2', 'vech')


def _pick_batch_tile(B, max_tile=8):
    """Amortize weight DMA over several examples, but keep >=2 tiles on the
    parallel batch axis when possible (v7x has 2 TensorCores per chip)."""
    bt = min(max_tile, B)
    if B >= 2 * bt or bt == 1:
        return bt
    return max(1, pl.cdiv(B, 2))


def _vmem_limit_bytes(Bt, S, H, I, weights):
    wblk = sum(math.prod(a.shape[1:]) * jnp.dtype(a.dtype).itemsize
               for a in weights)
    ablk = Bt * S * H * 2 + Bt * S * 4 + 2 * H * 4 + Bt * H * 4
    blocks = wblk + ablk                               # single-buffer block bytes
    inter = (Bt * S * (3 * H) * (4 + 2)                # fused qkv fp32 + bf16 slices
             + 3 * Bt * S * S * 4                      # per-head scores/probs (+slack)
             + 4 * Bt * S * H * 4                      # ctx / residual / LN temporaries
             + Bt * S * I * (4 + 2))                   # FFN activation fp32 + bf16
    scratch = Bt * S * H * 4
    need = 2 * blocks + inter + scratch + (8 << 20)    # 2x for double-buffering
    try:
        cap = int(pltpu.get_tpu_info().vmem_capacity_bytes)
    except Exception:
        cap = 64 << 20                                  # conservative (v7x per-core)
    return int(max(32 << 20, min(int(cap * 0.9), need)))


def encoder_stack_pallas(emb_bf16, attn_bias, emb_ln, stack, num_heads,
                         batch_tile=None):
    B, S, H = emb_bf16.shape
    L = stack['wqkv'].shape[0]
    I = stack['w1'].shape[-1]
    head_dim = H // num_heads
    Bt = batch_tile if batch_tile is not None else _pick_batch_tile(B)
    nb = pl.cdiv(B, Bt)

    weights = [stack[n] for n in _STACK_ORDER]

    def wspec(a):
        nd = a.ndim
        return pl.BlockSpec((1,) + a.shape[1:],
                            lambda b, l, _nd=nd: (l,) + (0,) * (_nd - 1))

    in_specs = [
        pl.BlockSpec((Bt, S, H), lambda b, l: (b, 0, 0)),   # embedding sum (bf16)
        pl.BlockSpec((Bt, 1, S), lambda b, l: (b, 0, 0)),   # attention-mask bias
        pl.BlockSpec((2, H), lambda b, l: (0, 0)),          # emb LN gamma/beta
    ] + [wspec(a) for a in weights]

    out_specs = pl.BlockSpec((Bt, 1, H), lambda b, l: (b, 0, 0))

    kernel = functools.partial(encoder_stack_kernel,
                               num_heads=num_heads, head_dim=head_dim)
    return pl.pallas_call(
        kernel,
        out_shape=jax.ShapeDtypeStruct((B, 1, H), jnp.float32),
        grid=(nb, L),
        in_specs=in_specs,
        out_specs=out_specs,
        scratch_shapes=[pltpu.VMEM((Bt, S, H), jnp.float32)],
        compiler_params=pltpu.CompilerParams(
            dimension_semantics=("parallel", "arbitrary"),
            vmem_limit_bytes=_vmem_limit_bytes(Bt, S, H, I, weights)),
    )(emb_bf16, attn_bias, emb_ln, *weights)


# ---------------------------------------------------------------------------
# Synthetic parameter init (deterministic). Matmul weights stored bf16, stacked
# along a leading layer axis; QKV fused; small vectors packed.
# ---------------------------------------------------------------------------
def init_params(key, vocab_size, max_pos, hidden, intermediate,
                num_layers, num_heads):
    hd = hidden // num_heads
    inv_sqrt_hd = 1.0 / math.sqrt(hd)
    bf16 = jnp.bfloat16

    def nrm(k, shape):
        return jax.random.normal(k, shape, jnp.float32) * 0.02

    keys = jax.random.split(key, 3 + 6 * num_layers)
    params = {
        'word_emb': nrm(keys[0], (vocab_size, hidden)),
        'pos_emb': nrm(keys[1], (max_pos, hidden)),
        'type_emb': nrm(keys[2], (2, hidden)),
        'emb_ln': jnp.concatenate([jnp.ones((1, hidden), jnp.float32),
                                   jnp.zeros((1, hidden), jnp.float32)], axis=0),
    }

    wqkv, bqkv, wo, w1, b1, w2, vech = [], [], [], [], [], [], []
    for l in range(num_layers):
        k = keys[3 + 6 * l: 3 + 6 * (l + 1)]
        wq = nrm(k[0], (hidden, hidden)) * inv_sqrt_hd   # softmax scale folded in
        wk = nrm(k[1], (hidden, hidden))
        wv = nrm(k[2], (hidden, hidden))
        bq = jnp.zeros((hidden,), jnp.float32) * inv_sqrt_hd
        bk = jnp.zeros((hidden,), jnp.float32)
        bv = jnp.zeros((hidden,), jnp.float32)
        wqkv.append(jnp.concatenate([wq, wk, wv], axis=1))          # (H, 3H)
        bqkv.append(jnp.concatenate([bq, bk, bv])[None, :])         # (1, 3H)
        wo.append(nrm(k[3], (hidden, hidden)))                      # (H, H)
        w1.append(nrm(k[4], (hidden, intermediate)))
        b1.append(jnp.zeros((1, intermediate), jnp.float32))
        w2.append(nrm(k[5], (intermediate, hidden)))
        bo = jnp.zeros((hidden,), jnp.float32)
        b2v = jnp.zeros((hidden,), jnp.float32)
        ln1_g = jnp.ones((hidden,), jnp.float32)
        ln1_b = jnp.zeros((hidden,), jnp.float32)
        ln2_g = jnp.ones((hidden,), jnp.float32)
        ln2_b = jnp.zeros((hidden,), jnp.float32)
        vech.append(jnp.stack([bo, ln1_g, ln1_b, b2v, ln2_g, ln2_b], axis=0))

    params['stack'] = {
        'wqkv': jnp.stack(wqkv).astype(bf16),
        'bqkv': jnp.stack(bqkv),
        'wo': jnp.stack(wo).astype(bf16),
        'w1': jnp.stack(w1).astype(bf16),
        'b1': jnp.stack(b1),
        'w2': jnp.stack(w2).astype(bf16),
        'vech': jnp.stack(vech),
    }
    return params


# ---------------------------------------------------------------------------
# BioClinicalBERT_FT.forward equivalent: BERT(input_ids, mask)[:, 0, :]
# ---------------------------------------------------------------------------
def bioclinicalbert_ft_forward(params, input_ids, attention_mask, num_heads):
    B, S = input_ids.shape
    # Embedding-table gather stays in plain JAX; the sum's LayerNorm is fused
    # into the encoder-stack kernel (l == 0 branch).
    word = jnp.take(params['word_emb'], input_ids, axis=0)       # (B, S, H)
    pos = params['pos_emb'][:S][None, :, :]                      # (1, S, H)
    tok = params['type_emb'][0][None, None, :]                   # token_type_ids == 0
    emb = (word + pos + tok).astype(jnp.bfloat16)                # halves the input DMA

    # BERT additive attention-mask bias: 0 where attended, -1e4 on padding.
    attn_bias = (1.0 - attention_mask.astype(jnp.float32))[:, None, :] * -10000.0

    cls = encoder_stack_pallas(emb, attn_bias, params['emb_ln'],
                               params['stack'], num_heads)       # (B, 1, H)
    return cls[:, 0, :]


# ---------------------------------------------------------------------------
# Pure-JAX fp32 reference (mirrors the fused-weight parameterization).
# ---------------------------------------------------------------------------
def bert_reference(params, input_ids, attention_mask, num_heads):
    f32 = jnp.float32
    B, S = input_ids.shape
    word = jnp.take(params['word_emb'], input_ids, axis=0)
    pos = params['pos_emb'][:S][None, :, :]
    tok = params['type_emb'][0][None, None, :]
    x = (word + pos + tok).astype(f32)
    x = _layernorm(x, params['emb_ln'][0], params['emb_ln'][1])
    bias = (1.0 - attention_mask.astype(f32))[:, None, :] * -10000.0   # (B,1,S)

    st = params['stack']
    L = st['wqkv'].shape[0]
    H = x.shape[-1]
    hd = H // num_heads
    for l in range(L):
        qkv = x @ st['wqkv'][l].astype(f32) + st['bqkv'][l]
        q, k, v = qkv[..., :H], qkv[..., H:2 * H], qkv[..., 2 * H:]

        def split(t):
            return t.reshape(B, S, num_heads, hd).transpose(0, 2, 1, 3)

        qh, kh, vh = split(q), split(k), split(v)
        s = jnp.einsum('bhqd,bhkd->bhqk', qh, kh) + bias[:, None, :, :]
        p = jax.nn.softmax(s, axis=-1)
        ctx = jnp.einsum('bhqk,bhkd->bhqd', p, vh)
        ctx = ctx.transpose(0, 2, 1, 3).reshape(B, S, H)
        vech = st['vech'][l]
        attn = ctx @ st['wo'][l].astype(f32) + vech[0]
        h1 = _layernorm(x + attn, vech[1], vech[2])
        ffn = h1 @ st['w1'][l].astype(f32) + st['b1'][l]
        ffn = jax.nn.gelu(ffn, approximate=True)
        ffn = ffn @ st['w2'][l].astype(f32) + vech[3]
        x = _layernorm(h1 + ffn, vech[4], vech[5])
    return x[:, 0, :]


if __name__ == "__main__":
    # Small, BERT-shaped, lane-dense config.
    B, S, H = 2, 128, 128
    NUM_HEADS = 2            # head_dim = 64, as in real BERT
    INTERMEDIATE = 512
    NUM_LAYERS = 2
    VOCAB = 512
    MAX_POS = 128

    root = jax.random.PRNGKey(0)
    k_param, k_ids = jax.random.split(root)
    params = init_params(k_param, VOCAB, MAX_POS, H, INTERMEDIATE,
                         NUM_LAYERS, NUM_HEADS)

    input_ids = jax.random.randint(k_ids, (B, S), 0, VOCAB, dtype=jnp.int32)
    attention_mask = jnp.ones((B, S), jnp.int32).at[1, 96:].set(0)  # pad tail of ex. 1

    cls = bioclinicalbert_ft_forward(params, input_ids, attention_mask, NUM_HEADS)
    cls = jax.block_until_ready(cls)
    assert cls.shape == (B, H) and cls.dtype == jnp.float32
    assert bool(jnp.all(jnp.isfinite(cls)))

    # Loose-tolerance parity check vs. fp32 reference (bf16 weights/matmuls +
    # approx reciprocal in the kernel -> expect ~1e-2-level differences).
    ref = jax.block_until_ready(
        bert_reference(params, input_ids, attention_mask, NUM_HEADS))
    max_err = float(jnp.max(jnp.abs(cls - ref)))
    assert max_err < 0.1, f"max abs error vs reference too large: {max_err}"

    print("KERNEL_OK")
</pallas_src>

<mosaic_0001>
module attributes {stable_mosaic.version = 11 : i64} {
  func.func @encoder_stack_kernel(%arg0: i32, %arg1: i32, %arg2: memref<1x128x128xbf16, #tpu.memory_space<vmem>>, %arg3: memref<1x1x128xf32, #tpu.memory_space<vmem>>, %arg4: memref<2x128xf32, #tpu.memory_space<vmem>>, %arg5: memref<1x128x384xbf16, #tpu.memory_space<vmem>>, %arg6: memref<1x1x384xf32, #tpu.memory_space<vmem>>, %arg7: memref<1x128x128xbf16, #tpu.memory_space<vmem>>, %arg8: memref<1x128x512xbf16, #tpu.memory_space<vmem>>, %arg9: memref<1x1x512xf32, #tpu.memory_space<vmem>>, %arg10: memref<1x512x128xbf16, #tpu.memory_space<vmem>>, %arg11: memref<1x6x128xf32, #tpu.memory_space<vmem>>, %arg12: memref<1x1x128xf32, #tpu.memory_space<vmem>>, %arg13: memref<1x128x128xf32, #tpu.memory_space<vmem>>) attributes {dimension_semantics = [#tpu.dimension_semantics<parallel>, #tpu.dimension_semantics<arbitrary>], iteration_bounds = array<i64: 2, 2>, scalar_prefetch = 0 : i64, scratch_operands = 1 : i64, tpu.core_type = #tpu.core_type<tc>, window_params = [{transform_indices = @transform_0, window_bounds = array<i64: 1, 128, 128>}, {transform_indices = @transform_1, window_bounds = array<i64: 1, 1, 128>}, {pipeline_mode = #tpu.pipeline_mode<synchronous>, transform_indices = @transform_2, window_bounds = array<i64: 2, 128>}, {transform_indices = @transform_3, window_bounds = array<i64: 1, 128, 384>}, {transform_indices = @transform_4, window_bounds = array<i64: 1, 1, 384>}, {transform_indices = @transform_5, window_bounds = array<i64: 1, 128, 128>}, {transform_indices = @transform_6, window_bounds = array<i64: 1, 128, 512>}, {transform_indices = @transform_7, window_bounds = array<i64: 1, 1, 512>}, {transform_indices = @transform_8, window_bounds = array<i64: 1, 512, 128>}, {transform_indices = @transform_9, window_bounds = array<i64: 1, 6, 128>}, {transform_indices = @transform_10, window_bounds = array<i64: 1, 1, 128>}]} {
    %c0_i32 = arith.constant 0 : i32
    %0 = arith.cmpi eq, %arg1, %c0_i32 : i32
    %1 = arith.extui %0 : i1 to i32
    %c0_i32_0 = arith.constant 0 : i32
    %2 = arith.cmpi ne, %1, %c0_i32_0 : i32
    scf.if %2 {
      %c0_56 = arith.constant 0 : index
      %c0_57 = arith.constant 0 : index
      %c0_58 = arith.constant 0 : index
      %151 = vector.load %arg2[%c0_56, %c0_57, %c0_58] : memref<1x128x128xbf16, #tpu.memory_space<vmem>>, vector<1x128x128xbf16>
      %152 = arith.extf %151 : vector<1x128x128xbf16> to vector<1x128x128xf32>
      %c0_59 = arith.constant 0 : index
      %c0_60 = arith.constant 0 : index
      %153 = vector.load %arg4[%c0_59, %c0_60] : memref<2x128xf32, #tpu.memory_space<vmem>>, vector<1x128xf32>
      %c1 = arith.constant 1 : index
      %c0_61 = arith.constant 0 : index
      %154 = vector.load %arg4[%c1, %c0_61] : memref<2x128xf32, #tpu.memory_space<vmem>>, vector<1x128xf32>
      %cst_62 = arith.constant dense<0.000000e+00> : vector<1x128xf32>
      %155 = vector.multi_reduction <add>, %152, %cst_62 [2] : vector<1x128x128xf32> to vector<1x128xf32>
      %156 = vector.shape_cast %155 : vector<1x128xf32> to vector<1x128x1xf32>
      %cst_63 = arith.constant 1.280000e+02 : f32
      %157 = vector.broadcast %cst_63 : f32 to vector<1x128x1xf32>
      %158 = arith.divf %156, %157 : vector<1x128x1xf32>
      %159 = vector.broadcast %158 : vector<1x128x1xf32> to vector<1x128x128xf32>
      %160 = arith.subf %152, %159 : vector<1x128x128xf32>
      %161 = arith.mulf %160, %160 : vector<1x128x128xf32>
      %cst_64 = arith.constant dense<0.000000e+00> : vector<1x128xf32>
      %162 = vector.multi_reduction <add>, %161, %cst_64 [2] : vector<1x128x128xf32> to vector<1x128xf32>
      %163 = vector.shape_cast %162 : vector<1x128xf32> to vector<1x128x1xf32>
      %cst_65 = arith.constant 1.280000e+02 : f32
      %164 = vector.broadcast %cst_65 : f32 to vector<1x128x1xf32>
      %165 = arith.divf %163, %164 : vector<1x128x1xf32>
      %cst_66 = arith.constant 9.99999996E-13 : f32
      %166 = vector.broadcast %cst_66 : f32 to vector<1x128x1xf32>
      %167 = arith.addf %165, %166 : vector<1x128x1xf32>
      %168 = math.rsqrt %167 : vector<1x128x1xf32>
      %169 = vector.broadcast %158 : vector<1x128x1xf32> to vector<1x128x128xf32>
      %170 = arith.subf %152, %169 : vector<1x128x128xf32>
      %171 = vector.broadcast %168 : vector<1x128x1xf32> to vector<1x128x128xf32>
      %172 = arith.mulf %170, %171 : vector<1x128x128xf32>
      %173 = vector.shape_cast %153 : vector<1x128xf32> to vector<1x1x128xf32>
      %174 = vector.broadcast %173 : vector<1x1x128xf32> to vector<1x128x128xf32>
      %175 = arith.mulf %172, %174 : vector<1x128x128xf32>
      %176 = vector.shape_cast %154 : vector<1x128xf32> to vector<1x1x128xf32>
      %177 = vector.broadcast %176 : vector<1x1x128xf32> to vector<1x128x128xf32>
      %178 = arith.addf %175, %177 : vector<1x128x128xf32>
      %c0_67 = arith.constant 0 : index
      %c0_68 = arith.constant 0 : index
      %c0_69 = arith.constant 0 : index
      %179 = vector.load %arg13[%c0_67, %c0_68, %c0_69] : memref<1x128x128xf32, #tpu.memory_space<vmem>>, vector<1x128x128xf32>
      tpu.vector_store %arg13[%c0_67, %c0_68, %c0_69], %178 {strides = array<i32>} : memref<1x128x128xf32, #tpu.memory_space<vmem>>, vector<1x128x128xf32>,
    } else {
    }
    %c0 = arith.constant 0 : index
    %c0_1 = arith.constant 0 : index
    %c0_2 = arith.constant 0 : index
    %3 = vector.load %arg13[%c0, %c0_1, %c0_2] : memref<1x128x128xf32, #tpu.memory_space<vmem>>, vector<1x128x128xf32>
    %c0_3 = arith.constant 0 : index
    %c0_4 = arith.constant 0 : index
    %c0_5 = arith.constant 0 : index
    %4 = vector.load %arg3[%c0_3, %c0_4, %c0_5] : memref<1x1x128xf32, #tpu.memory_space<vmem>>, vector<1x1x128xf32>
    %c0_6 = arith.constant 0 : index
    %c0_7 = arith.constant 0 : index
    %c0_8 = arith.constant 0 : index
    %5 = vector.load %arg11[%c0_6, %c0_7, %c0_8] : memref<1x6x128xf32, #tpu.memory_space<vmem>>, vector<1x6x128xf32>
    %6 = vector.shape_cast %5 : vector<1x6x128xf32> to vector<6x128xf32>
    %7 = vector.extract_strided_slice %6 {offsets = [0, 0], sizes = [1, 128], strides = [1, 1]} : vector<6x128xf32> to vector<1x128xf32>
    %8 = vector.extract_strided_slice %6 {offsets = [1, 0], sizes = [1, 128], strides = [1, 1]} : vector<6x128xf32> to vector<1x128xf32>
    %9 = vector.extract_strided_slice %6 {offsets = [2, 0], sizes = [1, 128], strides = [1, 1]} : vector<6x128xf32> to vector<1x128xf32>
    %10 = vector.extract_strided_slice %6 {offsets = [3, 0], sizes = [1, 128], strides = [1, 1]} : vector<6x128xf32> to vector<1x128xf32>
    %11 = vector.extract_strided_slice %6 {offsets = [4, 0], sizes = [1, 128], strides = [1, 1]} : vector<6x128xf32> to vector<1x128xf32>
    %12 = vector.extract_strided_slice %6 {offsets = [5, 0], sizes = [1, 128], strides = [1, 1]} : vector<6x128xf32> to vector<1x128xf32>
    %13 = vector.shape_cast %3 : vector<1x128x128xf32> to vector<128x128xf32>
    %14 = arith.truncf %13 : vector<128x128xf32> to vector<128x128xbf16>
    %c0_9 = arith.constant 0 : index
    %c0_10 = arith.constant 0 : index
    %c0_11 = arith.constant 0 : index
    %15 = vector.load %arg5[%c0_9, %c0_10, %c0_11] : memref<1x128x384xbf16, #tpu.memory_space<vmem>>, vector<1x128x384xbf16>
    %16 = vector.shape_cast %15 : vector<1x128x384xbf16> to vector<128x384xbf16>
    %cst = arith.constant dense<0.000000e+00> : vector<128x384xf32>
    %17 = tpu.matmul %14, %16, %cst {dimension_numbers = #tpu.dot_dimension_numbers<[1], [0], [0], [1], [0, 0, 1, 1], [], []>} : vector<128x128xbf16>, vector<128x384xbf16>, vector<128x384xf32> -> vector<128x384xf32>
    %c0_12 = arith.constant 0 : index
    %c0_13 = arith.constant 0 : index
    %c0_14 = arith.constant 0 : index
    %18 = vector.load %arg6[%c0_12, %c0_13, %c0_14] : memref<1x1x384xf32, #tpu.memory_space<vmem>>, vector<1x1x384xf32>
    %19 = vector.shape_cast %18 : vector<1x1x384xf32> to vector<1x384xf32>
    %20 = vector.broadcast %19 : vector<1x384xf32> to vector<128x384xf32>
    %21 = arith.addf %17, %20 : vector<128x384xf32>
    %22 = vector.shape_cast %21 : vector<128x384xf32> to vector<1x128x384xf32>
    %23 = vector.extract_strided_slice %22 {offsets = [0, 0, 0], sizes = [1, 128, 64], strides = [1, 1, 1]} : vector<1x128x384xf32> to vector<1x128x64xf32>
    %24 = arith.truncf %23 : vector<1x128x64xf32> to vector<1x128x64xbf16>
    %25 = vector.extract_strided_slice %22 {offsets = [0, 0, 128], sizes = [1, 128, 64], strides = [1, 1, 1]} : vector<1x128x384xf32> to vector<1x128x64xf32>
    %26 = arith.truncf %25 : vector<1x128x64xf32> to vector<1x128x64xbf16>
    %27 = vector.extract_strided_slice %22 {offsets = [0, 0, 256], sizes = [1, 128, 64], strides = [1, 1, 1]} : vector<1x128x384xf32> to vector<1x128x64xf32>
    %28 = arith.truncf %27 : vector<1x128x64xf32> to vector<1x128x64xbf16>
    "tpu.trace_start"() <{level = 10 : i32, message = "bqd,bkd->bqk"}> : () -> ()
    %cst_15 = arith.constant dense<0.000000e+00> : vector<1x128x128xf32>
    %29 = tpu.matmul %24, %26, %cst_15 {dimension_numbers = #tpu.dot_dimension_numbers<[2], [2], [1], [1], [0, 0, 0, 1, 1, 1], [0], [0]>} : vector<1x128x64xbf16>, vector<1x128x64xbf16>, vector<1x128x128xf32> -> vector<1x128x128xf32>
    "tpu.trace_stop"() : () -> ()
    %30 = vector.broadcast %4 : vector<1x1x128xf32> to vector<1x128x128xf32>
    %31 = arith.addf %29, %30 : vector<1x128x128xf32>
    %cst_16 = arith.constant dense<0xFF800000> : vector<1x128xf32>
    %32 = vector.multi_reduction <maximumf>, %31, %cst_16 [2] : vector<1x128x128xf32> to vector<1x128xf32>
    %33 = vector.shape_cast %32 : vector<1x128xf32> to vector<1x128x1xf32>
    %34 = vector.broadcast %33 : vector<1x128x1xf32> to vector<1x128x128xf32>
    %35 = arith.subf %31, %34 : vector<1x128x128xf32>
    %36 = math.exp %35 : vector<1x128x128xf32>
    %cst_17 = arith.constant dense<0.000000e+00> : vector<1x128xf32>
    %37 = vector.multi_reduction <add>, %36, %cst_17 [2] : vector<1x128x128xf32> to vector<1x128xf32>
    %38 = vector.shape_cast %37 : vector<1x128xf32> to vector<1x128x1xf32>
    %39 = tpu.reciprocal %38 {approx = true} : vector<1x128x1xf32> -> vector<1x128x1xf32>
    %40 = vector.broadcast %39 : vector<1x128x1xf32> to vector<1x128x128xf32>
    %41 = arith.mulf %36, %40 : vector<1x128x128xf32>
    %42 = arith.truncf %41 : vector<1x128x128xf32> to vector<1x128x128xbf16>
    "tpu.trace_start"() <{level = 10 : i32, message = "bqk,bkd->bqd"}> : () -> ()
    %cst_18 = arith.constant dense<0.000000e+00> : vector<1x128x64xf32>
    %43 = tpu.matmul %42, %28, %cst_18 {dimension_numbers = #tpu.dot_dimension_numbers<[2], [1], [1], [2], [0, 0, 0, 1, 1, 2], [0], [0]>} : vector<1x128x128xbf16>, vector<1x128x64xbf16>, vector<1x128x64xf32> -> vector<1x128x64xf32>
    "tpu.trace_stop"() : () -> ()
    %44 = vector.extract_strided_slice %22 {offsets = [0, 0, 64], sizes = [1, 128, 64], strides = [1, 1, 1]} : vector<1x128x384xf32> to vector<1x128x64xf32>
    %45 = arith.truncf %44 : vector<1x128x64xf32> to vector<1x128x64xbf16>
    %46 = vector.extract_strided_slice %22 {offsets = [0, 0, 192], sizes = [1, 128, 64], strides = [1, 1, 1]} : vector<1x128x384xf32> to vector<1x128x64xf32>
    %47 = arith.truncf %46 : vector<1x128x64xf32> to vector<1x128x64xbf16>
    %48 = vector.extract_strided_slice %22 {offsets = [0, 0, 320], sizes = [1, 128, 64], strides = [1, 1, 1]} : vector<1x128x384xf32> to vector<1x128x64xf32>
    %49 = arith.truncf %48 : vector<1x128x64xf32> to vector<1x128x64xbf16>
    "tpu.trace_start"() <{level = 10 : i32, message = "bqd,bkd->bqk"}> : () -> ()
    %cst_19 = arith.constant dense<0.000000e+00> : vector<1x128x128xf32>
    %50 = tpu.matmul %45, %47, %cst_19 {dimension_numbers = #tpu.dot_dimension_numbers<[2], [2], [1], [1], [0, 0, 0, 1, 1, 1], [0], [0]>} : vector<1x128x64xbf16>, vector<1x128x64xbf16>, vector<1x128x128xf32> -> vector<1x128x128xf32>
    "tpu.trace_stop"() : () -> ()
    %51 = vector.broadcast %4 : vector<1x1x128xf32> to vector<1x128x128xf32>
    %52 = arith.addf %50, %51 : vector<1x128x128xf32>
    %cst_20 = arith.constant dense<0xFF800000> : vector<1x128xf32>
    %53 = vector.multi_reduction <maximumf>, %52, %cst_20 [2] : vector<1x128x128xf32> to vector<1x128xf32>
    %54 = vector.shape_cast %53 : vector<1x128xf32> to vector<1x128x1xf32>
    %55 = vector.broadcast %54 : vector<1x128x1xf32> to vector<1x128x128xf32>
    %56 = arith.subf %52, %55 : vector<1x128x128xf32>
    %57 = math.exp %56 : vector<1x128x128xf32>
    %cst_21 = arith.constant dense<0.000000e+00> : vector<1x128xf32>
    %58 = vector.multi_reduction <add>, %57, %cst_21 [2] : vector<1x128x128xf32> to vector<1x128xf32>
    %59 = vector.shape_cast %58 : vector<1x128xf32> to vector<1x128x1xf32>
    %60 = tpu.reciprocal %59 {approx = true} : vector<1x128x1xf32> -> vector<1x128x1xf32>
    %61 = vector.broadcast %60 : vector<1x128x1xf32> to vector<1x128x128xf32>
    %62 = arith.mulf %57, %61 : vector<1x128x128xf32>
    %63 = arith.truncf %62 : vector<1x128x128xf32> to vector<1x128x128xbf16>
    "tpu.trace_start"() <{level = 10 : i32, message = "bqk,bkd->bqd"}> : () -> ()
    %cst_22 = arith.constant dense<0.000000e+00> : vector<1x128x64xf32>
    %64 = tpu.matmul %63, %49, %cst_22 {dimension_numbers = #tpu.dot_dimension_numbers<[2], [1], [1], [2], [0, 0, 0, 1, 1, 2], [0], [0]>} : vector<1x128x128xbf16>, vector<1x128x64xbf16>, vector<1x128x64xf32> -> vector<1x128x64xf32>
    "tpu.trace_stop"() : () -> ()
    %65 = tpu.concatenate %43, %64 in 2 : vector<1x128x64xf32>, vector<1x128x64xf32> -> vector<1x128x128xf32>
    %66 = vector.shape_cast %65 : vector<1x128x128xf32> to vector<128x128xf32>
    %67 = arith.truncf %66 : vector<128x128xf32> to vector<128x128xbf16>
    %c0_23 = arith.constant 0 : index
    %c0_24 = arith.constant 0 : index
    %c0_25 = arith.constant 0 : index
    %68 = vector.load %arg7[%c0_23, %c0_24, %c0_25] : memref<1x128x128xbf16, #tpu.memory_space<vmem>>, vector<1x128x128xbf16>
    %69 = vector.shape_cast %68 : vector<1x128x128xbf16> to vector<128x128xbf16>
    %cst_26 = arith.constant dense<0.000000e+00> : vector<128x128xf32>
    %70 = tpu.matmul %67, %69, %cst_26 {dimension_numbers = #tpu.dot_dimension_numbers<[1], [0], [0], [1], [0, 0, 1, 1], [], []>} : vector<128x128xbf16>, vector<128x128xbf16>, vector<128x128xf32> -> vector<128x128xf32>
    %71 = vector.broadcast %7 : vector<1x128xf32> to vector<128x128xf32>
    %72 = arith.addf %70, %71 : vector<128x128xf32>
    %73 = arith.addf %13, %72 : vector<128x128xf32>
    %cst_27 = arith.constant dense<0.000000e+00> : vector<128xf32>
    %74 = vector.multi_reduction <add>, %73, %cst_27 [1] : vector<128x128xf32> to vector<128xf32>
    %75 = vector.shape_cast %74 : vector<128xf32> to vector<128x1xf32>
    %cst_28 = arith.constant 1.280000e+02 : f32
    %76 = vector.broadcast %cst_28 : f32 to vector<128x1xf32>
    %77 = arith.divf %75, %76 : vector<128x1xf32>
    %78 = vector.broadcast %77 : vector<128x1xf32> to vector<128x128xf32>
    %79 = arith.subf %73, %78 : vector<128x128xf32>
    %80 = arith.mulf %79, %79 : vector<128x128xf32>
    %cst_29 = arith.constant dense<0.000000e+00> : vector<128xf32>
    %81 = vector.multi_reduction <add>, %80, %cst_29 [1] : vector<128x128xf32> to vector<128xf32>
    %82 = vector.shape_cast %81 : vector<128xf32> to vector<128x1xf32>
    %cst_30 = arith.constant 1.280000e+02 : f32
    %83 = vector.broadcast %cst_30 : f32 to vector<128x1xf32>
    %84 = arith.divf %82, %83 : vector<128x1xf32>
    %cst_31 = arith.constant 9.99999996E-13 : f32
    %85 = vector.broadcast %cst_31 : f32 to vector<128x1xf32>
    %86 = arith.addf %84, %85 : vector<128x1xf32>
    %87 = math.rsqrt %86 : vector<128x1xf32>
    %88 = vector.broadcast %77 : vector<128x1xf32> to vector<128x128xf32>
    %89 = arith.subf %73, %88 : vector<128x128xf32>
    %90 = vector.broadcast %87 : vector<128x1xf32> to vector<128x128xf32>
    %91 = arith.mulf %89, %90 : vector<128x128xf32>
    %92 = vector.broadcast %8 : vector<1x128xf32> to vector<128x128xf32>
    %93 = arith.mulf %91, %92 : vector<128x128xf32>
    %94 = vector.broadcast %9 : vector<1x128xf32> to vector<128x128xf32>
    %95 = arith.addf %93, %94 : vector<128x128xf32>
    %96 = arith.truncf %95 : vector<128x128xf32> to vector<128x128xbf16>
    %c0_32 = arith.constant 0 : index
    %c0_33 = arith.constant 0 : index
    %c0_34 = arith.constant 0 : index
    %97 = vector.load %arg8[%c0_32, %c0_33, %c0_34] : memref<1x128x512xbf16, #tpu.memory_space<vmem>>, vector<1x128x512xbf16>
    %98 = vector.shape_cast %97 : vector<1x128x512xbf16> to vector<128x512xbf16>
    %cst_35 = arith.constant dense<0.000000e+00> : vector<128x512xf32>
    %99 = tpu.matmul %96, %98, %cst_35 {dimension_numbers = #tpu.dot_dimension_numbers<[1], [0], [0], [1], [0, 0, 1, 1], [], []>} : vector<128x128xbf16>, vector<128x512xbf16>, vector<128x512xf32> -> vector<128x512xf32>
    %c0_36 = arith.constant 0 : index
    %c0_37 = arith.constant 0 : index
    %c0_38 = arith.constant 0 : index
    %100 = vector.load %arg9[%c0_36, %c0_37, %c0_38] : memref<1x1x512xf32, #tpu.memory_space<vmem>>, vector<1x1x512xf32>
    %101 = vector.shape_cast %100 : vector<1x1x512xf32> to vector<1x512xf32>
    %102 = vector.broadcast %101 : vector<1x512xf32> to vector<128x512xf32>
    %103 = arith.addf %99, %102 : vector<128x512xf32>
    %104 = arith.mulf %103, %103 : vector<128x512xf32>
    %105 = arith.mulf %103, %104 : vector<128x512xf32>
    %cst_39 = arith.constant 4.471500e-02 : f32
    %106 = vector.broadcast %cst_39 : f32 to vector<128x512xf32>
    %107 = arith.mulf %106, %105 : vector<128x512xf32>
    %108 = arith.addf %103, %107 : vector<128x512xf32>
    %cst_40 = arith.constant 0.797884583 : f32
    %109 = vector.broadcast %cst_40 : f32 to vector<128x512xf32>
    %110 = arith.mulf %109, %108 : vector<128x512xf32>
    %111 = math.tanh %110 : vector<128x512xf32>
    %cst_41 = arith.constant 1.000000e+00 : f32
    %112 = vector.broadcast %cst_41 : f32 to vector<128x512xf32>
    %113 = arith.addf %112, %111 : vector<128x512xf32>
    %cst_42 = arith.constant 5.000000e-01 : f32
    %114 = vector.broadcast %cst_42 : f32 to vector<128x512xf32>
    %115 = arith.mulf %114, %113 : vector<128x512xf32>
    %116 = arith.mulf %103, %115 : vector<128x512xf32>
    %117 = arith.truncf %116 : vector<128x512xf32> to vector<128x512xbf16>
    %c0_43 = arith.constant 0 : index
    %c0_44 = arith.constant 0 : index
    %c0_45 = arith.constant 0 : index
    %118 = vector.load %arg10[%c0_43, %c0_44, %c0_45] : memref<1x512x128xbf16, #tpu.memory_space<vmem>>, vector<1x512x128xbf16>
    %119 = vector.shape_cast %118 : vector<1x512x128xbf16> to vector<512x128xbf16>
    %cst_46 = arith.constant dense<0.000000e+00> : vector<128x128xf32>
    %120 = tpu.matmul %117, %119, %cst_46 {dimension_numbers = #tpu.dot_dimension_numbers<[1], [0], [0], [1], [0, 0, 1, 1], [], []>} : vector<128x512xbf16>, vector<512x128xbf16>, vector<128x128xf32> -> vector<128x128xf32>
    %121 = vector.broadcast %10 : vector<1x128xf32> to vector<128x128xf32>
    %122 = arith.addf %120, %121 : vector<128x128xf32>
    %123 = arith.addf %95, %122 : vector<128x128xf32>
    %cst_47 = arith.constant dense<0.000000e+00> : vector<128xf32>
    %124 = vector.multi_reduction <add>, %123, %cst_47 [1] : vector<128x128xf32> to vector<128xf32>
    %125 = vector.shape_cast %124 : vector<128xf32> to vector<128x1xf32>
    %cst_48 = arith.constant 1.280000e+02 : f32
    %126 = vector.broadcast %cst_48 : f32 to vector<128x1xf32>
    %127 = arith.divf %125, %126 : vector<128x1xf32>
    %128 = vector.broadcast %127 : vector<128x1xf32> to vector<128x128xf32>
    %129 = arith.subf %123, %128 : vector<128x128xf32>
    %130 = arith.mulf %129, %129 : vector<128x128xf32>
    %cst_49 = arith.constant dense<0.000000e+00> : vector<128xf32>
    %131 = vector.multi_reduction <add>, %130, %cst_49 [1] : vector<128x128xf32> to vector<128xf32>
    %132 = vector.shape_cast %131 : vector<128xf32> to vector<128x1xf32>
    %cst_50 = arith.constant 1.280000e+02 : f32
    %133 = vector.broadcast %cst_50 : f32 to vector<128x1xf32>
    %134 = arith.divf %132, %133 : vector<128x1xf32>
    %cst_51 = arith.constant 9.99999996E-13 : f32
    %135 = vector.broadcast %cst_51 : f32 to vector<128x1xf32>
    %136 = arith.addf %134, %135 : vector<128x1xf32>
    %137 = math.rsqrt %136 : vector<128x1xf32>
    %138 = vector.broadcast %127 : vector<128x1xf32> to vector<128x128xf32>
    %139 = arith.subf %123, %138 : vector<128x128xf32>
    %140 = vector.broadcast %137 : vector<128x1xf32> to vector<128x128xf32>
    %141 = arith.mulf %139, %140 : vector<128x128xf32>
    %142 = vector.broadcast %11 : vector<1x128xf32> to vector<128x128xf32>
    %143 = arith.mulf %141, %142 : vector<128x128xf32>
    %144 = vector.broadcast %12 : vector<1x128xf32> to vector<128x128xf32>
    %145 = arith.addf %143, %144 : vector<128x128xf32>
    %146 = vector.shape_cast %145 : vector<128x128xf32> to vector<1x128x128xf32>
    %c0_52 = arith.constant 0 : index
    %c0_53 = arith.constant 0 : index
    %c0_54 = arith.constant 0 : index
    %147 = vector.load %arg13[%c0_52, %c0_53, %c0_54] : memref<1x128x128xf32, #tpu.memory_space<vmem>>, vector<1x128x128xf32>
    tpu.vector_store %arg13[%c0_52, %c0_53, %c0_54], %146 {strides = array<i32>} : memref<1x128x128xf32, #tpu.memory_space<vmem>>, vector<1x128x128xf32>,
    %c1_i32 = arith.constant 1 : i32
    %148 = arith.cmpi eq, %arg1, %c1_i32 : i32
    %149 = arith.extui %148 : i1 to i32
    %c0_i32_55 = arith.constant 0 : i32
    %150 = arith.cmpi ne, %149, %c0_i32_55 : i32
    scf.if %150 {
      %151 = vector.extract_strided_slice %146 {offsets = [0, 0, 0], sizes = [1, 1, 128], strides = [1, 1, 1]} : vector<1x128x128xf32> to vector<1x1x128xf32>
      %c0_56 = arith.constant 0 : index
      %c0_57 = arith.constant 0 : index
      %c0_58 = arith.constant 0 : index
      %152 = vector.load %arg12[%c0_56, %c0_57, %c0_58] : memref<1x1x128xf32, #tpu.memory_space<vmem>>, vector<1x1x128xf32>
      tpu.vector_store %arg12[%c0_56, %c0_57, %c0_58], %151 {strides = array<i32>} : memref<1x1x128xf32, #tpu.memory_space<vmem>>, vector<1x1x128xf32>,
    } else {
    }
    return
  }
  func.func @transform_0(%arg0: i32, %arg1: i32) -> (i32, i32, i32) {
    %c0_i32 = arith.constant 0 : i32
    %c0_i32_0 = arith.constant 0 : i32
    %c0_i32_1 = arith.constant 0 : i32
    return %arg0, %c0_i32, %c0_i32_0 : i32, i32, i32
  }
  func.func @transform_1(%arg0: i32, %arg1: i32) -> (i32, i32, i32) {
    %c0_i32 = arith.constant 0 : i32
    %c0_i32_0 = arith.constant 0 : i32
    %c0_i32_1 = arith.constant 0 : i32
    return %arg0, %c0_i32, %c0_i32_0 : i32, i32, i32
  }
  func.func @transform_2(%arg0: i32, %arg1: i32) -> (i32, i32) {
    %c0_i32 = arith.constant 0 : i32
    %c0_i32_0 = arith.constant 0 : i32
    %c0_i32_1 = arith.constant 0 : i32
    return %c0_i32, %c0_i32_0 : i32, i32
  }
  func.func @transform_3(%arg0: i32, %arg1: i32) -> (i32, i32, i32) {
    %c0_i32 = arith.constant 0 : i32
    %c0_i32_0 = arith.constant 0 : i32
    %c0_i32_1 = arith.constant 0 : i32
    return %arg1, %c0_i32, %c0_i32_0 : i32, i32, i32
  }
  func.func @transform_4(%arg0: i32, %arg1: i32) -> (i32, i32, i32) {
    %c0_i32 = arith.constant 0 : i32
    %c0_i32_0 = arith.constant 0 : i32
    %c0_i32_1 = arith.constant 0 : i32
    return %arg1, %c0_i32, %c0_i32_0 : i32, i32, i32
  }
  func.func @transform_5(%arg0: i32, %arg1: i32) -> (i32, i32, i32) {
    %c0_i32 = arith.constant 0 : i32
    %c0_i32_0 = arith.constant 0 : i32
    %c0_i32_1 = arith.constant 0 : i32
    return %arg1, %c0_i32, %c0_i32_0 : i32, i32, i32
  }
  func.func @transform_6(%arg0: i32, %arg1: i32) -> (i32, i32, i32) {
    %c0_i32 = arith.constant 0 : i32
    %c0_i32_0 = arith.constant 0 : i32
    %c0_i32_1 = arith.constant 0 : i32
    return %arg1, %c0_i32, %c0_i32_0 : i32, i32, i32
  }
  func.func @transform_7(%arg0: i32, %arg1: i32) -> (i32, i32, i32) {
    %c0_i32 = arith.constant 0 : i32
    %c0_i32_0 = arith.constant 0 : i32
    %c0_i32_1 = arith.constant 0 : i32
    return %arg1, %c0_i32, %c0_i32_0 : i32, i32, i32
  }
  func.func @transform_8(%arg0: i32, %arg1: i32) -> (i32, i32, i32) {
    %c0_i32 = arith.constant 0 : i32
    %c0_i32_0 = arith.constant 0 : i32
    %c0_i32_1 = arith.constant 0 : i32
    return %arg1, %c0_i32, %c0_i32_0 : i32, i32, i32
  }
  func.func @transform_9(%arg0: i32, %arg1: i32) -> (i32, i32, i32) {
    %c0_i32 = arith.constant 0 : i32
    %c0_i32_0 = arith.constant 0 : i32
    %c0_i32_1 = arith.constant 0 : i32
    return %arg1, %c0_i32, %c0_i32_0 : i32, i32, i32
  }
  func.func @transform_10(%arg0: i32, %arg1: i32) -> (i32, i32, i32) {
    %c0_i32 = arith.constant 0 : i32
    %c0_i32_0 = arith.constant 0 : i32
    %c0_i32_1 = arith.constant 0 : i32
    return %arg0, %c0_i32, %c0_i32_0 : i32, i32, i32
  }
}

</mosaic_0001>

<bundles_post_ra>
// kernel: tpu_custom_call.1
= control target key start
LH: loop header
LB: loop body
LE: loop exit
PB: predicated region body
PF: predicated region fallthrough
CT: control target
= control target key end

     0   :  { %s8755_s0 = inlined_call_operand.hbm [shape: bf16[2,128,128], index: 0, kind: input, shape index: {}]   ;;  %s8756_s1 = inlined_call_operand.vmem [shape: f32[2,1,128], index: 1, kind: input, shape index: {}]   ;;  %s8757_s2 = inlined_call_operand.vmem [shape: f32[2,128], index: 2, kind: input, shape index: {}]   ;;  %s8758_s3 = inlined_call_operand.hbm [shape: bf16[2,128,384], index: 3, kind: input, shape index: {}]   ;;  %s8759_s4 = inlined_call_operand.vmem [shape: f32[2,1,384], index: 4, kind: input, shape index: {}]   ;;  %s8760_s5 = inlined_call_operand.hbm [shape: bf16[2,128,128], index: 5, kind: input, shape index: {}]   ;;  %s8761_s6 = inlined_call_operand.hbm [shape: bf16[2,128,512], index: 6, kind: input, shape index: {}]   ;;  %s8762_s7 = inlined_call_operand.vmem [shape: f32[2,1,512], index: 7, kind: input, shape index: {}]   ;;  %s8763_s8 = inlined_call_operand.hbm [shape: bf16[2,512,128], index: 8, kind: input, shape index: {}]   ;;  %s8764_s9 = inlined_call_operand.vmem [shape: f32[2,6,128], index: 9, kind: input, shape index: {}]   ;;  %s8765_s10 = inlined_call_operand.hbm [shape: f32[2,1,128], index: 10, kind: output, shape index: {}]  }
   0x1   :  { %8828 = sst [smem:[#allocation68_spill]] %s8755_s0 }
   0x2   :  { %8829 = sst [smem:[#allocation69_spill]] %s8756_s1 }
   0x3   :  { %8830 = sst [smem:[#allocation70_spill]] %s8757_s2 }
   0x4   :  { %8831 = sst [smem:[#allocation71_spill]] %s8758_s3 }
   0x5   :  { %8832 = sst [smem:[#allocation72_spill]] %s8759_s4 }
   0x6   :  { %8833 = sst [smem:[#allocation73_spill]] %s8760_s5 }
   0x7   :  { %8834 = sst [smem:[#allocation74_spill]] %s8761_s6 }
   0x8   :  { %8835 = sst [smem:[#allocation75_spill]] %s8762_s7 }
   0x9   :  { %8836 = sst [smem:[#allocation76_spill]] %s8763_s8 }
   0xa   :  { %8837 = sst [smem:[#allocation77_spill]] %s8764_s9 }
   0xb   :  { %8838 = sst [smem:[#allocation78_spill]] %s8765_s10 }
   0xc   :  { %15 = vsyncpa [#allocation4], 0 }
   0xd   :  { %17 = vsyncpa [#allocation4 + $0x1], 0 }
   0xe   :  { %18 = vsyncpa [#allocation7], 0 }
   0xf   :  { %20 = vsyncpa [#allocation7 + $0x1], 0 }
  0x10   :  { %21 = vsyncpa [#allocation10], 0 }
  0x11   :  { %23 = vsyncpa [#allocation10 + $0x1], 0 }
  0x12   :  { %24 = vsyncpa [#allocation5], 0 }
  0x13   :  { %26 = vsyncpa [#allocation5 + $0x1], 0  ;;  %s6299_s13 = smov 0   ;;  %s6301_s14 = smov 0  }
  0x14   :  { %s6303_s15 = smov 0   ;;  %s6305_s16 = smov 0  }
  0x15   :  { %s6307_s17 = smov 0   ;;  %s6309_s18 = smov 0  }
  0x16   :  { %s6311_s19 = smov 0   ;;  %s6313_s20 = smov 0  }
  0x17   :  { %s6315_s21 = smov 0   ;;  %s6317_s22 = smov 0  }
  0x18   :  { %s6319_s23 = smov 0  }
  0x19 LB: > { %8839 = sst [smem:[#allocation17_spill]] %s6192_s14  ;;  %s41_s24 = sadd.s32 1, %s6220_s21  ;;  %s6228_s23 = sphi %s6319_s23, %s32_s23   ;;  %s6224_s22 = sphi %s6317_s22, %s8980_s22   ;;  %s6220_s21 = sphi %s6315_s21, %s8979_s21   ;;  %s6216_s20 = sphi %s6313_s20, %s8978_s20   ;;  %s6212_s19 = sphi %s6311_s19, %s8977_s19   ;;  %s6208_s18 = sphi %s6309_s18, %s8976_s18   ;;  %s6204_s17 = sphi %s6307_s17, %s8975_s17   ;;  %s6200_s16 = sphi %s6305_s16, %s8974_s16   ;;  %s6196_s15 = sphi %s6303_s15, %s8973_s15   ;;  %s6192_s14 = sphi %s6301_s14, %s8972_s14   ;;  %s6188_s13 = sphi %s6299_s13, %s8971_s13  }
  0x1a   : > { %8840 = sst [smem:[#allocation18_spill]] %s6196_s15  ;;  %p59_p0 = scmp.eq.s32.totalorder %s6228_s23, 0 }
  0x1b   : > { %8841 = sst [smem:[#allocation19_spill]] %s6204_s17  ;;  %p6356_p1 = scmp.ge.s32.totalorder %s41_s24, 2 }
  0x1c   : > { %8842 = sst [smem:[#allocation20_spill]] %s6208_s18  ;;  %s124_s26 = sadd.s32 1, %s6196_s15 }
  0x1d   : > { %8843 = sst [smem:[#allocation21_spill]] %s6212_s19  ;;  %p131_p2 = scmp.ne.s32.totalorder %s6196_s15, %s6192_s14 }
  0x1e   : > { %8844 = sst [smem:[#allocation22_spill]] %s6216_s20  ;;  %p137_p3 = scmp.ne.s32.totalorder %s6192_s14, %s6188_s13 }
  0x1f   : > { %8845 = sst [smem:[#allocation23_spill]] %s6220_s21  ;;  %s8982_s24 = smov (%p6356_p1, %s41_s24), 0 }
  0x20   : > { %8846 = sst [smem:[#allocation24_spill]] %s6224_s22  ;;  %p133_p4 = por %p131_p2, %p59_p0 }
  0x21   : > { %8848 = sst [smem:[#allocation25_spill]] %s8982_s24  ;;  %s121_s27 = ssub.s32 %s6220_s21, %s8982_s24 }
  0x22   : > { %p8773_p5 = scmp.lt.s32.totalorder %s6228_s23, 4  ;;  %p122_p6 = scmp.eq.s32.totalorder %s121_s27, 0 }
  0x23   : > { %s6376_s29 = sand.u32 1, %s6196_s15   ;;  %s5298_s10 = smul.u32 3072, %s6220_s21 }
  0x24   : > { %s6379_s30 = scalar_select %p122_p6, %s6196_s15, %s124_s26  }
  0x25   : > { %s5297_s11 = smul.u32 192, %s6376_s29  ;;  %p6384_p7 = pnand %p8773_p5, %p133_p4 }
  0x26   : > { %8849 = sst [smem:[#allocation26_spill]] %s6379_s30  ;;  %s8852_s4 = sand.u32 1, %s6228_s23  }
  0x27   : > { %s8851_s3 = sld [smem:[#allocation71_spill]]  ;;  %s377_s27 = scalar_lea.vmem [#allocation6], %s5297_s11 }
  0x28   : > { %s384_s28 = sshll.u32 %s377_s27, 4  ;;  %s6394_s7 = scalar_lea.sflag [#allocation7], %s8852_s4  ;;  %s385_s28 = int_to_ptr.vmem [resolvable:$true] %s384_s28 }
  0x29   : > { %p8772_p8 = pneg %p6384_p7  ;;  %s5973_s26 = scalar_lea.vmem %s385_s28, 3072 }
  0x2a   : > { %p5974_p9 = scmp.ne.s32.totalorder %s385_s28, %s5973_s26  ;;  %s6230_s30 = smov [#allocation6]  }
  0x2b   : > { %s5978_s15 = sshll.u32 %s6230_s30, 4  ;;  %s5979_s15 = int_to_ptr.vmem [resolvable:$false] %s5978_s15 }
  0x2c   : > { %p5976_p10 = pnand %p5974_p9, %p8772_p8  ;;  %s5980_s1 = scalar_lea.vmem %s5979_s15, 6144 }
  0x2d   : > { %s383_s24 = scalar_lea.hbm %s8851_s3, %s5298_s10  ;;  %p5981_p12 = scmp.lt.s32.totalorder %s385_s28, %s5979_s15 }
  0x2e   : > { %p5977_p11 = pneg %p5976_p10  ;;  %p5982_p13 = scmp.lt.s32.totalorder %s5980_s1, %s5973_s26 }
  0x30   : > { %p5983_p2 = por %p5982_p13, %p5981_p12 }
  0x32   : > { %p5984_p4 = pnand %p5983_p2, %p5977_p11 }
  0x34   : > { %5987 = shalt.err (!%p5984_p4)
}
  0x35   : > { %s6231_s2 = smov 192   ;;  %s6232_s4 = smov 12  }
  0x36   : > { %5319 = dma.hbm_to_vmem [thread:$0]  (!%p6384_p7), %s383_s24, 3072, %s385_s28, %s6394_s7, %s6231_s2, %s6231_s2, %s6232_s4  }
  0x37   : > { %p4679_p6 = scmp.ge.s32.totalorder %s6228_s23, 1  ;;  %p476_p9 = scmp.lt.s32.totalorder %s6228_s23, 5 }
  0x38   : > { %s4673_s9 = sshll.u32 %s6376_s29, 8  ;;  %s4808_s10 = sshll.u32 %s6220_s21, 12 }
  0x39   : > { %p6407_p10 = pnand %p4679_p6, %p476_p9  ;;  %s426_s15 = scalar_lea.vmem [#allocation9], %s4673_s9 }
  0x3a   : > { %s433_s30 = sshll.u32 %s426_s15, 4  ;;  %s8854_s6 = sld [smem:[#allocation74_spill]]  ;;  %s434_s30 = int_to_ptr.vmem [resolvable:$true] %s433_s30 }
  0x3b   : > { %s8855_s3 = sand.u32 1, %s6228_s23   ;;  %s6001_s20 = scalar_lea.vmem %s434_s30, 4096 }
  0x3c   : > { %s6417_s19 = scalar_lea.sflag [#allocation10], %s8855_s3  ;;  %p6002_p11 = scmp.ne.s32.totalorder %s434_s30, %s6001_s20 }
  0x3d   : > { %s6233_s24 = smov [#allocation9]  }
  0x3e   : > { %p6004_p12 = pnand %p6002_p11, %p8772_p8  ;;  %s6006_s28 = sshll.u32 %s6233_s24, 4  ;;  %s6007_s28 = int_to_ptr.vmem [resolvable:$false] %s6006_s28 }
  0x3f   : > { %s6008_s2 = scalar_lea.vmem %s6007_s28, 8192  ;;  %p6009_p2 = scmp.lt.s32.totalorder %s434_s30, %s6007_s28 }
  0x40   : > { %s432_s26 = scalar_lea.hbm %s8854_s6, %s4808_s10  ;;  %p6005_p13 = pneg %p6004_p12 }
  0x41   : > { %p6010_p4 = scmp.lt.s32.totalorder %s6008_s2, %s6001_s20 }
  0x43   : > { %p6011_p6 = por %p6010_p4, %p6009_p2 }
  0x45   : > { %p6012_p9 = pnand %p6011_p6, %p6005_p13 }
  0x47   : > { %6015 = shalt.err (!%p6012_p9)
}
  0x48   : > { %s6234_s4 = smov 256   ;;  %s6235_s3 = smov 16  }
  0x49   : > { %5325 = dma.hbm_to_vmem [thread:$0]  (!%p6384_p7), %s432_s26, 4096, %s434_s30, %s6417_s19, %s6234_s4, %s6234_s4, %s6235_s3  }
  0x4a   : > { %s8856_s8 = sld [smem:[#allocation76_spill]]  ;;  %s454_s27 = scalar_lea.vmem [#allocation11], %s4673_s9 }
  0x4b   : > { %s461_s24 = sshll.u32 %s454_s27, 4  ;;  %s6433_s28 = sadd.s32 4294967295, %s6228_s23   ;;  %s6430_s24 = int_to_ptr.vmem [resolvable:$true] %s461_s24 }
  0x4c   : > { %s4663_s2 = sadd.s32 4294967294, %s6228_s23   ;;  %s44_s30 = sadd.s32 1, %s6224_s22 }
  0x4d   : > { %s51_s26 = sadd.s32 1, %s6208_s18  ;;  %s8984_s30 = smov (!%p6356_p1, %s44_s30), %s6224_s22 }
  0x4e   : > { %p58_p11 = scmp.ne.s32.totalorder %s6208_s18, %s6204_s17  ;;  %p64_p12 = scmp.ne.s32.totalorder %s6204_s17, %s6200_s16 }
  0x4f   : > { %p46_p13 = scmp.ge.s32.totalorder %s8984_s30, 2  ;;  %p65_p2 = scmp.eq.s32.totalorder %s6433_s28, 0 }
  0x50   : > { %s6428_s11 = scalar_lea.hbm %s8856_s8, %s4808_s10  ;;  %p6448_p4 = por %p59_p0, %p58_p11 }
  0x51   : > { %p317_p6 = scmp.eq.s32.totalorder %s6433_s28, 3  ;;  %s8986_s30 = smov (%p46_p13, %s8984_s30), 0 }
  0x52   : > { %8858 = sst [smem:[#allocation27_spill]] %s8986_s30  ;;  %p6458_p1 = por %p65_p2, %p64_p12 }
  0x53   : > { %p6465_p9 = por %p137_p3, %p65_p2  ;;  %s48_s4 = ssub.s32 %s6224_s22, %s8986_s30 }
  0x54   : > { %p6471_p0 = por %p317_p6, %p58_p11  ;;  %p49_p8 = scmp.eq.s32.totalorder %s48_s4, 0 }
  0x55   : > { %p323_p13 = scmp.eq.s32.totalorder %s4663_s2, 3  ;;  %s346_s20 = sand.u32 1, %s6208_s18  }
  0x56   : > { %s8861_s3 = scalar_select %p6471_p0, 1, 0 }
  0x57   : > { %s4806_s15 = sshll.u32 %s6224_s22, 10  ;;  %p6483_p5 = por %p323_p13, %p64_p12 }
  0x58   : > { %8862 = sst [smem:[#allocation28_spill]] %s8861_s3  ;;  %s4666_s13 = sshll.u32 %s346_s20, 6 }
  0x59   : > { %s6478_s27 = scalar_select %p49_p8, %s6208_s18, %s51_s26  }
  0x5a   : > { %s8864_s6 = scalar_select %p6483_p5, 1, 0 }
  0x5b   : > { %8863 = sst [smem:[#allocation29_spill]] %s6478_s27  ;;  %p8866_p3 = scmp.lt.s32.totalorder %s6228_s23, 4 }
  0x5c   : > { %s8865_s0 = sld [smem:[#allocation68_spill]]  ;;  %s350_s2 = scalar_lea.vmem [#allocation3], %s4666_s13 }
  0x5d   : > { %p6494_p11 = pnand %p8866_p3, %p6448_p4  ;;  %s357_s26 = sshll.u32 %s350_s2, 4  ;;  %s358_s26 = int_to_ptr.vmem [resolvable:$true] %s357_s26 }
  0x5e   : > { %s4670_s4 = sshll.u32 %s6376_s29, 6  ;;  %s347_s22 = scalar_lea.sflag [#allocation4], %s346_s20 }
  0x5f   : > { %p6018_p8 = pneg %p6494_p11  ;;  %s6029_s27 = scalar_lea.vmem %s358_s26, 1024 }
  0x60   : > { %p6030_p12 = scmp.ne.s32.totalorder %s358_s26, %s6029_s27  ;;  %s6236_s8 = smov [#allocation3]  }
  0x61   : > { %s6034_s14 = sshll.u32 %s6236_s8, 4  ;;  %s6035_s14 = int_to_ptr.vmem [resolvable:$false] %s6034_s14 }
  0x62   : > { %s356_s30 = scalar_lea.hbm %s8865_s0, %s4806_s15  ;;  %p6032_p2 = pnand %p6030_p12, %p6018_p8 }
  0x63   : > { %s6036_s9 = scalar_lea.vmem %s6035_s14, 2048  ;;  %p6037_p4 = scmp.lt.s32.totalorder %s358_s26, %s6035_s14 }
  0x64   : > { %p6033_p6 = pneg %p6032_p2  ;;  %p6038_p13 = scmp.lt.s32.totalorder %s6036_s9, %s6029_s27 }
  0x66   : > { %p6039_p3 = por %p6038_p13, %p6037_p4 }
  0x68   : > { %p6040_p5 = pnand %p6039_p3, %p6033_p6 }
  0x6a   : > { %6043 = shalt.err (!%p6040_p5)
}
  0x6b   : > { %s6237_s15 = smov 64   ;;  %s6238_s29 = smov 4  }
  0x6c   : > { %5316 = dma.hbm_to_vmem [thread:$0]  (!%p6494_p11), %s356_s30, 1024, %s358_s26, %s347_s22, %s6237_s15, %s6237_s15, %s6238_s29  }
  0x6d   : > { %s4807_s20 = sshll.u32 %s6220_s21, 10  ;;  %s8868_s5 = sld [smem:[#allocation73_spill]] }
  0x6e   : > { %s405_s14 = scalar_lea.vmem [#allocation8], %s4670_s4  ;;  %p8869_p8 = pneg %p6384_p7 }
  0x6f   : > { %s412_s27 = sshll.u32 %s405_s14, 4  ;;  %s6239_s0 = smov [#allocation8]   ;;  %s413_s27 = int_to_ptr.vmem [resolvable:$true] %s412_s27 }
  0x70   : > { %s6057_s9 = scalar_lea.vmem %s413_s27, 1024  ;;  %s6062_s3 = sshll.u32 %s6239_s0, 4  ;;  %s6063_s3 = int_to_ptr.vmem [resolvable:$false] %s6062_s3 }
  0x71   : > { %p6058_p5 = scmp.ne.s32.totalorder %s413_s27, %s6057_s9  ;;  %s6064_s18 = scalar_lea.vmem %s6063_s3, 2048 }
  0x72   : > { %p6065_p6 = scmp.lt.s32.totalorder %s413_s27, %s6063_s3  ;;  %p6066_p11 = scmp.lt.s32.totalorder %s6064_s18, %s6057_s9 }
  0x73   : > { %s411_s8 = scalar_lea.hbm %s8868_s5, %s4807_s20  ;;  %p6060_p12 = pnand %p6058_p5, %p8869_p8 }
  0x74   : > { %p6067_p4 = por %p6066_p11, %p6065_p6 }
  0x75   : > { %p6061_p2 = pneg %p6060_p12 }
  0x77   : > { %p6068_p13 = pnand %p6067_p4, %p6061_p2 }
  0x79   : > { %6071 = shalt.err (!%p6068_p13)
}
  0x7a   : > { %5322 = dma.hbm_to_vmem [thread:$0]  (!%p6384_p7), %s411_s8, 1024, %s413_s27, %s6394_s7, %s6237_s15, %s6237_s15, %s6238_s29  }
  0x7b   : > { %s6085_s22 = scalar_lea.vmem %s6430_s24, 4096  ;;  %p8870_p5 = pmov %p8869_p8 }
  0x7c   : > { %p6086_p3 = scmp.ne.s32.totalorder %s6430_s24, %s6085_s22  ;;  %s6240_s0 = smov [#allocation11]  }
  0x7d   : > { %s6090_s18 = sshll.u32 %s6240_s0, 4  ;;  %s6091_s18 = int_to_ptr.vmem [resolvable:$false] %s6090_s18 }
  0x7e   : > { %p6088_p8 = pnand %p6086_p3, %p8870_p5  ;;  %s6092_s30 = scalar_lea.vmem %s6091_s18, 8192 }
  0x7f   : > { %p6093_p2 = scmp.lt.s32.totalorder %s6430_s24, %s6091_s18  ;;  %p6094_p6 = scmp.lt.s32.totalorder %s6092_s30, %s6085_s22 }
  0x80   : > { %p6089_p12 = pneg %p6088_p8 }
  0x81   : > { %p6095_p11 = por %p6094_p6, %p6093_p2 }
  0x83   : > { %p6096_p4 = pnand %p6095_p11, %p6089_p12 }
  0x85   : > { %6099 = shalt.err (!%p6096_p4)
}
  0x86   : > { %5328 = dma.hbm_to_vmem [thread:$0]  (!%p6384_p7), %s6428_s11, 4096, %s6430_s24, %s6417_s19, %s6237_s15, %s6237_s15, %s6238_s29  }
  0x87   : > { %480 = sbr.rel (%p6407_p10) target bundleno = 3754 (0xeaa), region = 60 }
  0x8c   : > { %s6536_s7 = sand.u32 1, %s6204_s17  }
  0x8d   : > { %s4680_s26 = sshll.u32 %s6536_s7, 6  ;;  %s483_s4 = scalar_lea.sflag [#allocation4], %s6536_s7 }
  0x8e   : > { %s6540_s20 = scalar_lea.vmem [#allocation3], %s4680_s26 }
  0x8f   : > { %6171 = dma.done.wait (%p6458_p1), %s483_s4, 1024  }
  0x90   : > { %6173 = vsyncadd (%p6458_p1), %s483_s4, 4294966272  ;;  %s8871_s19 = sld [smem:[#allocation17_spill]]  ;;  %s491_s12 = sand.u32 1, %s6433_s28  }
  0x91   : > { %s492_s24 = scalar_lea.sflag [#allocation7], %s491_s12 }
  0x96   : > { %s493_s1 = sand.u32 1, %s8871_s19  }
  0x97   : > { %s5299_s11 = smul.u32 192, %s493_s1 }
  0x99   : > { %s6548_s15 = scalar_lea.vmem [#allocation6], %s5299_s11 }
  0x9a   : > { %6175 = dma.done.wait (%p6465_p9), %s492_s24, 4096  }
  0x9b   : > { %6177 = vsyncadd (%p6465_p9), %s492_s24, 4294963200  ;;  %s4681_s29 = sshll.u32 %s493_s1, 6  ;;  %s4682_s13 = sshll.u32 %s493_s1, 8 }
  0x9c   : > { %s6554_s2 = scalar_lea.vmem [#allocation8], %s4681_s29  ;;  %s510_s25 = scalar_lea.sflag [#allocation10], %s491_s12 }
  0x9d   : > { %s6556_s8 = scalar_lea.vmem [#allocation9], %s4682_s13 }
  0x9e   : > { %6179 = dma.done.wait (%p6465_p9), %s510_s25, 8192  }
  0x9f   : > { %6181 = vsyncadd (%p6465_p9), %s510_s25, 4294959104  ;;  %s8872_s28 = sld [smem:[#allocation22_spill]]  ;;  %s6587_s9 = scalar_lea.vmem [#allocation11], %s4682_s13 }
  0xa0   : > { %s8873_s14 = sld [smem:[#allocation21_spill]]  ;;  %s592_s3 = scalar_lea.vmem [#allocation12], %s6536_s7 }
  0xa1   : > { %s8874_s22 = sld [smem:[#allocation69_spill]] }
  0xa2   : > { %s8875_s4 = sld [smem:[#allocation75_spill]] }
  0xa3   : > { %s8876_s24 = sld [smem:[#allocation72_spill]] }
  0xa4   : > { %s8877_s21 = sld [smem:[#allocation77_spill]] }
  0xa5   : > { %p593_p7 = scmp.lt.s32.totalorder %s8872_s28, 1 }
  0xa6   : > { %p596_p10 = scmp.lt.s32.totalorder %s8873_s14, 1  ;;  %p4686_p1 = scmp.ne.s32.totalorder %s8873_s14, 0 }
  0xa7   : > { %s8988_s28 = smov (!%p593_p7, %s8872_s28), 1 }
  0xa8   : > { %s597_s27 = scalar_select %p596_p10, %s8873_s14, 1 }
  0xa9   : > { %s595_s0 = scalar_lea.vmem %s8874_s22, %s8988_s28  ;;  %612 = sbr.rel (%p4686_p1) target bundleno = 516 (0x204), region = 84 }
  0xaa   : > { %s5300_s18 = smul.u32 3, %s597_s27  ;;  %s4684_s30 = sshll.u32 %s597_s27, 2 }
  0xab   : > { %s6575_s19 = scalar_lea.vmem %s8875_s4, %s4684_s30  ;;  %s4685_s12 = sshll.u32 %s597_s27, 3 }
  0xac   : > { %s6580_s29 = scalar_lea.vmem %s8876_s24, %s5300_s18  ;;  %s6585_s17 = scalar_lea.vmem %s8877_s21, %s4685_s12 }
  0xae   : > { %v4811_v0 = vld [vmem:[%s6540_s20] sm:$0xff]   ;;  %v4842_v1 = vld [vmem:[%s6540_s20 + $0x8] sm:$0xff]   ;;  %v4843_v6 = vld [vmem:[%s6540_s20 + $0x10] sm:$0xff]  }
  0xaf   : > { %v4812_v2 = vunpack.c.l.bf16 %v4811_v0  ;;  %v4816_v3 = vunpack.c.l.bf16 %v4842_v1  ;;  %v4813_v4 = vunpack.c.h.bf16 %v4811_v0  ;;  %v4817_v5 = vunpack.c.h.bf16 %v4842_v1  ;;  %v4844_v9 = vld [vmem:[%s6540_s20 + $0x18] sm:$0xff]   ;;  %v6596_v12 = vld [vmem:[%s6540_s20 + $0x20] sm:$0xff]   ;;  %v6601_v15 = vld [vmem:[%s6540_s20 + $0x28] sm:$0xff]  }
  0xb0   : > { %v4820_v7 = vunpack.c.l.bf16 %v4843_v6  ;;  %v4821_v8 = vunpack.c.h.bf16 %v4843_v6  ;;  %v4824_v10 = vunpack.c.l.bf16 %v4844_v9  ;;  %v4825_v11 = vunpack.c.h.bf16 %v4844_v9  ;;  %v6606_v18 = vld [vmem:[%s6540_s20 + $0x30] sm:$0xff]   ;;  %v6615_v21 = vld [vmem:[%s6540_s20 + $0x38] sm:$0xff]   ;;  %s8878_s20 = sld [smem:[#allocation70_spill]] }
  0xb1   : > { %647 = vadd.xlane.f32.xlu0 %v4812_v2  ;;  %651 = vadd.xlane.f32.xlu1 %v4816_v3  ;;  %v4828_v13 = vunpack.c.l.bf16 %v6596_v12  ;;  %v4829_v14 = vunpack.c.h.bf16 %v6596_v12  ;;  %v4832_v16 = vunpack.c.l.bf16 %v6601_v15  ;;  %v4833_v17 = vunpack.c.h.bf16 %v6601_v15 }
  0xb2   : > { %v4836_v19 = vunpack.c.l.bf16 %v6606_v18  ;;  %v4837_v20 = vunpack.c.h.bf16 %v6606_v18  ;;  %v4840_v22 = vunpack.c.l.bf16 %v6615_v21  ;;  %v4841_v23 = vunpack.c.h.bf16 %v6615_v21 }
  0xb5   : > { %649 = vadd.xlane.f32.xlu0 %v4813_v4  ;;  %653 = vadd.xlane.f32.xlu1 %v4817_v5 }
  0xb6   : > { %s8879_s27 = smov %s8878_s20 }
  0xb9   : > { %655 = vadd.xlane.f32.xlu0 %v4820_v7  ;;  %657 = vadd.xlane.f32.xlu1 %v4821_v8 }
  0xbd   : > { %659 = vadd.xlane.f32.xlu0 %v4824_v10  ;;  %661 = vadd.xlane.f32.xlu1 %v4825_v11 }
  0xc1   : > { %663 = vadd.xlane.f32.xlu0 %v4828_v13  ;;  %665 = vadd.xlane.f32.xlu1 %v4829_v14 }
  0xc5   : > { %667 = vadd.xlane.f32.xlu0 %v4832_v16  ;;  %669 = vadd.xlane.f32.xlu1 %v4833_v17 }
  0xc9   : > { %671 = vadd.xlane.f32.xlu0 %v4836_v19  ;;  %673 = vadd.xlane.f32.xlu1 %v4837_v20 }
  0xcd   : > { %675 = vadd.xlane.f32.xlu0 %v4840_v22  ;;  %677 = vadd.xlane.f32.xlu1 %v4841_v23 }
 0x13a   : > { %v648_v24 = vpop.xlane.xlu0 %647  ;;  %v652_v25 = vpop.xlane.xlu1 %651 }
 0x13b   : > { %v680_v26 = vmul.f32 0.0078125, %v648_v24  ;;  %v682_v27 = vmul.f32 0.0078125, %v652_v25 }
 0x13d   : > { %v6627_v28 = vsub.f32 %v4812_v2, %v680_v26  ;;  %v6629_v29 = vsub.f32 %v4816_v3, %v682_v27 }
 0x13e   : > { %v650_v30 = vpop.xlane.xlu0 %649  ;;  %v654_v31 = vpop.xlane.xlu1 %653 }
 0x13f   : > { %v681_v32 = vmul.f32 0.0078125, %v650_v30  ;;  %v712_v33 = vmul.f32 %v6627_v28, %v6627_v28  ;;  %v683_v34 = vmul.f32 0.0078125, %v654_v31  ;;  %v714_v37 = vmul.f32 %v6629_v29, %v6629_v29 }
 0x141   : > { %v6633_v35 = vsub.f32 %v4813_v4, %v681_v32  ;;  %728 = vadd.xlane.f32.xlu0 %v712_v33  ;;  %v6635_v36 = vsub.f32 %v4817_v5, %v683_v34 }
 0x142   : > { %v656_v38 = vpop.xlane.xlu0 %655  ;;  %v658_v39 = vpop.xlane.xlu1 %657 }
 0x143   : > { %v684_v40 = vmul.f32 0.0078125, %v656_v38  ;;  %v713_v41 = vmul.f32 %v6633_v35, %v6633_v35  ;;  %v685_v42 = vmul.f32 0.0078125, %v658_v39  ;;  %v715_v45 = vmul.f32 %v6635_v36, %v6635_v36 }
 0x145   : > { %v6641_v43 = vsub.f32 %v4820_v7, %v684_v40  ;;  %732 = vadd.xlane.f32.xlu0 %v714_v37  ;;  %730 = vadd.xlane.f32.xlu1 %v713_v41  ;;  %v6643_v44 = vsub.f32 %v4821_v8, %v685_v42 }
 0x146   : > { %v660_v46 = vpop.xlane.xlu0 %659  ;;  %v662_v47 = vpop.xlane.xlu1 %661 }
 0x147   : > { %v686_v48 = vmul.f32 0.0078125, %v660_v46  ;;  %v716_v49 = vmul.f32 %v6641_v43, %v6641_v43  ;;  %v687_v50 = vmul.f32 0.0078125, %v662_v47  ;;  %v717_v53 = vmul.f32 %v6643_v44, %v6643_v44 }
 0x149   : > { %v6649_v51 = vsub.f32 %v4824_v10, %v686_v48  ;;  %734 = vadd.xlane.f32.xlu1 %v715_v45  ;;  %736 = vadd.xlane.f32.xlu0 %v716_v49  ;;  %v6651_v52 = vsub.f32 %v4825_v11, %v687_v50 }
 0x14a   : > { %v664_v54 = vpop.xlane.xlu0 %663  ;;  %v666_v55 = vpop.xlane.xlu1 %665 }
 0x14b   : > { %v688_v56 = vmul.f32 0.0078125, %v664_v54  ;;  %v718_v57 = vmul.f32 %v6649_v51, %v6649_v51  ;;  %v689_v58 = vmul.f32 0.0078125, %v666_v55  ;;  %v719_v61 = vmul.f32 %v6651_v52, %v6651_v52 }
 0x14d   : > { %v6657_v59 = vsub.f32 %v4828_v13, %v688_v56  ;;  %738 = vadd.xlane.f32.xlu1 %v717_v53  ;;  %740 = vadd.xlane.f32.xlu0 %v718_v57  ;;  %v6659_v60 = vsub.f32 %v4829_v14, %v689_v58  ;;  %v6706_v58 = vld [vmem:[%s8878_s20] ss:$0 sm:$0xff] }
 0x14e   : > { %v668_v62 = vpop.xlane.xlu0 %667  ;;  %v670_v63 = vpop.xlane.xlu1 %669 }
 0x14f   : > { %v690_v0 = vmul.f32 0.0078125, %v668_v62  ;;  %v720_v1 = vmul.f32 %v6657_v59, %v6657_v59  ;;  %v691_v2 = vmul.f32 0.0078125, %v670_v63  ;;  %v721_v5 = vmul.f32 %v6659_v60, %v6659_v60 }
 0x151   : > { %v6667_v3 = vsub.f32 %v4832_v16, %v690_v0  ;;  %742 = vadd.xlane.f32.xlu1 %v719_v61  ;;  %744 = vadd.xlane.f32.xlu0 %v720_v1  ;;  %v6671_v4 = vsub.f32 %v4833_v17, %v691_v2  ;;  %v6712_v0 = vld [vmem:[%s8879_s27 + $0x1] ss:$0 sm:$0xff] }
 0x152   : > { %v672_v6 = vpop.xlane.xlu0 %671  ;;  %v674_v7 = vpop.xlane.xlu1 %673 }
 0x153   : > { %v692_v8 = vmul.f32 0.0078125, %v672_v6  ;;  %v722_v9 = vmul.f32 %v6667_v3, %v6667_v3  ;;  %v693_v10 = vmul.f32 0.0078125, %v674_v7  ;;  %v723_v13 = vmul.f32 %v6671_v4, %v6671_v4 }
 0x155   : > { %v6679_v11 = vsub.f32 %v4836_v19, %v692_v8  ;;  %746 = vadd.xlane.f32.xlu1 %v721_v5  ;;  %748 = vadd.xlane.f32.xlu0 %v722_v9  ;;  %v6683_v12 = vsub.f32 %v4837_v20, %v693_v10 }
 0x156   : > { %v676_v14 = vpop.xlane.xlu0 %675  ;;  %v678_v15 = vpop.xlane.xlu1 %677 }
 0x157   : > { %v694_v16 = vmul.f32 0.0078125, %v676_v14  ;;  %v724_v17 = vmul.f32 %v6679_v11, %v6679_v11  ;;  %v695_v24 = vmul.f32 0.0078125, %v678_v15  ;;  %v725_v20 = vmul.f32 %v6683_v12, %v6683_v12 }
 0x159   : > { %v6691_v19 = vsub.f32 %v4840_v22, %v694_v16  ;;  %750 = vadd.xlane.f32.xlu1 %v723_v13  ;;  %752 = vadd.xlane.f32.xlu0 %v724_v17  ;;  %v6695_v18 = vsub.f32 %v4841_v23, %v695_v24 }
 0x15b   : > { %v726_v25 = vmul.f32 %v6691_v19, %v6691_v19  ;;  %v727_v26 = vmul.f32 %v6695_v18, %v6695_v18 }
 0x15d   : > { %754 = vadd.xlane.f32.xlu1 %v725_v20  ;;  %756 = vadd.xlane.f32.xlu0 %v726_v25 }
 0x161   : > { %758 = vadd.xlane.f32.xlu1 %v727_v26 }
 0x1ca   : > { %v729_v22 = vpop.xlane.xlu0 %728 }
 0x1cb   : > { %v760_v27 = vmul.f32 0.0078125, %v729_v22 }
 0x1cd   : > { %v776_v30 = vadd.f32 1e-12, %v760_v27 }
 0x1ce   : > { %v731_v31 = vpop.xlane.xlu1 %730  ;;  %v733_v32 = vpop.xlane.xlu0 %732 }
 0x1cf   : > { %5431 = vrsqrt.f32 %v776_v30  ;;  %v761_v21 = vmul.f32 0.0078125, %v731_v31  ;;  %v762_v23 = vmul.f32 0.0078125, %v733_v32 }
 0x1d1   : > { %v777_v33 = vadd.f32 1e-12, %v761_v21  ;;  %v778_v34 = vadd.f32 1e-12, %v762_v23 }
 0x1d2   : > { %v735_v37 = vpop.xlane.xlu1 %734  ;;  %v737_v38 = vpop.xlane.xlu0 %736 }
 0x1d3   : > { %5433 = vrsqrt.f32 %v777_v33  ;;  %v763_v39 = vmul.f32 0.0078125, %v735_v37  ;;  %v764_v40 = vmul.f32 0.0078125, %v737_v38 }
 0x1d4   : > { %5435 = vrsqrt.f32 %v778_v34 }
 0x1d5   : > { %v779_v41 = vadd.f32 1e-12, %v763_v39  ;;  %v780_v42 = vadd.f32 1e-12, %v764_v40 }
 0x1d6   : > { %v739_v45 = vpop.xlane.xlu1 %738  ;;  %v741_v46 = vpop.xlane.xlu0 %740 }
 0x1d7   : > { %5437 = vrsqrt.f32 %v779_v41  ;;  %v765_v47 = vmul.f32 0.0078125, %v739_v45  ;;  %v766_v48 = vmul.f32 0.0078125, %v741_v46 }
 0x1d8   : > { %5439 = vrsqrt.f32 %v780_v42 }
 0x1d9   : > { %v781_v49 = vadd.f32 1e-12, %v765_v47  ;;  %v782_v50 = vadd.f32 1e-12, %v766_v48 }
 0x1da   : > { %v743_v53 = vpop.xlane.xlu1 %742  ;;  %v745_v54 = vpop.xlane.xlu0 %744 }
 0x1db   : > { %5441 = vrsqrt.f32 %v781_v49  ;;  %v767_v55 = vmul.f32 0.0078125, %v743_v53  ;;  %v768_v56 = vmul.f32 0.0078125, %v745_v54 }
 0x1dc   : > { %v5432_v57 = vpop.eup %5431  ;;  %5443 = vrsqrt.f32 %v782_v50 }
 0x1dd   : > { %v808_v61 = vmul.f32 %v5432_v57, %v6627_v28  ;;  %v783_v62 = vadd.f32 1e-12, %v767_v55  ;;  %v784_v63 = vadd.f32 1e-12, %v768_v56 }
 0x1de   : > { %v747_v1 = vpop.xlane.xlu1 %746  ;;  %v749_v2 = vpop.xlane.xlu0 %748 }
 0x1df   : > { %v828_v5 = vmul.f32 %v6706_v58, %v808_v61  ;;  %5445 = vrsqrt.f32 %v783_v62  ;;  %v769_v6 = vmul.f32 0.0078125, %v747_v1  ;;  %v770_v7 = vmul.f32 0.0078125, %v749_v2 }
 0x1e0   : > { %v5434_v8 = vpop.eup %5433  ;;  %5447 = vrsqrt.f32 %v784_v63 }
 0x1e1   : > { %v5436_v9 = vpop.eup %5435  ;;  %v848_v10 = vadd.f32 %v6712_v0, %v828_v5  ;;  %v809_v28 = vmul.f32 %v5434_v8, %v6633_v35  ;;  %v785_v13 = vadd.f32 1e-12, %v769_v6  ;;  %v786_v14 = vadd.f32 1e-12, %v770_v7 }
 0x1e2   : > { %v810_v15 = vmul.f32 %v5436_v9, %v6629_v29  ;;  %v751_v16 = vpop.xlane.xlu1 %750  ;;  %v753_v17 = vpop.xlane.xlu0 %752 }
 0x1e3   : > { %864 = vst [vmem:[#allocation2 + $0x30] sm:$0xff] %v848_v10  ;;  %v829_v24 = vmul.f32 %v6706_v58, %v809_v28  ;;  %5449 = vrsqrt.f32 %v785_v13  ;;  %v771_v20 = vmul.f32 0.0078125, %v751_v16  ;;  %v772_v25 = vmul.f32 0.0078125, %v753_v17 }
 0x1e4   : > { %v5438_v26 = vpop.eup %5437  ;;  %v830_v22 = vmul.f32 %v6706_v58, %v810_v15  ;;  %5451 = vrsqrt.f32 %v786_v14 }
 0x1e5   : > { %v5440_v27 = vpop.eup %5439  ;;  %v849_v30 = vadd.f32 %v6712_v0, %v829_v24  ;;  %v811_v35 = vmul.f32 %v5438_v26, %v6635_v36  ;;  %v787_v31 = vadd.f32 1e-12, %v771_v20  ;;  %v788_v32 = vadd.f32 1e-12, %v772_v25 }
 0x1e6   : > { %v850_v29 = vadd.f32 %v6712_v0, %v830_v22  ;;  %v812_v21 = vmul.f32 %v5440_v27, %v6641_v43  ;;  %v755_v23 = vpop.xlane.xlu1 %754  ;;  %v757_v33 = vpop.xlane.xlu0 %756 }
 0x1e7   : > { %865 = vst [vmem:[#allocation2] sm:$0xff] %v849_v30  ;;  %v831_v34 = vmul.f32 %v6706_v58, %v811_v35  ;;  %5453 = vrsqrt.f32 %v787_v31  ;;  %v773_v37 = vmul.f32 0.0078125, %v755_v23  ;;  %v774_v38 = vmul.f32 0.0078125, %v757_v33 }
 0x1e8   : > { %v5442_v39 = vpop.eup %5441  ;;  %866 = vst [vmem:[#allocation2 + $0x58] sm:$0xff] %v850_v29  ;;  %v832_v40 = vmul.f32 %v6706_v58, %v812_v21  ;;  %5455 = vrsqrt.f32 %v788_v32 }
 0x1e9   : > { %v5444_v36 = vpop.eup %5443  ;;  %v851_v41 = vadd.f32 %v6712_v0, %v831_v34  ;;  %v813_v42 = vmul.f32 %v5442_v39, %v6643_v44  ;;  %v789_v45 = vadd.f32 1e-12, %v773_v37  ;;  %v790_v43 = vadd.f32 1e-12, %v774_v38 }
 0x1ea   : > { %v852_v46 = vadd.f32 %v6712_v0, %v832_v40  ;;  %v814_v47 = vmul.f32 %v5444_v36, %v6649_v51  ;;  %v759_v48 = vpop.xlane.xlu1 %758 }
 0x1eb   : > { %867 = vst [vmem:[#allocation2 + $0x18] sm:$0xff] %v851_v41  ;;  %v833_v49 = vmul.f32 %v6706_v58, %v813_v42  ;;  %5457 = vrsqrt.f32 %v789_v45  ;;  %v775_v50 = vmul.f32 0.0078125, %v759_v48 }
 0x1ec   : > { %v5446_v53 = vpop.eup %5445  ;;  %868 = vst [vmem:[#allocation2 + $0x50] sm:$0xff] %v852_v46  ;;  %v834_v54 = vmul.f32 %v6706_v58, %v814_v47  ;;  %5459 = vrsqrt.f32 %v790_v43 }
 0x1ed   : > { %v5448_v55 = vpop.eup %5447  ;;  %v853_v44 = vadd.f32 %v6712_v0, %v833_v49  ;;  %v815_v56 = vmul.f32 %v5446_v53, %v6651_v52  ;;  %v791_v57 = vadd.f32 1e-12, %v775_v50 }
 0x1ee   : > { %v854_v61 = vadd.f32 %v6712_v0, %v834_v54  ;;  %v816_v51 = vmul.f32 %v5448_v55, %v6657_v59 }
 0x1ef   : > { %869 = vst [vmem:[#allocation2 + $0x68] sm:$0xff] %v853_v44  ;;  %v835_v62 = vmul.f32 %v6706_v58, %v815_v56  ;;  %5461 = vrsqrt.f32 %v791_v57 }
 0x1f0   : > { %v5450_v63 = vpop.eup %5449  ;;  %870 = vst [vmem:[#allocation2 + $0x8] sm:$0xff] %v854_v61  ;;  %v836_v1 = vmul.f32 %v6706_v58, %v816_v51 }
 0x1f1   : > { %v5452_v2 = vpop.eup %5451  ;;  %v855_v5 = vadd.f32 %v6712_v0, %v835_v62  ;;  %v817_v6 = vmul.f32 %v5450_v63, %v6659_v60 }
 0x1f2   : > { %v856_v52 = vadd.f32 %v6712_v0, %v836_v1  ;;  %v818_v7 = vmul.f32 %v5452_v2, %v6667_v3 }
 0x1f3   : > { %871 = vst [vmem:[#allocation2 + $0x48] sm:$0xff] %v855_v5  ;;  %v837_v59 = vmul.f32 %v6706_v58, %v817_v6 }
 0x1f4   : > { %v5454_v8 = vpop.eup %5453  ;;  %872 = vst [vmem:[#allocation2 + $0x40] sm:$0xff] %v856_v52  ;;  %v838_v9 = vmul.f32 %v6706_v58, %v818_v7 }
 0x1f5   : > { %v5456_v10 = vpop.eup %5455  ;;  %v857_v28 = vadd.f32 %v6712_v0, %v837_v59  ;;  %v819_v13 = vmul.f32 %v5454_v8, %v6671_v4 }
 0x1f6   : > { %v858_v14 = vadd.f32 %v6712_v0, %v838_v9  ;;  %v820_v60 = vmul.f32 %v5456_v10, %v6679_v11 }
 0x1f7   : > { %873 = vst [vmem:[#allocation2 + $0x20] sm:$0xff] %v857_v28  ;;  %v839_v15 = vmul.f32 %v6706_v58, %v819_v13 }
 0x1f8   : > { %v5458_v3 = vpop.eup %5457  ;;  %874 = vst [vmem:[#allocation2 + $0x10] sm:$0xff] %v858_v14  ;;  %v840_v16 = vmul.f32 %v6706_v58, %v820_v60 }
 0x1f9   : > { %v5460_v17 = vpop.eup %5459  ;;  %v859_v24 = vadd.f32 %v6712_v0, %v839_v15  ;;  %v821_v20 = vmul.f32 %v5458_v3, %v6683_v12 }
 0x1fa   : > { %v860_v25 = vadd.f32 %v6712_v0, %v840_v16  ;;  %v822_v4 = vmul.f32 %v5460_v17, %v6691_v19 }
 0x1fb   : > { %875 = vst [vmem:[#allocation2 + $0x38] sm:$0xff] %v859_v24  ;;  %v841_v26 = vmul.f32 %v6706_v58, %v821_v20 }
 0x1fc   : > { %v5462_v11 = vpop.eup %5461  ;;  %876 = vst [vmem:[#allocation2 + $0x60] sm:$0xff] %v860_v25  ;;  %v842_v22 = vmul.f32 %v6706_v58, %v822_v4 }
 0x1fd   : > { %v861_v27 = vadd.f32 %v6712_v0, %v841_v26  ;;  %v823_v30 = vmul.f32 %v5462_v11, %v6695_v18 }
 0x1fe   : > { %v862_v35 = vadd.f32 %v6712_v0, %v842_v22 }
 0x1ff   : > { %877 = vst [vmem:[#allocation2 + $0x70] sm:$0xff] %v861_v27  ;;  %v843_v12 = vmul.f32 %v6706_v58, %v823_v30 }
 0x200   : > { %878 = vst [vmem:[#allocation2 + $0x78] sm:$0xff] %v862_v35 }
 0x201   : > { %v863_v31 = vadd.f32 %v6712_v0, %v843_v12 }
 0x203   : > { %879 = vst [vmem:[#allocation2 + $0x28] sm:$0xff] %v863_v31 }
 0x204 PF: > { %v5503_v19 = vld [vmem:[%s6548_s15 + $0xac] ss:$12 sps:$4 sm:$0xff]   ;;  %v5505_v18 = vld [vmem:[%s6548_s15 + $0xa8] ss:$12 sps:$4 sm:$0xff]   ;;  %v6241_v32 = vmov 0   ;;  %v881_v37 = vld [vmem:[#allocation2] sm:$0xff]  ;;  %v940_v3 = vlaneseq }
 0x205   : > { %1115 = vmatprep.mubr.bf16.mxu0 %v6241_v32  ;;  %1083 = vmatprep.subr.bf16.mxu0 %v5503_v19  ;;  %v5506_v58 = vld [vmem:[%s6548_s15 + $0x94] ss:$12 sps:$4 sm:$0xff]   ;;  %v5508_v0 = vld [vmem:[%s6548_s15 + $0x90] ss:$12 sps:$4 sm:$0xff]   ;;  %v5511_v21 = vld [vmem:[%s6548_s15 + $0x78] ss:$12 sps:$4 sm:$0xff]  }
 0x206   : > { %1084 = vmatpush1.bf16.msra.mxu0 %v5505_v18  ;;  %v5509_v29 = vld [vmem:[%s6548_s15 + $0x7c] ss:$12 sps:$4 sm:$0xff]   ;;  %v5512_v23 = vld [vmem:[%s6548_s15 + $0x64] ss:$12 sps:$4 sm:$0xff]   ;;  %v5514_v34 = vld [vmem:[%s6548_s15 + $0x60] ss:$12 sps:$4 sm:$0xff]  }
 0x207   : > { %1085 = vmatprep.subr.bf16.mxu0 %v5506_v58  ;;  %v880_v33 = vld [vmem:[#allocation2 + $0x30] sm:$0xff]  ;;  %v5515_v38 = vld [vmem:[%s6548_s15 + $0x4c] ss:$12 sps:$4 sm:$0xff]   ;;  %v5521_v43 = vld [vmem:[%s6548_s15 + $0x1c] ss:$12 sps:$4 sm:$0xff]   ;;  %v6793_v16 = vshrl.u32 %v940_v3, 7 }
 0x208   : > { %v898_v39 = vpack.c.bf16 %v881_v37, %v880_v33  ;;  %v5517_v40 = vld [vmem:[%s6548_s15 + $0x48] ss:$12 sps:$4 sm:$0xff]   ;;  %v5527_v41 = vld [vmem:[%s6548_s15 + $0xb0] ss:$12 sps:$4 sm:$0xff]   ;;  %v5528_v42 = vld [vmem:[%s6548_s15 + $0x98] ss:$12 sps:$4 sm:$0xff]  }
 0x209   : > { %v5518_v36 = vld [vmem:[%s6548_s15 + $0x34] ss:$12 sps:$4 sm:$0xff]   ;;  %v5520_v45 = vld [vmem:[%s6548_s15 + $0x30] ss:$12 sps:$4 sm:$0xff]   ;;  %5073 = vmatprep.subr.bf16.mxu1 %v5527_v41  ;;  %v5523_v47 = vld [vmem:[%s6548_s15 + $0x18] ss:$12 sps:$4 sm:$0xff]  }
 0x20a   : > { %1086 = vmatpush1.bf16.msra.mxu0 %v5508_v0  ;;  %5089 = vmatprep.mubr.bf16.mxu1 %v898_v39  ;;  %v5529_v46 = vld [vmem:[%s6548_s15 + $0x80] ss:$12 sps:$4 sm:$0xff]   ;;  %v5524_v48 = vld [vmem:[%s6548_s15 + $0x4] ss:$12 sps:$4 sm:$0xff]   ;;  %v5530_v49 = vld [vmem:[%s6548_s15 + $0x68] ss:$12 sps:$4 sm:$0xff]  }
 0x20b   : > { %1087 = vmatprep.subr.bf16.mxu0 %v5509_v29  ;;  %5074 = vmatpush3.bf16.msra.mxu1 %v5527_v41  ;;  %v5526_v50 = vld [vmem:[%s6548_s15] ss:$12 sps:$4 sm:$0xff]   ;;  %v5531_v53 = vld [vmem:[%s6548_s15 + $0x50] ss:$12 sps:$4 sm:$0xff]   ;;  %v5532_v54 = vld [vmem:[%s6548_s15 + $0x38] ss:$12 sps:$4 sm:$0xff]  }
 0x20c   : > { %5075 = vmatprep.subr.bf16.mxu1 %v5528_v42  ;;  %v882_v55 = vld [vmem:[#allocation2 + $0x58] sm:$0xff]  ;;  %v5533_v56 = vld [vmem:[%s6548_s15 + $0x20] ss:$12 sps:$4 sm:$0xff]   ;;  %v5534_v61 = vld [vmem:[%s6548_s15 + $0x8] ss:$12 sps:$4 sm:$0xff]   ;;  %8880 = vst [vmem:[#allocation30_spill] sm:$0xff] %v6793_v16 }
 0x20d   : > { %v883_v44 = vld [vmem:[#allocation2 + $0x18] sm:$0xff]  ;;  %v884_v51 = vld [vmem:[#allocation2 + $0x50] sm:$0xff]  ;;  %v885_v62 = vld [vmem:[#allocation2 + $0x68] sm:$0xff]  ;;  %v6796_v17 = vsub.s32 0, %v6793_v16  ;;  %vm1323_vm0 = vcmask 523264   ;;  %s6242_s15 = smov 64  }
 0x20e   : > { %1088 = vmatpush1.bf16.msra.mxu0 %v5511_v21  ;;  %v899_v57 = vpack.c.bf16 %v883_v44, %v882_v55  ;;  %v900_v63 = vpack.c.bf16 %v885_v62, %v884_v51  ;;  %v886_v1 = vld [vmem:[#allocation2 + $0x8] sm:$0xff]  ;;  %v888_v5 = vld [vmem:[#allocation2 + $0x40] sm:$0xff]  ;;  %v890_v59 = vld [vmem:[#allocation2 + $0x10] sm:$0xff]  ;;  %v6855_v62 = vsub.s32 2, %v6793_v16 }
 0x20f   : > { %1089 = vmatprep.subr.bf16.mxu0 %v5512_v23  ;;  %5076 = vmatpush3.bf16.msra.mxu1 %v5528_v42  ;;  %v887_v2 = vld [vmem:[#allocation2 + $0x48] sm:$0xff]  ;;  %v889_v6 = vld [vmem:[#allocation2 + $0x20] sm:$0xff]  ;;  %v891_v8 = vld [vmem:[#allocation2 + $0x38] sm:$0xff] }
 0x210   : > { %5077 = vmatprep.subr.bf16.mxu1 %v5529_v46  ;;  %v901_v52 = vpack.c.bf16 %v887_v2, %v886_v1  ;;  %v902_v7 = vpack.c.bf16 %v889_v6, %v888_v5  ;;  %v892_v9 = vld [vmem:[#allocation2 + $0x60] sm:$0xff]  ;;  %v893_v10 = vld [vmem:[#allocation2 + $0x70] sm:$0xff]  ;;  %v903_v28 = vpack.c.bf16 %v891_v8, %v890_v59  ;;  %v894_v14 = vld [vmem:[#allocation2 + $0x78] sm:$0xff] }
 0x211   : > { %v904_v13 = vpack.c.bf16 %v893_v10, %v892_v9  ;;  %v895_v60 = vld [vmem:[#allocation2 + $0x28] sm:$0xff]  ;;  %v6799_v24 = vld [vmem:[%s6580_s29] sm:$0x7] }
 0x212   : > { %1090 = vmatpush1.bf16.msra.mxu0 %v5514_v34  ;;  %v905_v15 = vpack.c.bf16 %v895_v60, %v894_v14  ;;  %v6803_v25 = vrot.slane %v6799_v24, %v6796_v17 }
 0x213   : > { %1091 = vmatprep.subr.bf16.mxu0 %v5515_v38  ;;  %5078 = vmatpush3.bf16.msra.mxu1 %v5529_v46 }
 0x214   : > { %5079 = vmatprep.subr.bf16.mxu1 %v5530_v49 }
 0x216   : > { %1092 = vmatpush1.bf16.msra.mxu0 %v5517_v40 }
 0x217   : > { %1093 = vmatprep.subr.bf16.mxu0 %v5518_v36  ;;  %5080 = vmatpush3.bf16.msra.mxu1 %v5530_v49 }
 0x218   : > { %5081 = vmatprep.subr.bf16.mxu1 %v5531_v53 }
 0x21a   : > { %1094 = vmatpush1.bf16.msra.mxu0 %v5520_v45 }
 0x21b   : > { %1095 = vmatprep.subr.bf16.mxu0 %v5521_v43  ;;  %5082 = vmatpush3.bf16.msra.mxu1 %v5531_v53 }
 0x21c   : > { %5083 = vmatprep.subr.bf16.mxu1 %v5532_v54 }
 0x21e   : > { %1096 = vmatpush1.bf16.msra.mxu0 %v5523_v47 }
 0x21f   : > { %1097 = vmatprep.subr.bf16.mxu0 %v5524_v48  ;;  %5084 = vmatpush3.bf16.msra.mxu1 %v5532_v54 }
 0x220   : > { %5085 = vmatprep.subr.bf16.mxu1 %v5533_v56 }
 0x222   : > { %1098 = vmatpush1.bf16.msra.mxu0 %v5526_v50 }
 0x223   : > { %5086 = vmatpush3.bf16.msra.mxu1 %v5533_v56 }
 0x224   : > { %5087 = vmatprep.subr.bf16.mxu1 %v5534_v61 }
 0x225   : > { %1116 = vmatmul.mubr.bf16.vlgmr.msra.gmra.mxu0 %v898_v39 }
 0x226   : > { %1125 = vmatprep.mubr.bf16.mxu0 %v6241_v32 }
 0x227   : > { %5088 = vmatpush3.bf16.msra.mxu1 %v5534_v61 }
 0x22a   : > { %5090 = vmatmul.mubr.bf16.vlgmr.msra.gmra.mxu1 %v899_v57 }
 0x22b   : > { %5093 = vmatprep.mubr.bf16.mxu1 %v900_v63 }
 0x22d   : > { %1126 = vmatmul.mubr.bf16.gmra.mxu0 %v899_v57 }
 0x22e   : > { %1135 = vmatprep.mubr.bf16.mxu0 %v6241_v32 }
 0x232   : > { %5094 = vmatmul.mubr.bf16.gmra.mxu1 %v901_v52 }
 0x233   : > { %5097 = vmatprep.mubr.bf16.mxu1 %v902_v7 }
 0x235   : > { %1136 = vmatmul.mubr.bf16.gmra.mxu0 %v900_v63 }
 0x236   : > { %1145 = vmatprep.mubr.bf16.mxu0 %v6241_v32 }
 0x23a   : > { %5098 = vmatmul.mubr.bf16.gmra.mxu1 %v903_v28 }
 0x23b   : > { %5101 = vmatprep.mubr.bf16.mxu1 %v904_v13 }
 0x23d   : > { %1146 = vmatmul.mubr.bf16.gmra.mxu0 %v901_v52 }
 0x23e   : > { %1155 = vmatprep.mubr.bf16.mxu0 %v6241_v32 }
 0x242   : > { %5102 = vmatmul.mubr.bf16.gmra.mxu1 %v905_v15 }
 0x245   : > { %1156 = vmatmul.mubr.bf16.gmra.mxu0 %v902_v7  ;;  %v6864_v7 = vrot.slane %v6799_v24, %v6855_v62 }
 0x246   : > { %1165 = vmatprep.mubr.bf16.mxu0 %v6241_v32 }
 0x24d   : > { %1166 = vmatmul.mubr.bf16.gmra.mxu0 %v903_v28 }
 0x24e   : > { %1175 = vmatprep.mubr.bf16.mxu0 %v6241_v32 }
 0x255   : > { %1176 = vmatmul.mubr.bf16.gmra.mxu0 %v904_v13 }
 0x256   : > { %1185 = vmatprep.mubr.bf16.mxu0 %v6241_v32 }
 0x25d   : > { %1186 = vmatmul.mubr.bf16.gmra.mxu0 %v905_v15 }
 0x2e5   : > { %v1117_v20 = vpop.f32.mrf.mxu0 }
 0x2e6   : > { %v1118_v11 = vadd.f32 %v1117_v20, %v6803_v25 }
 0x2e7   : > { %v6805_v4 = vpop.f32.mrf.mxu0 }
 0x2e9   : > { %v1121_v26 = vpop.f32.mrf.mxu0 }
 0x2ea   : > { %v1122_v22 = vadd.f32 %v1121_v26, %v6803_v25  ;;  %v6823_v21 = vpop.f32.mrf.mxu1 }
 0x2eb   : > { %v6809_v27 = vpop.f32.mrf.mxu0 }
 0x2ec   : > { %v6811_v30 = vpack.c.bf16 %v1122_v22, %v1118_v11  ;;  %v6828_v34 = vpop.f32.mrf.mxu1 }
 0x2ed   : > { %v1127_v35 = vpop.f32.mrf.mxu0 }
 0x2ee   : > { %v1128_v12 = vadd.f32 %v1127_v35, %v6803_v25  ;;  %5121 = vmatprep.mubr.msk.bf16.mxu0 %vm1323_vm0, %v6811_v30  ;;  %v6830_v38 = vpop.f32.mrf.mxu1 }
 0x2ef   : > { %v6816_v31 = vpop.f32.mrf.mxu0 }
 0x2f0   : > { %v6835_v36 = vpop.f32.mrf.mxu1 }
 0x2f1   : > { %v1131_v19 = vpop.f32.mrf.mxu0 }
 0x2f2   : > { %v1132_v18 = vadd.f32 %v1131_v19, %v6803_v25  ;;  %v5095_v45 = vpop.f32.mrf.mxu1 }
 0x2f3   : > { %v6819_v58 = vpop.f32.mrf.mxu0 }
 0x2f4   : > { %v6821_v0 = vpack.c.bf16 %v1132_v18, %v1128_v12  ;;  %v6842_v47 = vpop.f32.mrf.mxu1 }
 0x2f5   : > { %v1137_v29 = vpop.f32.mrf.mxu0 }
 0x2f6   : > { %v1138_v23 = vadd.f32 %v1137_v29, %v6803_v25  ;;  %v5096_v49 = vpop.f32.mrf.mxu1 }
 0x2f7   : > { %v6826_v33 = vpop.f32.mrf.mxu0 }
 0x2f8   : > { %v6847_v54 = vpop.f32.mrf.mxu1 }
 0x2f9   : > { %v1141_v37 = vpop.f32.mrf.mxu0 }
 0x2fa   : > { %v1142_v39 = vadd.f32 %v1141_v37, %v6803_v25  ;;  %v5099_v56 = vpop.f32.mrf.mxu1 }
 0x2fb   : > { %v6833_v40 = vpop.f32.mrf.mxu0  ;;  %v1271_v11 = vadd.f32 %v5099_v56, %v6864_v7 }
 0x2fc   : > { %v6837_v41 = vpack.c.bf16 %v1142_v39, %v1138_v23  ;;  %v1262_v51 = vpop.f32.mrf.mxu1  ;;  %v6883_v23 = vsub.s32 1, %v6793_v16 }
 0x2fd   : > { %v1147_v42 = vpop.f32.mrf.mxu0 }
 0x2fe   : > { %v1148_v43 = vadd.f32 %v1147_v42, %v6803_v25  ;;  %v5100_v1 = vpop.f32.mrf.mxu1  ;;  %v6897_v56 = vrot.slane %v6799_v24, %v6883_v23 }
 0x2ff   : > { %v6840_v46 = vpop.f32.mrf.mxu0  ;;  %v1274_v12 = vadd.f32 %v5100_v1, %v6864_v7  ;;  %v1255_v1 = vadd.f32 %v5095_v45, %v6864_v7 }
 0x300   : > { %v1265_v6 = vpop.f32.mrf.mxu1 }
 0x301   : > { %v1151_v48 = vpop.f32.mrf.mxu0 }
 0x302   : > { %v1152_v50 = vadd.f32 %v1151_v48, %v6803_v25  ;;  %v5103_v8 = vpop.f32.mrf.mxu1  ;;  %v6891_v48 = vpack.c.bf16 %v1274_v12, %v1271_v11 }
 0x303   : > { %v6845_v53 = vpop.f32.mrf.mxu0  ;;  %v1287_v13 = vadd.f32 %v5103_v8, %v6864_v7 }
 0x304   : > { %v6849_v55 = vpack.c.bf16 %v1152_v50, %v1148_v43  ;;  %v1278_v28 = vpop.f32.mrf.mxu1  ;;  %v1263_v43 = vadd.f32 %v1262_v51, %v6864_v7  ;;  %v1266_v50 = vadd.f32 %v1265_v6, %v6864_v7 }
 0x305   : > { %v1157_v44 = vpop.f32.mrf.mxu0  ;;  %v1279_v3 = vadd.f32 %v1278_v28, %v6864_v7 }
 0x306   : > { %v1158_v57 = vadd.f32 %v1157_v44, %v6803_v25  ;;  %v5104_v60 = vpop.f32.mrf.mxu1  ;;  %v6907_v8 = vpack.c.bf16 %v1266_v50, %v1263_v43 }
 0x307   : > { %v6852_v61 = vpop.f32.mrf.mxu0  ;;  %v1290_v20 = vadd.f32 %v5104_v60, %v6864_v7  ;;  %v1250_v60 = vadd.f32 %v6847_v54, %v6864_v7 }
 0x308   : > { %v1281_v22 = vpop.f32.mrf.mxu1 }
 0x309   : > { %v1161_v63 = vpop.f32.mrf.mxu0  ;;  %v6879_v19 = vpack.c.bf16 %v1290_v20, %v1287_v13  ;;  %v1282_v18 = vadd.f32 %v1281_v22, %v6864_v7  ;;  %v1239_v20 = vadd.f32 %v6823_v21, %v6864_v7 }
 0x30a   : > { %v1162_v2 = vadd.f32 %v1161_v63, %v6803_v25 }
 0x30b   : > { %v6858_v5 = vpop.f32.mrf.mxu0  ;;  %v6886_v39 = vpack.c.bf16 %v1282_v18, %v1279_v3  ;;  %5137 = vmatprep.subr.bf16.mxu1 %v6879_v19  ;;  %v1231_v18 = vadd.f32 %v6828_v34, %v6864_v7 }
 0x30c   : > { %v6860_v52 = vpack.c.bf16 %v1162_v2, %v1158_v57  ;;  %5138 = vmatpush3.bf16.msra.mxu1 %v6879_v19  ;;  %v1258_v2 = vadd.f32 %v5096_v49, %v6864_v7 }
 0x30d   : > { %v1167_v59 = vpop.f32.mrf.mxu0  ;;  %5139 = vmatprep.subr.bf16.mxu1 %v6886_v39 }
 0x30e   : > { %v1168_v9 = vadd.f32 %v1167_v59, %v6803_v25  ;;  %v6913_v45 = vpack.c.bf16 %v1258_v2, %v1255_v1  ;;  %v1140_v1 = vadd.f32 %v6826_v33, %v6897_v56 }
 0x30f   : > { %v6867_v10 = vpop.f32.mrf.mxu0 }
 0x310   : > { %5140 = vmatpush3.bf16.msra.mxu1 %v6886_v39  ;;  %v1170_v34 = vadd.f32 %v6867_v10, %v6897_v56  ;;  %v1160_v10 = vadd.f32 %v6852_v61, %v6897_v56 }
 0x311   : > { %v1171_v14 = vpop.f32.mrf.mxu0  ;;  %5141 = vmatprep.subr.bf16.mxu1 %v6891_v48 }
 0x312   : > { %v1172_v15 = vadd.f32 %v1171_v14, %v6803_v25  ;;  %v1247_v14 = vadd.f32 %v6842_v47, %v6864_v7  ;;  %v1242_v47 = vadd.f32 %v6830_v38, %v6864_v7  ;;  %v1234_v38 = vadd.f32 %v6835_v36, %v6864_v7 }
 0x313   : > { %v6873_v26 = vpop.f32.mrf.mxu0 }
 0x314   : > { %v6876_v35 = vpack.c.bf16 %v1172_v15, %v1168_v9  ;;  %5142 = vmatpush3.bf16.msra.mxu1 %v6891_v48  ;;  %v6931_v54 = vpack.c.bf16 %v1250_v60, %v1247_v14 }
 0x315   : > { %v1177_v29 = vpop.f32.mrf.mxu0  ;;  %5143 = vmatprep.subr.bf16.mxu1 %v6907_v8 }
 0x316   : > { %v1178_v37 = vadd.f32 %v1177_v29, %v6803_v25  ;;  %v6939_v29 = vpack.c.bf16 %v1242_v47, %v1239_v20 }
 0x317   : > { %v1179_v42 = vpop.f32.mrf.mxu0 }
 0x318   : > { %v1180_v51 = vadd.f32 %v1179_v42, %v6897_v56  ;;  %5144 = vmatpush3.bf16.msra.mxu1 %v6907_v8  ;;  %v6948_v42 = vpack.c.bf16 %v1234_v38, %v1231_v18 }
 0x319   : > { %v1181_v44 = vpop.f32.mrf.mxu0  ;;  %5145 = vmatprep.subr.bf16.mxu1 %v6913_v45 }
 0x31a   : > { %v1182_v57 = vadd.f32 %v1181_v44, %v6803_v25  ;;  %v1154_v44 = vadd.f32 %v6845_v53, %v6897_v56  ;;  %v1134_v53 = vadd.f32 %v6819_v58, %v6897_v56 }
 0x31b   : > { %v1183_v63 = vpop.f32.mrf.mxu0 }
 0x31c   : > { %v6904_v59 = vpack.c.bf16 %v1182_v57, %v1178_v37  ;;  %v1184_v6 = vadd.f32 %v1183_v63, %v6897_v56  ;;  %5146 = vmatpush3.bf16.msra.mxu1 %v6913_v45  ;;  %v1174_v37 = vadd.f32 %v6873_v26, %v6897_v56  ;;  %v1164_v26 = vadd.f32 %v6858_v5, %v6897_v56 }
 0x31d   : > { %v1187_v24 = vpop.f32.mrf.mxu0  ;;  %5147 = vmatprep.subr.bf16.mxu1 %v6931_v54  ;;  %v1150_v57 = vadd.f32 %v6840_v46, %v6897_v56  ;;  %v1144_v5 = vadd.f32 %v6833_v40, %v6897_v56  ;;  %v1124_v40 = vadd.f32 %v6809_v27, %v6897_v56  ;;  %v7036_v27 = vld [vmem:[%s595_s0] ss:$0 sm:$0xff] }
 0x31e   : > { %v1307_v9 = vpack.c.bf16 %v1184_v6, %v1180_v51  ;;  %v1188_v28 = vadd.f32 %v1187_v24, %v6803_v25  ;;  %v6954_v36 = vpack.c.bf16 %v1174_v37, %v1170_v34  ;;  %v6965_v43 = vpack.c.bf16 %v1164_v26, %v1160_v10 }
 0x31f   : > { %v1189_v13 = vpop.f32.mrf.mxu0  ;;  %v6975_v63 = vpack.c.bf16 %v1154_v44, %v1150_v57  ;;  %v6985_v2 = vpack.c.bf16 %v1144_v5, %v1140_v1  ;;  %v1130_v51 = vadd.f32 %v6816_v31, %v6897_v56  ;;  %v1120_v24 = vadd.f32 %v6805_v4, %v6897_v56 }
 0x320   : > { %1762 = vrot.lane.b32.xlu1 %v1307_v9, %s6242_s15  ;;  %v1190_v11 = vadd.f32 %v1189_v13, %v6897_v56  ;;  %5148 = vmatpush3.bf16.msra.mxu1 %v6931_v54  ;;  %v1367_v7 = vsel %vm1323_vm0, %v1307_v9, 0  ;;  %v1364_v50 = vsel %vm1323_vm0, %v6954_v36, 0  ;;  %v1361_v61 = vsel %vm1323_vm0, %v6965_v43, 0 }
 0x321   : > { %v1191_v49 = vpop.f32.mrf.mxu0  ;;  %5149 = vmatprep.subr.bf16.mxu1 %v6939_v29  ;;  %v1358_v46 = vsel %vm1323_vm0, %v6975_v63, 0  ;;  %v6995_v6 = vpack.c.bf16 %v1134_v53, %v1130_v51  ;;  %v1355_v33 = vsel %vm1323_vm0, %v6985_v2, 0  ;;  %v7005_v58 = vpack.c.bf16 %v1124_v40, %v1120_v24 }
 0x322   : > { %v1192_v15 = vadd.f32 %v1191_v49, %v6803_v25 }
 0x323   : > { %v1193_v3 = vpop.f32.mrf.mxu0  ;;  %v1352_v31 = vsel %vm1323_vm0, %v6995_v6, 0 }
 0x324   : > { %v6925_v22 = vpack.c.bf16 %v1192_v15, %v1188_v28  ;;  %v1194_v12 = vadd.f32 %v1193_v3, %v6897_v56  ;;  %5150 = vmatpush3.bf16.msra.mxu1 %v6939_v29 }
 0x325   : > { %5151 = vmatprep.subr.bf16.mxu1 %v6948_v42 }
 0x326   : > { %v1308_v25 = vpack.c.bf16 %v1194_v12, %v1190_v11 }
 0x328   : > { %1764 = vrot.lane.b32.xlu0 %v1308_v25, %s6242_s15  ;;  %5281 = vmatprep.subr.msk.bf16.mxu0 %vm1323_vm0, %v1308_v25  ;;  %v1370_v21 = vsel %vm1323_vm0, %v1308_v25, 0 }
 0x329   : > { %5106 = vmatpush3.bf16.xpose.msra.mxu0 %v1370_v21  ;;  %5152 = vmatpush3.bf16.msra.mxu1 %v6948_v42 }
 0x32a   : > { %5282 = vmatprep.subr.msk.bf16.mxu0 %vm1323_vm0, %v1307_v9  ;;  %v1349_v9 = vsel %vm1323_vm0, %v7005_v58, 0 }
 0x331   : > { %5108 = vmatpush3.bf16.xpose.msra.mxu0 %v1367_v7 }
 0x332   : > { %5283 = vmatprep.subr.msk.bf16.mxu0 %vm1323_vm0, %v6954_v36 }
 0x339   : > { %5110 = vmatpush3.bf16.xpose.msra.mxu0 %v1364_v50 }
 0x33a   : > { %5284 = vmatprep.subr.msk.bf16.mxu0 %vm1323_vm0, %v6965_v43 }
 0x341   : > { %5112 = vmatpush3.bf16.xpose.msra.mxu0 %v1361_v61 }
 0x342   : > { %5285 = vmatprep.subr.msk.bf16.mxu0 %vm1323_vm0, %v6975_v63 }
 0x349   : > { %5114 = vmatpush3.bf16.xpose.msra.mxu0 %v1358_v46 }
 0x34a   : > { %5286 = vmatprep.subr.msk.bf16.mxu0 %vm1323_vm0, %v6985_v2 }
 0x351   : > { %5116 = vmatpush3.bf16.xpose.msra.mxu0 %v1355_v33 }
 0x352   : > { %5287 = vmatprep.subr.msk.bf16.mxu0 %vm1323_vm0, %v6995_v6 }
 0x359   : > { %5118 = vmatpush3.bf16.xpose.msra.mxu0 %v1352_v31 }
 0x35a   : > { %5288 = vmatprep.subr.msk.bf16.mxu0 %vm1323_vm0, %v7005_v58 }
 0x361   : > { %5120 = vmatpush3.bf16.xpose.msra.mxu0 %v1349_v9 }
 0x368   : > { %5122 = vmatmul.mubr.msk.bf16.vlgmr.msra.gmra.mxu0 %vm1323_vm0, %v6821_v0 }
 0x369   : > { %5125 = vmatprep.mubr.msk.bf16.mxu0 %vm1323_vm0, %v6837_v41 }
 0x370   : > { %5126 = vmatmul.mubr.msk.bf16.gmra.mxu0 %vm1323_vm0, %v6849_v55 }
 0x371   : > { %5129 = vmatprep.mubr.msk.bf16.mxu0 %vm1323_vm0, %v6860_v52 }
 0x378   : > { %5130 = vmatmul.mubr.msk.bf16.gmra.mxu0 %vm1323_vm0, %v6876_v35 }
 0x379   : > { %5133 = vmatprep.mubr.msk.bf16.mxu0 %vm1323_vm0, %v6904_v59 }
 0x380   : > { %5134 = vmatmul.mubr.msk.bf16.gmra.mxu0 %vm1323_vm0, %v6925_v22 }
 0x392   : > { %v7094_v24 = vpop.permute.xlu1 %1762 }
 0x39a   : > { %v7027_v4 = vpop.permute.xlu0 %1764 }
 0x39b   : > { %5289 = vmatprep.subr.msk.bf16.mxu1 %vm1323_vm0, %v7027_v4 }
 0x428   : > { %v5123_v56 = vpop.f32.mrf.mxu0 }
 0x429   : > { %v1415_v28 = vadd.f32 %v5123_v56, %v7036_v27 }
 0x42a   : > { %v1406_v13 = vpop.f32.mrf.mxu0 }
 0x42b   : > { %v1407_v49 = vadd.f32 %v7036_v27, %v1406_v13  ;;  %1473 = vmax.xlane.f32.xlu1 %v1415_v28 }
 0x42c   : > { %v5124_v14 = vpop.f32.mrf.mxu0 }
 0x42d   : > { %v1418_v60 = vadd.f32 %v5124_v14, %v7036_v27  ;;  %1469 = vmax.xlane.f32.xlu0 %v1407_v49 }
 0x42e   : > { %v1409_v15 = vpop.f32.mrf.mxu0 }
 0x42f   : > { %v1410_v3 = vadd.f32 %v7036_v27, %v1409_v15  ;;  %1475 = vmax.xlane.f32.xlu1 %v1418_v60 }
 0x430   : > { %v5127_v20 = vpop.f32.mrf.mxu0 }
 0x431   : > { %1471 = vmax.xlane.f32.xlu0 %v1410_v3  ;;  %v7043_v12 = vadd.f32 %v5127_v20, %v7036_v27 }
 0x432   : > { %v1422_v11 = vpop.f32.mrf.mxu0 }
 0x433   : > { %v7050_v18 = vadd.f32 %v7036_v27, %v1422_v11 }
 0x434   : > { %v5128_v47 = vpop.f32.mrf.mxu0 }
 0x435   : > { %v7046_v25 = vadd.f32 %v5128_v47, %v7036_v27  ;;  %1481 = vmax.xlane.f32.xlu0 %v7043_v12 }
 0x436   : > { %v1425_v21 = vpop.f32.mrf.mxu0 }
 0x437   : > { %1483 = vmax.xlane.f32.xlu1 %v7046_v25  ;;  %v7054_v37 = vadd.f32 %v7036_v27, %v1425_v21 }
 0x438   : > { %v5131_v38 = vpop.f32.mrf.mxu0 }
 0x439   : > { %1477 = vmax.xlane.f32.xlu0 %v7050_v18  ;;  %v7058_v7 = vadd.f32 %v5131_v38, %v7036_v27 }
 0x43a   : > { %v1438_v34 = vpop.f32.mrf.mxu0 }
 0x43b   : > { %1479 = vmax.xlane.f32.xlu1 %v7054_v37  ;;  %v7066_v44 = vadd.f32 %v7036_v27, %v1438_v34 }
 0x43c   : > { %v5132_v26 = vpop.f32.mrf.mxu0 }
 0x43d   : > { %v7062_v10 = vadd.f32 %v5132_v26, %v7036_v27  ;;  %1489 = vmax.xlane.f32.xlu0 %v7058_v7 }
 0x43e   : > { %v1441_v50 = vpop.f32.mrf.mxu0 }
 0x43f   : > { %1491 = vmax.xlane.f32.xlu1 %v7062_v10  ;;  %v7070_v61 = vadd.f32 %v7036_v27, %v1441_v50 }
 0x440   : > { %v5135_v57 = vpop.f32.mrf.mxu0 }
 0x441   : > { %1485 = vmax.xlane.f32.xlu0 %v7066_v44  ;;  %v7074_v5 = vadd.f32 %v5135_v57, %v7036_v27 }
 0x442   : > { %v1454_v1 = vpop.f32.mrf.mxu0 }
 0x443   : > { %1487 = vmax.xlane.f32.xlu1 %v7070_v61  ;;  %v7079_v46 = vadd.f32 %v7036_v27, %v1454_v1 }
 0x444   : > { %v5136_v53 = vpop.f32.mrf.mxu0 }
 0x445   : > { %1497 = vmax.xlane.f32.xlu0 %v7074_v5  ;;  %v7087_v51 = vadd.f32 %v5136_v53, %v7036_v27 }
 0x446   : > { %v1457_v33 = vpop.f32.mrf.mxu0 }
 0x447   : > { %v7091_v40 = vadd.f32 %v7036_v27, %v1457_v33 }
 0x449   : > { %1493 = vmax.xlane.f32.xlu0 %v7079_v46 }
 0x454   : > { %1758 = vrot.lane.b32.xlu1 %v6965_v43, %s6242_s15 }
 0x45f   : > { %1760 = vrot.lane.b32.xlu0 %v6954_v36, %s6242_s15 }
 0x478   : > { %1499 = vmax.xlane.f32.xlu1 %v7087_v51 }
 0x47c   : > { %1495 = vmax.xlane.f32.xlu1 %v7091_v40 }
 0x4b4   : > { %v1474_v31 = vpop.xlane.xlu1 %1473 }
 0x4b5   : > { %v1503_v9 = vsub.f32 %v1415_v28, %v1474_v31 }
 0x4b6   : > { %v1470_v43 = vpop.xlane.xlu0 %1469 }
 0x4b7   : > { %v1521_v56 = vmul.f32 1.442695, %v1503_v9  ;;  %v1501_v13 = vsub.f32 %v1407_v49, %v1470_v43 }
 0x4b8   : > { %v1476_v36 = vpop.xlane.xlu1 %1475 }
 0x4b9   : > { %5623 = vpow2.f32 %v1521_v56  ;;  %v1517_v14 = vmul.f32 1.442695, %v1501_v13  ;;  %v1504_v15 = vsub.f32 %v1418_v60, %v1476_v36 }
 0x4ba   : > { %v1472_v20 = vpop.xlane.xlu0 %1471 }
 0x4bb   : > { %v1523_v11 = vmul.f32 1.442695, %v1504_v15  ;;  %v1502_v47 = vsub.f32 %v1410_v3, %v1472_v20  ;;  %5625 = vpow2.f32 %v1517_v14 }
 0x4bd   : > { %5627 = vpow2.f32 %v1523_v11  ;;  %v1519_v21 = vmul.f32 1.442695, %v1502_v47 }
 0x4be   : > { %v1482_v60 = vpop.xlane.xlu0 %1481 }
 0x4bf   : > { %5629 = vpow2.f32 %v1519_v21  ;;  %v1507_v1 = vsub.f32 %v7043_v12, %v1482_v60 }
 0x4c0   : > { %v1484_v50 = vpop.xlane.xlu1 %1483 }
 0x4c1   : > { %v1529_v9 = vmul.f32 1.442695, %v1507_v1  ;;  %v1508_v56 = vsub.f32 %v7046_v25, %v1484_v50 }
 0x4c2   : > { %v1478_v3 = vpop.xlane.xlu0 %1477 }
 0x4c3   : > { %v1505_v33 = vsub.f32 %v7050_v18, %v1478_v3  ;;  %5631 = vpow2.f32 %v1529_v9  ;;  %v1531_v15 = vmul.f32 1.442695, %v1508_v56 }
 0x4c4   : > { %v1480_v53 = vpop.xlane.xlu1 %1479 }
 0x4c5   : > { %v1506_v43 = vsub.f32 %v7054_v37, %v1480_v53  ;;  %v1525_v13 = vmul.f32 1.442695, %v1505_v33 }
 0x4c6   : > { %v7096_v38 = vpop.eup %5623  ;;  %v1490_v26 = vpop.xlane.xlu0 %1489 }
 0x4c7   : > { %1553 = vadd.xlane.f32.xlu0 %v7096_v38  ;;  %5633 = vpow2.f32 %v1525_v13  ;;  %v1511_v12 = vsub.f32 %v7058_v7, %v1490_v26 }
 0x4c8   : > { %v7099_v34 = vpop.eup %5625  ;;  %v1492_v36 = vpop.xlane.xlu1 %1491 }
 0x4c9   : > { %v1537_v37 = vmul.f32 1.442695, %v1511_v12  ;;  %v1512_v21 = vsub.f32 %v7062_v10, %v1492_v36 }
 0x4ca   : > { %v7101_v28 = vpop.eup %5627  ;;  %v1486_v57 = vpop.xlane.xlu0 %1485 }
 0x4cb   : > { %1555 = vadd.xlane.f32.xlu1 %v7101_v28  ;;  %1549 = vadd.xlane.f32.xlu0 %v7099_v34  ;;  %v1509_v25 = vsub.f32 %v7066_v44, %v1486_v57  ;;  %v1539_v7 = vmul.f32 1.442695, %v1512_v21 }
 0x4cc   : > { %v7105_v49 = vpop.eup %5629  ;;  %v1488_v11 = vpop.xlane.xlu1 %1487 }
 0x4cd   : > { %v1533_v60 = vmul.f32 1.442695, %v1509_v25  ;;  %v1510_v44 = vsub.f32 %v7070_v61, %v1488_v11 }
 0x4ce   : > { %v1498_v31 = vpop.xlane.xlu0 %1497 }
 0x4cf   : > { %1551 = vadd.xlane.f32.xlu1 %v7105_v49  ;;  %v1515_v14 = vsub.f32 %v7074_v5, %v1498_v31  ;;  %v1535_v33 = vmul.f32 1.442695, %v1510_v44 }
 0x4d0   : > { %v7121_v5 = vpop.permute.xlu1 %1758  ;;  %v7123_v3 = vpop.eup %5631 }
 0x4d1   : > { %v1545_v20 = vmul.f32 1.442695, %v1515_v14 }
 0x4d4   : > { %v7126_v26 = vpop.eup %5633 }
 0x4e0   : > { %1754 = vrot.lane.b32.xlu1 %v6985_v2, %s6242_s15  ;;  %v1527_v2 = vmul.f32 1.442695, %v1506_v43 }
 0x4e1   : > { %1756 = vrot.lane.b32.xlu0 %v6975_v63, %s6242_s15  ;;  %v1494_v63 = vpop.xlane.xlu0 %1493 }
 0x4e2   : > { %5635 = vpow2.f32 %v1527_v2  ;;  %v1513_v18 = vsub.f32 %v7079_v46, %v1494_v63  ;;  %v1812_v63 = vsel %vm1323_vm0, %v7027_v4, 0 }
 0x4e3   : > { %5637 = vpow2.f32 %v1531_v15 }
 0x4e4   : > { %5639 = vpow2.f32 %v1545_v20  ;;  %v1541_v47 = vmul.f32 1.442695, %v1513_v18 }
 0x4e5   : > { %5641 = vpow2.f32 %v1537_v37 }
 0x4e6   : > { %5643 = vpow2.f32 %v1541_v47 }
 0x4e7   : > { %5645 = vpow2.f32 %v1533_v60 }
 0x4e8   : > { %5647 = vpow2.f32 %v1539_v7 }
 0x4ef   : > { %v7130_v57 = vpop.eup %5635 }
 0x4f0   : > { %v7134_v53 = vpop.eup %5637 }
 0x4f1   : > { %v7137_v9 = vpop.eup %5639 }
 0x4f2   : > { %v7141_v61 = vpop.eup %5641 }
 0x4f3   : > { %v7143_v43 = vpop.eup %5643 }
 0x4f4   : > { %v7147_v56 = vpop.eup %5645 }
 0x500   : > { %1561 = vadd.xlane.f32.xlu0 %v7123_v3 }
 0x501   : > { %v1500_v46 = vpop.xlane.xlu1 %1499 }
 0x502   : > { %v1516_v50 = vsub.f32 %v7087_v51, %v1500_v46 }
 0x504   : > { %v1547_v10 = vmul.f32 1.442695, %v1516_v50  ;;  %1559 = vadd.xlane.f32.xlu0 %v7130_v57  ;;  %1557 = vadd.xlane.f32.xlu1 %v7126_v26 }
 0x505   : > { %v1496_v1 = vpop.xlane.xlu1 %1495 }
 0x506   : > { %5649 = vpow2.f32 %v1547_v10  ;;  %v1514_v31 = vsub.f32 %v7091_v40, %v1496_v1  ;;  %v7150_v40 = vpop.eup %5647 }
 0x507   : > { %5651 = vpow2.f32 %v1535_v33 }
 0x508   : > { %1563 = vadd.xlane.f32.xlu1 %v7134_v53  ;;  %1577 = vadd.xlane.f32.xlu0 %v7137_v9  ;;  %v1543_v51 = vmul.f32 1.442695, %v1514_v31 }
 0x50a   : > { %5653 = vpow2.f32 %v1543_v51 }
 0x50c   : > { %1569 = vadd.xlane.f32.xlu1 %v7141_v61  ;;  %1573 = vadd.xlane.f32.xlu0 %v7143_v43 }
 0x510   : > { %1565 = vadd.xlane.f32.xlu1 %v7147_v56 }
 0x513   : > { %v7152_v13 = vpop.eup %5649 }
 0x514   : > { %1571 = vadd.xlane.f32.xlu1 %v7150_v40  ;;  %1579 = vadd.xlane.f32.xlu0 %v7152_v13  ;;  %v7156_v36 = vpop.eup %5651 }
 0x517   : > { %v7159_v2 = vpop.eup %5653 }
 0x518   : > { %1567 = vadd.xlane.f32.xlu1 %v7156_v36 }
 0x51c   : > { %1575 = vadd.xlane.f32.xlu1 %v7159_v2 }
 0x52a   : > { %1752 = vrot.lane.b32.xlu0 %v6995_v6, %s6242_s15 }
 0x52d   : > { %1750 = vrot.lane.b32.xlu1 %v7005_v58, %s6242_s15 }
 0x52e   : > { %1726 = vrot.lane.b32.xlu0 %v6811_v30, %s6242_s15  ;;  %v1761_v30 = vpop.permute.xlu0 %1760 }
 0x531   : > { %1728 = vrot.lane.b32.xlu1 %v6821_v0, %s6242_s15 }
 0x532   : > { %1730 = vrot.lane.b32.xlu0 %v6837_v41, %s6242_s15 }
 0x535   : > { %1732 = vrot.lane.b32.xlu1 %v6849_v55, %s6242_s15 }
 0x536   : > { %1734 = vrot.lane.b32.xlu0 %v6860_v52, %s6242_s15 }
 0x539   : > { %1736 = vrot.lane.b32.xlu1 %v6876_v35, %s6242_s15 }
 0x53a   : > { %1738 = vrot.lane.b32.xlu0 %v6904_v59, %s6242_s15 }
 0x53d   : > { %1740 = vrot.lane.b32.xlu1 %v6925_v22, %s6242_s15 }
 0x53e   : > { %2085 = vrot.lane.b32.xlu0 %v6879_v19, %s6242_s15 }
 0x541   : > { %2083 = vrot.lane.b32.xlu1 %v6886_v39, %s6242_s15 }
 0x542   : > { %2081 = vrot.lane.b32.xlu0 %v6891_v48, %s6242_s15 }
 0x546   : > { %2079 = vrot.lane.b32.xlu0 %v6907_v8, %s6242_s15 }
 0x550   : > { %v1554_v0 = vpop.xlane.xlu0 %1553 }
 0x554   : > { %v1556_v41 = vpop.xlane.xlu1 %1555  ;;  %v1550_v55 = vpop.xlane.xlu0 %1549 }
 0x555   : > { %5655 = vrcp.f32 %v1556_v41 }
 0x556   : > { %5657 = vrcp.f32 %v1550_v55 }
 0x557   : > { %5659 = vrcp.f32 %v1554_v0 }
 0x558   : > { %v1552_v52 = vpop.xlane.xlu1 %1551  ;;  %v1757_v4 = vpop.permute.xlu0 %1756 }
 0x559   : > { %5661 = vrcp.f32 %v1552_v52 }
 0x562   : > { %v5656_v35 = vpop.eup %5655 }
 0x563   : > { %v5658_v19 = vpop.eup %5657  ;;  %v1600_v39 = vmul.f32 %v5656_v35, %v7101_v28  ;;  %v1809_v28 = vsel %vm1323_vm0, %v7094_v24, 0 }
 0x564   : > { %v5660_v59 = vpop.eup %5659  ;;  %v1597_v48 = vmul.f32 %v5658_v19, %v7099_v34  ;;  %v1806_v34 = vsel %vm1323_vm0, %v1761_v30, 0 }
 0x565   : > { %v1599_v8 = vmul.f32 %v5660_v59, %v7096_v38  ;;  %v1803_v38 = vsel %vm1323_vm0, %v7121_v5, 0 }
 0x566   : > { %v5662_v22 = vpop.eup %5661 }
 0x567   : > { %v1598_v6 = vmul.f32 %v5662_v22, %v7105_v49  ;;  %v1614_v14 = vpack.c.bf16 %v1600_v39, %v1599_v8  ;;  %v1755_v49 = vpop.permute.xlu1 %1754 }
 0x568   : > { %v1797_v37 = vsel %vm1323_vm0, %v1755_v49, 0 }
 0x569   : > { %v1613_v58 = vpack.c.bf16 %v1598_v6, %v1597_v48 }
 0x56b   : > { %5153 = vmatprep.mubr.bf16.mxu1 %v1613_v58 }
 0x56c   : > { %5154 = vmatmul.mubr.bf16.vlgmr.msra.gmra.mxu1 %v1614_v14 }
 0x56d   : > { %5170 = vmatpush3.bf16.xpose.msra.mxu1 %v1812_v63 }
 0x56e   : > { %5290 = vmatprep.subr.msk.bf16.mxu1 %vm1323_vm0, %v7094_v24  ;;  %v1800_v24 = vsel %vm1323_vm0, %v1757_v4, 0 }
 0x575   : > { %5172 = vmatpush3.bf16.xpose.msra.mxu1 %v1809_v28 }
 0x576   : > { %5291 = vmatprep.subr.msk.bf16.mxu1 %vm1323_vm0, %v1761_v30 }
 0x57d   : > { %5174 = vmatpush3.bf16.xpose.msra.mxu1 %v1806_v34 }
 0x57e   : > { %5292 = vmatprep.subr.msk.bf16.mxu1 %vm1323_vm0, %v7121_v5 }
 0x585   : > { %5176 = vmatpush3.bf16.xpose.msra.mxu1 %v1803_v38 }
 0x586   : > { %5293 = vmatprep.subr.msk.bf16.mxu1 %vm1323_vm0, %v1757_v4 }
 0x589   : > { %v1562_v15 = vpop.xlane.xlu0 %1561 }
 0x58d   : > { %5178 = vmatpush3.bf16.xpose.msra.mxu1 %v1800_v24  ;;  %v1558_v12 = vpop.xlane.xlu1 %1557  ;;  %v1560_v20 = vpop.xlane.xlu0 %1559 }
 0x58e   : > { %5663 = vrcp.f32 %v1558_v12  ;;  %5294 = vmatprep.subr.msk.bf16.mxu1 %vm1323_vm0, %v1755_v49 }
 0x58f   : > { %5665 = vrcp.f32 %v1560_v20 }
 0x590   : > { %5667 = vrcp.f32 %v1562_v15 }
 0x591   : > { %v1564_v18 = vpop.xlane.xlu1 %1563  ;;  %v1578_v11 = vpop.xlane.xlu0 %1577 }
 0x592   : > { %5669 = vrcp.f32 %v1564_v18 }
 0x595   : > { %5180 = vmatpush3.bf16.xpose.msra.mxu1 %v1797_v37  ;;  %v1570_v25 = vpop.xlane.xlu1 %1569  ;;  %v1574_v47 = vpop.xlane.xlu0 %1573 }
 0x599   : > { %v1566_v21 = vpop.xlane.xlu1 %1565 }
 0x59b   : > { %v5664_v5 = vpop.eup %5663 }
 0x59c   : > { %v5666_v60 = vpop.eup %5665  ;;  %v1601_v7 = vmul.f32 %v5664_v5, %v7126_v26 }
 0x59d   : > { %v5668_v46 = vpop.eup %5667  ;;  %v1572_v44 = vpop.xlane.xlu1 %1571  ;;  %v1602_v10 = vmul.f32 %v5666_v60, %v7130_v57 }
 0x59e   : > { %v1580_v50 = vpop.xlane.xlu0 %1579  ;;  %5671 = vrcp.f32 %v1572_v44  ;;  %v1603_v31 = vmul.f32 %v5668_v46, %v7123_v3 }
 0x59f   : > { %v5670_v1 = vpop.eup %5669  ;;  %v1615_v33 = vpack.c.bf16 %v1602_v10, %v1601_v7  ;;  %5673 = vrcp.f32 %v1566_v21 }
 0x5a0   : > { %v1604_v51 = vmul.f32 %v5670_v1, %v7134_v53  ;;  %5675 = vrcp.f32 %v1570_v25 }
 0x5a1   : > { %5157 = vmatprep.mubr.bf16.mxu1 %v1615_v33  ;;  %v1568_v30 = vpop.xlane.xlu1 %1567 }
 0x5a2   : > { %v1753_v0 = vpop.permute.xlu0 %1752  ;;  %5677 = vrcp.f32 %v1568_v30  ;;  %v1616_v41 = vpack.c.bf16 %v1604_v51, %v1603_v31 }
 0x5a3   : > { %5295 = vmatprep.subr.msk.bf16.mxu1 %vm1323_vm0, %v1753_v0  ;;  %v1794_v26 = vsel %vm1323_vm0, %v1753_v0, 0  ;;  %5679 = vrcp.f32 %v1574_v47 }
 0x5a4   : > { %5182 = vmatpush3.bf16.xpose.msra.mxu1 %v1794_v26 }
 0x5a5   : > { %5158 = vmatmul.mubr.bf16.gmra.mxu1 %v1616_v41  ;;  %v1576_v57 = vpop.xlane.xlu1 %1575 }
 0x5a6   : > { %v1727_v55 = vpop.permute.xlu0 %1726  ;;  %5681 = vrcp.f32 %v1576_v57 }
 0x5a7   : > { %5683 = vrcp.f32 %v1580_v50 }
 0x5a8   : > { %5685 = vrcp.f32 %v1578_v11 }
 0x5a9   : > { %v1751_v3 = vpop.permute.xlu1 %1750 }
 0x5aa   : > { %v1731_v53 = vpop.permute.xlu0 %1730  ;;  %5296 = vmatprep.subr.msk.bf16.mxu1 %vm1323_vm0, %v1751_v3  ;;  %v1791_v52 = vsel %vm1323_vm0, %v1751_v3, 0 }
 0x5ab   : > { %v5672_v35 = vpop.eup %5671 }
 0x5ac   : > { %5184 = vmatpush3.bf16.xpose.msra.mxu1 %v1791_v52  ;;  %v5674_v19 = vpop.eup %5673  ;;  %v1608_v6 = vmul.f32 %v5672_v35, %v7150_v40 }
 0x5ad   : > { %v1729_v59 = vpop.permute.xlu1 %1728  ;;  %v5676_v39 = vpop.eup %5675  ;;  %v1605_v8 = vmul.f32 %v5674_v19, %v7147_v56 }
 0x5ae   : > { %v1735_v22 = vpop.permute.xlu0 %1734  ;;  %v1607_v34 = vmul.f32 %v5676_v39, %v7141_v61 }
 0x5af   : > { %v5678_v48 = vpop.eup %5677 }
 0x5b0   : > { %v1606_v58 = vmul.f32 %v5678_v48, %v7156_v36  ;;  %v5680_v14 = vpop.eup %5679  ;;  %v1618_v49 = vpack.c.bf16 %v1608_v6, %v1607_v34 }
 0x5b1   : > { %v1733_v63 = vpop.permute.xlu1 %1732  ;;  %v1609_v24 = vmul.f32 %v5680_v14, %v7143_v43 }
 0x5b2   : > { %v1739_v28 = vpop.permute.xlu0 %1738  ;;  %v1617_v38 = vpack.c.bf16 %v1606_v58, %v1605_v8 }
 0x5b3   : > { %v5682_v4 = vpop.eup %5681 }
 0x5b4   : > { %v5684_v15 = vpop.eup %5683  ;;  %5161 = vmatprep.mubr.bf16.mxu1 %v1617_v38  ;;  %v1610_v12 = vmul.f32 %v5682_v4, %v7159_v2 }
 0x5b5   : > { %v1737_v20 = vpop.permute.xlu1 %1736  ;;  %5162 = vmatmul.mubr.bf16.gmra.mxu1 %v1618_v49  ;;  %v5686_v56 = vpop.eup %5685  ;;  %v1612_v36 = vmul.f32 %v5684_v15, %v7152_v13 }
 0x5b6   : > { %v2086_v40 = vpop.permute.xlu0 %2085  ;;  %v1619_v18 = vpack.c.bf16 %v1610_v12, %v1609_v24  ;;  %v1611_v11 = vmul.f32 %v5686_v56, %v7137_v9 }
 0x5b7   : > { %5201 = vmatprep.subr.bf16.mxu0 %v2086_v40 }
 0x5b8   : > { %5202 = vmatpush3.bf16.msra.mxu0 %v2086_v40  ;;  %5165 = vmatprep.mubr.bf16.mxu1 %v1619_v18  ;;  %v1620_v37 = vpack.c.bf16 %v1612_v36, %v1611_v11 }
 0x5b9   : > { %v1741_v61 = vpop.permute.xlu1 %1740 }
 0x5ba   : > { %v2082_v25 = vpop.permute.xlu0 %2081 }
 0x5bd   : > { %5166 = vmatmul.mubr.bf16.gmra.mxu1 %v1620_v37  ;;  %v2084_v47 = vpop.permute.xlu1 %2083 }
 0x5be   : > { %5185 = vmatprep.mubr.msk.bf16.mxu1 %vm1323_vm0, %v1727_v55  ;;  %5203 = vmatprep.subr.bf16.mxu0 %v2084_v47  ;;  %v2080_v43 = vpop.permute.xlu0 %2079 }
 0x5bf   : > { %5204 = vmatpush3.bf16.msra.mxu0 %v2084_v47 }
 0x5c0   : > { %5205 = vmatprep.subr.bf16.mxu0 %v2082_v25 }
 0x5c3   : > { %5206 = vmatpush3.bf16.msra.mxu0 %v2082_v25 }
 0x5c4   : > { %5207 = vmatprep.subr.bf16.mxu0 %v2080_v43 }
 0x5c5   : > { %5186 = vmatmul.mubr.msk.bf16.vlgmr.msra.gmra.mxu1 %vm1323_vm0, %v1729_v59 }
 0x5c6   : > { %5189 = vmatprep.mubr.msk.bf16.mxu1 %vm1323_vm0, %v1731_v53 }
 0x5c7   : > { %5208 = vmatpush3.bf16.msra.mxu0 %v2080_v43 }
 0x5cd   : > { %5190 = vmatmul.mubr.msk.bf16.gmra.mxu1 %vm1323_vm0, %v1733_v63 }
 0x5ce   : > { %5193 = vmatprep.mubr.msk.bf16.mxu1 %vm1323_vm0, %v1735_v22 }
 0x5d5   : > { %5194 = vmatmul.mubr.msk.bf16.gmra.mxu1 %vm1323_vm0, %v1737_v20 }
 0x5d6   : > { %5197 = vmatprep.mubr.msk.bf16.mxu1 %vm1323_vm0, %v1739_v28 }
 0x5dd   : > { %5198 = vmatmul.mubr.msk.bf16.gmra.mxu1 %vm1323_vm0, %v1741_v61 }
 0x5de   : > { %2932 = vmatprep.mubr.bf16.mxu1 %v6241_v32 }
 0x62c   : > { %v7235_v9 = vpop.f32.mrf.mxu1 }
 0x62e   : > { %v7237_v13 = vpop.f32.mrf.mxu1 }
 0x630   : > { %v7239_v2 = vpop.f32.mrf.mxu1 }
 0x632   : > { %v7241_v21 = vpop.f32.mrf.mxu1 }
 0x665   : > { %v7243_v5 = vpop.f32.mrf.mxu1 }
 0x667   : > { %v7245_v60 = vpop.f32.mrf.mxu1 }
 0x669   : > { %v7247_v7 = vpop.f32.mrf.mxu1 }
 0x66b   : > { %v7249_v46 = vpop.f32.mrf.mxu1 }
 0x675   : > { %v7251_v44 = vpop.f32.mrf.mxu1 }
 0x677   : > { %v7253_v50 = vpop.f32.mrf.mxu1 }
 0x679   : > { %v7255_v10 = vpop.f32.mrf.mxu1 }
 0x67b   : > { %v7257_v1 = vpop.f32.mrf.mxu1 }
 0x67d   : > { %v7259_v33 = vpop.f32.mrf.mxu1 }
 0x67f   : > { %v7261_v31 = vpop.f32.mrf.mxu1 }
 0x681   : > { %v7263_v51 = vpop.f32.mrf.mxu1 }
 0x683   : > { %v7265_v30 = vpop.f32.mrf.mxu1 }
 0x685   : > { %v5187_v0 = vpop.f32.mrf.mxu1 }
 0x686   : > { %v1857_v26 = vadd.f32 %v5187_v0, %v7036_v27 }
 0x687   : > { %v1848_v41 = vpop.f32.mrf.mxu1 }
 0x688   : > { %1915 = vmax.xlane.f32.xlu0 %v1857_v26  ;;  %v1849_v55 = vadd.f32 %v7036_v27, %v1848_v41 }
 0x689   : > { %v5188_v57 = vpop.f32.mrf.mxu1 }
 0x68a   : > { %v1860_v35 = vadd.f32 %v5188_v57, %v7036_v27 }
 0x68b   : > { %v1851_v3 = vpop.f32.mrf.mxu1 }
 0x68c   : > { %v1852_v53 = vadd.f32 %v7036_v27, %v1851_v3  ;;  %1911 = vmax.xlane.f32.xlu0 %v1849_v55 }
 0x68d   : > { %v5191_v52 = vpop.f32.mrf.mxu1 }
 0x68e   : > { %1913 = vmax.xlane.f32.xlu1 %v1852_v53  ;;  %v1873_v22 = vadd.f32 %v5191_v52, %v7036_v27 }
 0x68f   : > { %v1864_v19 = vpop.f32.mrf.mxu1 }
 0x690   : > { %1917 = vmax.xlane.f32.xlu0 %v1860_v35  ;;  %v1865_v8 = vadd.f32 %v7036_v27, %v1864_v19 }
 0x691   : > { %v5192_v59 = vpop.f32.mrf.mxu1 }
 0x692   : > { %v1876_v39 = vadd.f32 %v5192_v59, %v7036_v27 }
 0x693   : > { %v1867_v48 = vpop.f32.mrf.mxu1 }
 0x694   : > { %1923 = vmax.xlane.f32.xlu0 %v1873_v22  ;;  %1925 = vmax.xlane.f32.xlu1 %v1876_v39  ;;  %v1868_v58 = vadd.f32 %v7036_v27, %v1867_v48 }
 0x695   : > { %v5195_v6 = vpop.f32.mrf.mxu1 }
 0x696   : > { %v7276_v28 = vadd.f32 %v5195_v6, %v7036_v27 }
 0x697   : > { %v1880_v14 = vpop.f32.mrf.mxu1 }
 0x698   : > { %1921 = vmax.xlane.f32.xlu1 %v1868_v58  ;;  %1919 = vmax.xlane.f32.xlu0 %v1865_v8  ;;  %v7284_v4 = vadd.f32 %v7036_v27, %v1880_v14 }
 0x699   : > { %v5196_v63 = vpop.f32.mrf.mxu1 }
 0x69a   : > { %v7279_v34 = vadd.f32 %v5196_v63, %v7036_v27 }
 0x69b   : > { %v1883_v38 = vpop.f32.mrf.mxu1 }
 0x69c   : > { %1931 = vmax.xlane.f32.xlu0 %v7276_v28  ;;  %1933 = vmax.xlane.f32.xlu1 %v7279_v34  ;;  %v7287_v49 = vadd.f32 %v7036_v27, %v1883_v38 }
 0x69d   : > { %v5199_v15 = vpop.f32.mrf.mxu1 }
 0x69e   : > { %v7292_v24 = vadd.f32 %v5199_v15, %v7036_v27 }
 0x69f   : > { %v1896_v12 = vpop.f32.mrf.mxu1 }
 0x6a0   : > { %1929 = vmax.xlane.f32.xlu1 %v7287_v49  ;;  %1927 = vmax.xlane.f32.xlu0 %v7284_v4  ;;  %v7296_v20 = vadd.f32 %v7036_v27, %v1896_v12 }
 0x6a1   : > { %v5200_v40 = vpop.f32.mrf.mxu1 }
 0x6a2   : > { %v7304_v56 = vadd.f32 %v5200_v40, %v7036_v27 }
 0x6a3   : > { %v1899_v18 = vpop.f32.mrf.mxu1 }
 0x6a4   : > { %1939 = vmax.xlane.f32.xlu0 %v7292_v24  ;;  %v7308_v36 = vadd.f32 %v7036_v27, %v1899_v18 }
 0x6a8   : > { %1935 = vmax.xlane.f32.xlu0 %v7296_v20 }
 0x6b1   : > { %2075 = vrot.lane.b32.xlu1 %v6931_v54, %s6242_s15 }
 0x6be   : > { %2077 = vrot.lane.b32.xlu0 %v6913_v45, %s6242_s15 }
 0x6d5   : > { %1941 = vmax.xlane.f32.xlu1 %v7304_v56 }
 0x6d9   : > { %1937 = vmax.xlane.f32.xlu1 %v7308_v36 }
 0x711   : > { %v1916_v61 = vpop.xlane.xlu0 %1915 }
 0x712   : > { %v1945_v11 = vsub.f32 %v1857_v26, %v1916_v61 }
 0x714   : > { %v1963_v37 = vmul.f32 1.442695, %v1945_v11 }
 0x715   : > { %v1912_v25 = vpop.xlane.xlu0 %1911 }
 0x716   : > { %5687 = vpow2.f32 %v1963_v37  ;;  %v1943_v54 = vsub.f32 %v1849_v55, %v1912_v25 }
 0x717   : > { %v1914_v47 = vpop.xlane.xlu1 %1913 }
 0x718   : > { %v1959_v45 = vmul.f32 1.442695, %v1943_v54  ;;  %v1944_v0 = vsub.f32 %v1852_v53, %v1914_v47 }
 0x719   : > { %v1918_v43 = vpop.xlane.xlu0 %1917 }
 0x71a   : > { %5689 = vpow2.f32 %v1959_v45  ;;  %v1946_v41 = vsub.f32 %v1860_v35, %v1918_v43  ;;  %v1961_v19 = vmul.f32 1.442695, %v1944_v0 }
 0x71c   : > { %v1965_v57 = vmul.f32 1.442695, %v1946_v41 }
 0x71d   : > { %v1926_v3 = vpop.xlane.xlu1 %1925  ;;  %v1924_v52 = vpop.xlane.xlu0 %1923 }
 0x71e   : > { %5691 = vpow2.f32 %v1965_v57  ;;  %v1950_v27 = vsub.f32 %v1876_v39, %v1926_v3  ;;  %v1949_v59 = vsub.f32 %v1873_v22, %v1924_v52 }
 0x71f   : > { %5693 = vpow2.f32 %v1961_v19 }
 0x720   : > { %v1971_v48 = vmul.f32 1.442695, %v1949_v59  ;;  %v1973_v14 = vmul.f32 1.442695, %v1950_v27 }
 0x721   : > { %v1922_v6 = vpop.xlane.xlu1 %1921  ;;  %v1920_v26 = vpop.xlane.xlu0 %1919 }
 0x722   : > { %v1947_v63 = vsub.f32 %v1865_v8, %v1920_v26  ;;  %5695 = vpow2.f32 %v1971_v48  ;;  %v1948_v38 = vsub.f32 %v1868_v58, %v1922_v6 }
 0x723   : > { %v7311_v55 = vpop.eup %5687  ;;  %5697 = vpow2.f32 %v1973_v14 }
 0x724   : > { %v1967_v15 = vmul.f32 1.442695, %v1947_v63  ;;  %1995 = vadd.xlane.f32.xlu1 %v7311_v55  ;;  %v1969_v12 = vmul.f32 1.442695, %v1948_v38 }
 0x725   : > { %v1932_v53 = vpop.xlane.xlu0 %1931  ;;  %v1934_v8 = vpop.xlane.xlu1 %1933 }
 0x726   : > { %5699 = vpow2.f32 %v1967_v15  ;;  %v1954_v0 = vsub.f32 %v7279_v34, %v1934_v8  ;;  %v1953_v52 = vsub.f32 %v7276_v28, %v1932_v53 }
 0x727   : > { %v7314_v35 = vpop.eup %5689  ;;  %5701 = vpow2.f32 %v1969_v12 }
 0x728   : > { %1991 = vadd.xlane.f32.xlu1 %v7314_v35  ;;  %v1981_v3 = vmul.f32 1.442695, %v1954_v0  ;;  %v1979_v59 = vmul.f32 1.442695, %v1953_v52 }
 0x729   : > { %v1928_v22 = vpop.xlane.xlu0 %1927  ;;  %v1930_v61 = vpop.xlane.xlu1 %1929 }
 0x72a   : > { %v1951_v43 = vsub.f32 %v7284_v4, %v1928_v22  ;;  %v1952_v41 = vsub.f32 %v7287_v49, %v1930_v61 }
 0x72b   : > { %v7317_v39 = vpop.eup %5691 }
 0x72c   : > { %1997 = vadd.xlane.f32.xlu1 %v7317_v39  ;;  %v7320_v58 = vpop.eup %5693  ;;  %v1975_v57 = vmul.f32 1.442695, %v1951_v43  ;;  %v1977_v19 = vmul.f32 1.442695, %v1952_v41 }
 0x72d   : > { %v1940_v40 = vpop.xlane.xlu0 %1939  ;;  %v2076_v47 = vpop.permute.xlu1 %2075 }
 0x72e   : > { %5703 = vpow2.f32 %v1975_v57  ;;  %v1957_v34 = vsub.f32 %v7292_v24, %v1940_v40 }
 0x72f   : > { %v7322_v18 = vpop.eup %5695  ;;  %5705 = vpow2.f32 %v1981_v3 }
 0x730   : > { %1993 = vadd.xlane.f32.xlu1 %v7320_v58  ;;  %2003 = vadd.xlane.f32.xlu0 %v7322_v18  ;;  %v7326_v37 = vpop.eup %5697  ;;  %5707 = vpow2.f32 %v1977_v19  ;;  %v1987_v28 = vmul.f32 1.442695, %v1957_v34 }
 0x731   : > { %v1936_v11 = vpop.xlane.xlu0 %1935  ;;  %5709 = vpow2.f32 %v1979_v59 }
 0x733   : > { %v7328_v25 = vpop.eup %5699 }
 0x734   : > { %2005 = vadd.xlane.f32.xlu0 %v7326_v37  ;;  %1999 = vadd.xlane.f32.xlu1 %v7328_v25  ;;  %v7332_v45 = vpop.eup %5701 }
 0x735   : > { %v2078_v54 = vpop.permute.xlu0 %2077 }
 0x736   : > { %5209 = vmatprep.subr.bf16.mxu0 %v2078_v54 }
 0x737   : > { %5210 = vmatpush3.bf16.msra.mxu0 %v2078_v54 }
 0x738   : > { %5211 = vmatprep.subr.bf16.mxu0 %v2076_v47  ;;  %2001 = vadd.xlane.f32.xlu0 %v7332_v45 }
 0x73b   : > { %5212 = vmatpush3.bf16.msra.mxu0 %v2076_v47  ;;  %v7347_v14 = vpop.eup %5703 }
 0x745   : > { %2071 = vrot.lane.b32.xlu1 %v6948_v42, %s6242_s15  ;;  %v1955_v42 = vsub.f32 %v7296_v20, %v1936_v11  ;;  %v7350_v20 = vpop.eup %5705 }
 0x747   : > { %v1983_v49 = vmul.f32 1.442695, %v1955_v42 }
 0x74e   : > { %2073 = vrot.lane.b32.xlu0 %v6939_v29, %s6242_s15 }
 0x75e   : > { %v1942_v27 = vpop.xlane.xlu1 %1941 }
 0x75f   : > { %v1958_v29 = vsub.f32 %v7304_v56, %v1942_v27  ;;  %v7352_v56 = vpop.eup %5707 }
 0x760   : > { %v7356_v24 = vpop.eup %5709 }
 0x761   : > { %v1989_v26 = vmul.f32 1.442695, %v1958_v29 }
 0x762   : > { %v1938_v48 = vpop.xlane.xlu1 %1937 }
 0x763   : > { %v1956_v4 = vsub.f32 %v7308_v36, %v1938_v48 }
 0x765   : > { %v1985_v6 = vmul.f32 1.442695, %v1956_v4 }
 0x767   : > { %5711 = vpow2.f32 %v1985_v6 }
 0x768   : > { %5713 = vpow2.f32 %v1983_v49 }
 0x769   : > { %2007 = vadd.xlane.f32.xlu1 %v7347_v14  ;;  %5715 = vpow2.f32 %v1989_v26 }
 0x76a   : > { %5717 = vpow2.f32 %v1987_v28 }
 0x76d   : > { %2009 = vadd.xlane.f32.xlu0 %v7352_v56  ;;  %2013 = vadd.xlane.f32.xlu1 %v7350_v20 }
 0x771   : > { %2011 = vadd.xlane.f32.xlu0 %v7356_v24 }
 0x774   : > { %v7359_v36 = vpop.eup %5711 }
 0x775   : > { %v7361_v63 = vpop.eup %5713  ;;  %2017 = vadd.xlane.f32.xlu1 %v7359_v36 }
 0x776   : > { %2015 = vadd.xlane.f32.xlu0 %v7361_v63  ;;  %v7365_v38 = vpop.eup %5715 }
 0x777   : > { %v7367_v15 = vpop.eup %5717 }
 0x779   : > { %2021 = vadd.xlane.f32.xlu1 %v7365_v38 }
 0x77a   : > { %2019 = vadd.xlane.f32.xlu0 %v7367_v15 }
 0x7ad   : > { %v1996_v53 = vpop.xlane.xlu1 %1995 }
 0x7b1   : > { %v1992_v12 = vpop.xlane.xlu1 %1991 }
 0x7b2   : > { %5719 = vrcp.f32 %v1992_v12 }
 0x7b5   : > { %v1998_v22 = vpop.xlane.xlu1 %1997 }
 0x7b6   : > { %5721 = vrcp.f32 %v1998_v22 }
 0x7b9   : > { %v1994_v8 = vpop.xlane.xlu1 %1993  ;;  %v2004_v40 = vpop.xlane.xlu0 %2003 }
 0x7ba   : > { %5723 = vrcp.f32 %v1994_v8 }
 0x7bb   : > { %5725 = vrcp.f32 %v1996_v53 }
 0x7bd   : > { %v2000_v61 = vpop.xlane.xlu1 %1999  ;;  %v2006_v11 = vpop.xlane.xlu0 %2005 }
 0x7be   : > { %5727 = vrcp.f32 %v2000_v61 }
 0x7bf   : > { %5729 = vrcp.f32 %v2006_v11  ;;  %v5720_v47 = vpop.eup %5719 }
 0x7c0   : > { %5731 = vrcp.f32 %v2004_v40  ;;  %v2039_v52 = vmul.f32 %v5720_v47, %v7314_v35 }
 0x7c1   : > { %v2002_v54 = vpop.xlane.xlu0 %2001  ;;  %v2072_v3 = vpop.permute.xlu1 %2071 }
 0x7c2   : > { %5733 = vrcp.f32 %v2002_v54 }
 0x7c3   : > { %v5722_v43 = vpop.eup %5721 }
 0x7c4   : > { %v2042_v27 = vmul.f32 %v5722_v43, %v7317_v39 }
 0x7c5   : > { %v2074_v0 = vpop.permute.xlu0 %2073 }
 0x7c6   : > { %5213 = vmatprep.subr.bf16.mxu0 %v2074_v0 }
 0x7c7   : > { %v5724_v41 = vpop.eup %5723  ;;  %5214 = vmatpush3.bf16.msra.mxu0 %v2074_v0 }
 0x7c8   : > { %v5726_v57 = vpop.eup %5725  ;;  %v2040_v19 = vmul.f32 %v5724_v41, %v7320_v58  ;;  %5215 = vmatprep.subr.bf16.mxu0 %v2072_v3 }
 0x7c9   : > { %v2041_v42 = vmul.f32 %v5726_v57, %v7311_v55 }
 0x7ca   : > { %v2055_v59 = vpack.c.bf16 %v2040_v19, %v2039_v52 }
 0x7cb   : > { %5216 = vmatpush3.bf16.msra.mxu0 %v2072_v3  ;;  %v5728_v48 = vpop.eup %5727  ;;  %v2056_v29 = vpack.c.bf16 %v2042_v27, %v2041_v42 }
 0x7cc   : > { %5217 = vmatprep.mubr.bf16.mxu0 %v2055_v59  ;;  %v5730_v4 = vpop.eup %5729  ;;  %v2043_v6 = vmul.f32 %v5728_v48, %v7328_v25  ;;  %v5535_v48 = vld [vmem:[%s6554_s2 + $0x38] sm:$0xff]  }
 0x7cd   : > { %v5732_v34 = vpop.eup %5731  ;;  %v2046_v58 = vmul.f32 %v5730_v4, %v7326_v37  ;;  %5233 = vmatprep.subr.bf16.mxu0 %v5535_v48  ;;  %v5541_v4 = vld [vmem:[%s6554_s2 + $0x8] sm:$0xff]  }
 0x7ce   : > { %5218 = vmatmul.mubr.bf16.vlgmr.msra.gmra.mxu0 %v2056_v29  ;;  %v2045_v39 = vmul.f32 %v5732_v34, %v7322_v18  ;;  %v5536_v29 = vld [vmem:[%s6554_s2 + $0x30] sm:$0xff]   ;;  %v5542_v34 = vld [vmem:[%s6554_s2] sm:$0xff]  }
 0x7cf   : > { %v5734_v49 = vpop.eup %5733  ;;  %5234 = vmatpush3.bf16.msra.mxu0 %v5535_v48 }
 0x7d0   : > { %v2044_v35 = vmul.f32 %v5734_v49, %v7332_v45  ;;  %v2058_v28 = vpack.c.bf16 %v2046_v58, %v2045_v39  ;;  %5235 = vmatprep.subr.bf16.mxu0 %v5536_v29 }
 0x7d2   : > { %v2057_v26 = vpack.c.bf16 %v2044_v35, %v2043_v6 }
 0x7d3   : > { %5236 = vmatpush3.bf16.msra.mxu0 %v5536_v29 }
 0x7d4   : > { %5221 = vmatprep.mubr.bf16.mxu0 %v2057_v26 }
 0x7d6   : > { %5222 = vmatmul.mubr.bf16.gmra.mxu0 %v2058_v28 }
 0x7f2   : > { %v2008_v55 = vpop.xlane.xlu1 %2007 }
 0x7f3   : > { %5735 = vrcp.f32 %v2008_v55 }
 0x7f6   : > { %v2014_v53 = vpop.xlane.xlu1 %2013  ;;  %v2010_v12 = vpop.xlane.xlu0 %2009 }
 0x7f7   : > { %5737 = vrcp.f32 %v2010_v12 }
 0x7f8   : > { %5739 = vrcp.f32 %v2014_v53 }
 0x7fa   : > { %v2012_v22 = vpop.xlane.xlu0 %2011 }
 0x7fb   : > { %5741 = vrcp.f32 %v2012_v22 }
 0x7fe   : > { %v2018_v8 = vpop.xlane.xlu1 %2017 }
 0x7ff   : > { %5743 = vrcp.f32 %v2018_v8  ;;  %v2016_v25 = vpop.xlane.xlu0 %2015 }
 0x800   : > { %5745 = vrcp.f32 %v2016_v25  ;;  %v5736_v40 = vpop.eup %5735 }
 0x801   : > { %v2047_v11 = vmul.f32 %v5736_v40, %v7347_v14 }
 0x802   : > { %v2022_v45 = vpop.xlane.xlu1 %2021 }
 0x803   : > { %5747 = vrcp.f32 %v2022_v45  ;;  %v2020_v37 = vpop.xlane.xlu0 %2019 }
 0x804   : > { %5749 = vrcp.f32 %v2020_v37  ;;  %v5738_v18 = vpop.eup %5737 }
 0x805   : > { %v5740_v61 = vpop.eup %5739  ;;  %v2048_v54 = vmul.f32 %v5738_v18, %v7352_v56 }
 0x806   : > { %v2050_v41 = vmul.f32 %v5740_v61, %v7350_v20 }
 0x807   : > { %v2059_v43 = vpack.c.bf16 %v2048_v54, %v2047_v11 }
 0x808   : > { %v5742_v47 = vpop.eup %5741 }
 0x809   : > { %v2049_v0 = vmul.f32 %v5742_v47, %v7356_v24  ;;  %5225 = vmatprep.mubr.bf16.mxu0 %v2059_v43 }
 0x80b   : > { %v2060_v3 = vpack.c.bf16 %v2050_v41, %v2049_v0 }
 0x80c   : > { %v5744_v57 = vpop.eup %5743 }
 0x80d   : > { %v5746_v52 = vpop.eup %5745  ;;  %v2052_v19 = vmul.f32 %v5744_v57, %v7359_v36  ;;  %5226 = vmatmul.mubr.bf16.gmra.mxu0 %v2060_v3  ;;  %v5537_v36 = vld [vmem:[%s6554_s2 + $0x28] sm:$0xff]  }
 0x80e   : > { %v2051_v14 = vmul.f32 %v5746_v52, %v7361_v63  ;;  %5237 = vmatprep.subr.bf16.mxu0 %v5537_v36  ;;  %v5538_v63 = vld [vmem:[%s6554_s2 + $0x20] sm:$0xff]  }
 0x80f   : > { %5238 = vmatpush3.bf16.msra.mxu0 %v5537_v36 }
 0x810   : > { %v5748_v27 = vpop.eup %5747  ;;  %v2061_v56 = vpack.c.bf16 %v2052_v19, %v2051_v14  ;;  %5239 = vmatprep.subr.bf16.mxu0 %v5538_v63 }
 0x811   : > { %v5750_v59 = vpop.eup %5749  ;;  %v2054_v24 = vmul.f32 %v5748_v27, %v7365_v38  ;;  %v5539_v38 = vld [vmem:[%s6554_s2 + $0x18] sm:$0xff]  }
 0x812   : > { %5229 = vmatprep.mubr.bf16.mxu0 %v2061_v56  ;;  %v2053_v20 = vmul.f32 %v5750_v59, %v7367_v15  ;;  %v5540_v15 = vld [vmem:[%s6554_s2 + $0x10] sm:$0xff]  }
 0x813   : > { %5240 = vmatpush3.bf16.msra.mxu0 %v5538_v63 }
 0x814   : > { %v2062_v42 = vpack.c.bf16 %v2054_v24, %v2053_v20  ;;  %5241 = vmatprep.subr.bf16.mxu0 %v5539_v38 }
 0x816   : > { %5230 = vmatmul.mubr.bf16.gmra.mxu0 %v2062_v42 }
 0x817   : > { %5242 = vmatpush3.bf16.msra.mxu0 %v5539_v38 }
 0x818   : > { %5243 = vmatprep.subr.bf16.mxu0 %v5540_v15 }
 0x81b   : > { %5244 = vmatpush3.bf16.msra.mxu0 %v5540_v15 }
 0x81c   : > { %5245 = vmatprep.subr.bf16.mxu0 %v5541_v4 }
 0x81f   : > { %5246 = vmatpush3.bf16.msra.mxu0 %v5541_v4 }
 0x820   : > { %5247 = vmatprep.subr.bf16.mxu0 %v5542_v34 }
 0x823   : > { %5248 = vmatpush3.bf16.msra.mxu0 %v5542_v34 }
 0x88e   : > { %v5219_v49 = vpop.f32.mrf.mxu0 }
 0x890   : > { %v2129_v6 = vpop.f32.mrf.mxu0 }
 0x892   : > { %v5220_v35 = vpop.f32.mrf.mxu0 }
 0x893   : > { %v5468_v58 = vpack.i.bf16 %v5220_v35, %v5219_v49 }
 0x894   : > { %v2132_v26 = vpop.f32.mrf.mxu0 }
 0x895   : > { %v5463_v39 = vpack.i.bf16 %v2132_v26, %v2129_v6  ;;  %5469 = vrot.lane.b32.xlu1 %v5468_v58, %s6242_s15 }
 0x896   : > { %v5223_v28 = vpop.f32.mrf.mxu0 }
 0x897   : > { %5464 = vrot.lane.b32.xlu0 %v5463_v39, %s6242_s15 }
 0x898   : > { %v2145_v55 = vpop.f32.mrf.mxu0 }
 0x89a   : > { %v5224_v53 = vpop.f32.mrf.mxu0 }
 0x89b   : > { %v5478_v8 = vpack.i.bf16 %v5224_v53, %v5223_v28 }
 0x89c   : > { %v2148_v12 = vpop.f32.mrf.mxu0 }
 0x89d   : > { %v5473_v22 = vpack.i.bf16 %v2148_v12, %v2145_v55 }
 0x89f   : > { %5474 = vrot.lane.b32.xlu1 %v5473_v22, %s6242_s15 }
 0x8a3   : > { %5479 = vrot.lane.b32.xlu1 %v5478_v8, %s6242_s15 }
 0x8cd   : > { %v5227_v25 = vpop.f32.mrf.mxu0 }
 0x8cf   : > { %v2161_v45 = vpop.f32.mrf.mxu0 }
 0x8d1   : > { %v5228_v37 = vpop.f32.mrf.mxu0 }
 0x8d2   : > { %v5488_v40 = vpack.i.bf16 %v5228_v37, %v5227_v25 }
 0x8d3   : > { %v2164_v18 = vpop.f32.mrf.mxu0 }
 0x8d4   : > { %v5483_v61 = vpack.i.bf16 %v2164_v18, %v2161_v45  ;;  %5489 = vrot.lane.b32.xlu1 %v5488_v40, %s6242_s15 }
 0x8d6   : > { %v5231_v11 = vpop.f32.mrf.mxu0  ;;  %5484 = vrot.lane.b32.xlu0 %v5483_v61, %s6242_s15  ;;  %v7437_v61 = vld [vmem:[%s6585_s17] sm:$0x3f] }
 0x8d8   : > { %v2177_v54 = vpop.f32.mrf.mxu0 }
 0x8da   : > { %v5232_v47 = vpop.f32.mrf.mxu0 }
 0x8db   : > { %v5498_v43 = vpack.i.bf16 %v5232_v47, %v5231_v11 }
 0x8dc   : > { %v2180_v0 = vpop.f32.mrf.mxu0 }
 0x8dd   : > { %v5493_v41 = vpack.i.bf16 %v2180_v0, %v2177_v54  ;;  %5499 = vrot.lane.b32.xlu1 %v5498_v43, %s6242_s15 }
 0x8df   : > { %5494 = vrot.lane.b32.xlu0 %v5493_v41, %s6242_s15 }
 0x907   : > { %v5470_v57 = vpop.permute.xlu1 %5469 }
 0x908   : > { %v5472_v3 = vunpack.i.h.bf16 %v5470_v57  ;;  %v5471_v52 = vunpack.i.l.bf16 %v5470_v57 }
 0x909   : > { %v5465_v19 = vpop.permute.xlu0 %5464 }
 0x90a   : > { %v5467_v14 = vunpack.i.h.bf16 %v5465_v19  ;;  %v5466_v27 = vunpack.i.l.bf16 %v5465_v19  ;;  %v2259_v56 = vsel %vm1323_vm0, %v7239_v2, %v5472_v3  ;;  %v2258_v59 = vsel %vm1323_vm0, %v7235_v9, %v5471_v52  ;;  %v5944_v3 = vld [vmem:[#allocation2] sm:$0xff]  ;;  %v5945_v19 = vld [vmem:[#allocation2 + $0x58] sm:$0xff] }
 0x90b   : > { %v2273_v48 = vpack.c.bf16 %v2259_v56, %v2258_v59  ;;  %v5946_v56 = vld [vmem:[#allocation2 + $0x18] sm:$0xff] }
 0x90c   : > { %v2256_v24 = vsel %vm1323_vm0, %v7237_v13, %v5466_v27  ;;  %v2257_v20 = vsel %vm1323_vm0, %v7241_v21, %v5467_v14 }
 0x90d   : > { %v2272_v42 = vpack.c.bf16 %v2257_v20, %v2256_v24 }
 0x90f   : > { %5249 = vmatprep.mubr.bf16.mxu0 %v2272_v42 }
 0x910   : > { %5250 = vmatmul.mubr.bf16.vlgmr.msra.gmra.mxu0 %v2273_v48  ;;  %v5947_v48 = vld [vmem:[#allocation2 + $0x50] sm:$0xff] }
 0x911   : > { %v5475_v29 = vpop.permute.xlu1 %5474 }
 0x912   : > { %v5477_v36 = vunpack.i.h.bf16 %v5475_v29  ;;  %v5476_v63 = vunpack.i.l.bf16 %v5475_v29 }
 0x914   : > { %v2260_v38 = vsel %vm1323_vm0, %v7245_v60, %v5476_v63  ;;  %v2261_v2 = vsel %vm1323_vm0, %v7249_v46, %v5477_v36 }
 0x915   : > { %v5480_v9 = vpop.permute.xlu1 %5479  ;;  %v2274_v15 = vpack.c.bf16 %v2261_v2, %v2260_v38 }
 0x916   : > { %v5482_v4 = vunpack.i.h.bf16 %v5480_v9  ;;  %v5481_v13 = vunpack.i.l.bf16 %v5480_v9  ;;  %v5948_v9 = vld [vmem:[#allocation2 + $0x68] sm:$0xff] }
 0x917   : > { %5253 = vmatprep.mubr.bf16.mxu0 %v2274_v15 }
 0x918   : > { %v2262_v21 = vsel %vm1323_vm0, %v7243_v5, %v5481_v13  ;;  %v2263_v34 = vsel %vm1323_vm0, %v7247_v7, %v5482_v4  ;;  %v5949_v4 = vld [vmem:[#allocation2 + $0x8] sm:$0xff] }
 0x919   : > { %v2275_v49 = vpack.c.bf16 %v2263_v34, %v2262_v21  ;;  %v5950_v21 = vld [vmem:[#allocation2 + $0x48] sm:$0xff] }
 0x91b   : > { %5254 = vmatmul.mubr.bf16.gmra.mxu0 %v2275_v49 }
 0x946   : > { %v5490_v6 = vpop.permute.xlu1 %5489 }
 0x947   : > { %v5492_v35 = vunpack.i.h.bf16 %v5490_v6  ;;  %v5491_v58 = vunpack.i.l.bf16 %v5490_v6 }
 0x948   : > { %v5485_v60 = vpop.permute.xlu0 %5484 }
 0x949   : > { %v5487_v26 = vunpack.i.h.bf16 %v5485_v60  ;;  %v5486_v39 = vunpack.i.l.bf16 %v5485_v60  ;;  %v2266_v46 = vsel %vm1323_vm0, %v7251_v44, %v5491_v58  ;;  %v2267_v28 = vsel %vm1323_vm0, %v7255_v10, %v5492_v35 }
 0x94a   : > { %v2277_v53 = vpack.c.bf16 %v2267_v28, %v2266_v46 }
 0x94b   : > { %v2264_v5 = vsel %vm1323_vm0, %v7253_v50, %v5486_v39  ;;  %v2265_v7 = vsel %vm1323_vm0, %v7257_v1, %v5487_v26  ;;  %v5951_v26 = vld [vmem:[#allocation2 + $0x40] sm:$0xff] }
 0x94c   : > { %v2276_v55 = vpack.c.bf16 %v2265_v7, %v2264_v5  ;;  %v5952_v7 = vld [vmem:[#allocation2 + $0x10] sm:$0xff] }
 0x94e   : > { %5257 = vmatprep.mubr.bf16.mxu0 %v2276_v55 }
 0x94f   : > { %v5500_v12 = vpop.permute.xlu1 %5499  ;;  %5258 = vmatmul.mubr.bf16.gmra.mxu0 %v2277_v53 }
 0x950   : > { %v5502_v22 = vunpack.i.h.bf16 %v5500_v12  ;;  %v5501_v8 = vunpack.i.l.bf16 %v5500_v12  ;;  %v5953_v12 = vld [vmem:[#allocation2 + $0x20] sm:$0xff] }
 0x951   : > { %v5495_v25 = vpop.permute.xlu0 %5494 }
 0x952   : > { %v5497_v45 = vunpack.i.h.bf16 %v5495_v25  ;;  %v5496_v44 = vunpack.i.l.bf16 %v5495_v25  ;;  %v2270_v10 = vsel %vm1323_vm0, %v7259_v33, %v5501_v8  ;;  %v2271_v50 = vsel %vm1323_vm0, %v7263_v51, %v5502_v22 }
 0x953   : > { %v2279_v18 = vpack.c.bf16 %v2271_v50, %v2270_v10  ;;  %v7441_v33 = vrot.slane %v7437_v61, %v6796_v17 }
 0x954   : > { %v2268_v1 = vsel %vm1323_vm0, %v7261_v31, %v5496_v44  ;;  %v2269_v37 = vsel %vm1323_vm0, %v7265_v30, %v5497_v45  ;;  %v5943_v30 = vld [vmem:[#allocation2 + $0x30] sm:$0xff]  ;;  %v5954_v44 = vld [vmem:[#allocation2 + $0x38] sm:$0xff] }
 0x955   : > { %v2278_v40 = vpack.c.bf16 %v2269_v37, %v2268_v1  ;;  %v5955_v1 = vld [vmem:[#allocation2 + $0x60] sm:$0xff] }
 0x957   : > { %5261 = vmatprep.mubr.bf16.mxu0 %v2278_v40 }
 0x958   : > { %5262 = vmatmul.mubr.bf16.gmra.mxu0 %v2279_v18 }
 0x959   : > { %3045 = vmatprep.mubr.bf16.mxu0 %v6241_v32 }
 0x9d0   : > { %v5251_v11 = vpop.f32.mrf.mxu0 }
 0x9d1   : > { %v2391_v47 = vadd.f32 %v5251_v11, %v7441_v33  ;;  %v5956_v11 = vld [vmem:[#allocation2 + $0x78] sm:$0xff] }
 0x9d2   : > { %v2382_v51 = vpop.f32.mrf.mxu0 }
 0x9d3   : > { %v2383_v54 = vadd.f32 %v2382_v51, %v7441_v33  ;;  %v7452_v14 = vadd.f32 %v5945_v19, %v2391_v47  ;;  %v5548_v19 = vld [vmem:[%s6556_s8 + $0xec] ss:$16 sps:$4 sm:$0xff]  }
 0x9d4   : > { %v5252_v31 = vpop.f32.mrf.mxu0  ;;  %3013 = vmatprep.subr.bf16.mxu0 %v5548_v19  ;;  %v5578_v19 = vld [vmem:[%s6556_s8 + $0x4c] ss:$16 sps:$4 sm:$0xff]  }
 0x9d5   : > { %v7445_v43 = vadd.f32 %v5943_v30, %v2383_v54  ;;  %v2394_v57 = vadd.f32 %v5252_v31, %v7441_v33  ;;  %v5957_v31 = vld [vmem:[#allocation2 + $0x70] sm:$0xff]  ;;  %v5958_v30 = vld [vmem:[#allocation2 + $0x28] sm:$0xff] }
 0x9d6   : > { %v2385_v0 = vpop.f32.mrf.mxu0 }
 0x9d7   : > { %v2386_v41 = vadd.f32 %v2385_v0, %v7441_v33  ;;  %2461 = vadd.xlane.f32.xlu0 %v7445_v43  ;;  %v7456_v59 = vadd.f32 %v5946_v56, %v2394_v57  ;;  %v5545_v57 = vld [vmem:[%s6556_s8 + $0xe4] ss:$16 sps:$4 sm:$0xff]  }
 0x9d8   : > { %2900 = vmatprep.subr.bf16.mxu1 %v5545_v57  ;;  %v5570_v57 = vld [vmem:[%s6556_s8 + $0x68] ss:$16 sps:$4 sm:$0xff]  }
 0x9d9   : > { %v7450_v52 = vadd.f32 %v5944_v3, %v2386_v41  ;;  %v5543_v41 = vld [vmem:[%s6556_s8 + $0xe0] ss:$16 sps:$4 sm:$0xff]   ;;  %v5546_v3 = vld [vmem:[%s6556_s8 + $0xe8] ss:$16 sps:$4 sm:$0xff]  }
 0x9da   : > { %2901 = vmatpush1.bf16.msra.mxu1 %v5543_v41  ;;  %3014 = vmatpush1.bf16.msra.mxu0 %v5546_v3  ;;  %v5567_v41 = vld [vmem:[%s6556_s8 + $0x60] ss:$16 sps:$4 sm:$0xff]   ;;  %v5575_v3 = vld [vmem:[%s6556_s8 + $0x44] ss:$16 sps:$4 sm:$0xff]  }
 0x9db   : > { %v5255_v27 = vpop.f32.mrf.mxu0  ;;  %2463 = vadd.xlane.f32.xlu1 %v7450_v52  ;;  %2465 = vadd.xlane.f32.xlu0 %v7452_v14 }
 0x9dc   : > { %v2407_v36 = vadd.f32 %v5255_v27, %v7441_v33 }
 0x9dd   : > { %v2398_v24 = vpop.f32.mrf.mxu0 }
 0x9de   : > { %v2399_v20 = vadd.f32 %v2398_v24, %v7441_v33  ;;  %v7468_v13 = vadd.f32 %v5949_v4, %v2407_v36 }
 0x9df   : > { %v5256_v42 = vpop.f32.mrf.mxu0  ;;  %2467 = vadd.xlane.f32.xlu0 %v7456_v59 }
 0x9e0   : > { %v7460_v29 = vadd.f32 %v5947_v48, %v2399_v20  ;;  %v2410_v2 = vadd.f32 %v5256_v42, %v7441_v33 }
 0x9e1   : > { %v2401_v63 = vpop.f32.mrf.mxu0 }
 0x9e2   : > { %v2402_v38 = vadd.f32 %v2401_v63, %v7441_v33  ;;  %v7472_v34 = vadd.f32 %v5950_v21, %v2410_v2 }
 0x9e3   : > { %2469 = vadd.xlane.f32.xlu0 %v7460_v29 }
 0x9e4   : > { %v7466_v15 = vadd.f32 %v5948_v9, %v2402_v38 }
 0x9e6   : > { %2471 = vadd.xlane.f32.xlu1 %v7466_v15 }
 0x9e7   : > { %2473 = vadd.xlane.f32.xlu0 %v7468_v13 }
 0x9ea   : > { %2475 = vadd.xlane.f32.xlu1 %v7472_v34 }
 0xa0f   : > { %v5259_v49 = vpop.f32.mrf.mxu0 }
 0xa10   : > { %v2423_v60 = vadd.f32 %v5259_v49, %v7441_v33 }
 0xa11   : > { %v2414_v6 = vpop.f32.mrf.mxu0 }
 0xa12   : > { %v2415_v35 = vadd.f32 %v2414_v6, %v7441_v33  ;;  %v7481_v55 = vadd.f32 %v5952_v7, %v2423_v60 }
 0xa13   : > { %v5260_v58 = vpop.f32.mrf.mxu0 }
 0xa14   : > { %v7477_v39 = vadd.f32 %v5951_v26, %v2415_v35  ;;  %v2426_v53 = vadd.f32 %v5260_v58, %v7441_v33 }
 0xa15   : > { %v2417_v46 = vpop.f32.mrf.mxu0 }
 0xa16   : > { %v2418_v28 = vadd.f32 %v2417_v46, %v7441_v33  ;;  %2477 = vadd.xlane.f32.xlu0 %v7477_v39  ;;  %v7489_v10 = vadd.f32 %v5954_v44, %v2426_v53  ;;  %v5549_v53 = vld [vmem:[%s6556_s8 + $0xc0] ss:$16 sps:$4 sm:$0xff]   ;;  %v5560_v44 = vld [vmem:[%s6556_s8 + $0xac] ss:$16 sps:$4 sm:$0xff]  }
 0xa18   : > { %v5263_v5 = vpop.f32.mrf.mxu0  ;;  %v7484_v22 = vadd.f32 %v5953_v12, %v2418_v28  ;;  %v5551_v28 = vld [vmem:[%s6556_s8 + $0xc4] ss:$16 sps:$4 sm:$0xff]   ;;  %v5552_v12 = vld [vmem:[%s6556_s8 + $0xc8] ss:$16 sps:$4 sm:$0xff]  }
 0xa19   : > { %v2439_v50 = vadd.f32 %v5263_v5, %v7441_v33  ;;  %v5554_v5 = vld [vmem:[%s6556_s8 + $0xcc] ss:$16 sps:$4 sm:$0xff]   ;;  %2902 = vmatprep.subr.bf16.mxu1 %v5551_v28 }
 0xa1a   : > { %v2430_v8 = vpop.f32.mrf.mxu0  ;;  %2479 = vadd.xlane.f32.xlu1 %v7484_v22  ;;  %2481 = vadd.xlane.f32.xlu0 %v7481_v55 }
 0xa1b   : > { %v2431_v25 = vadd.f32 %v2430_v8, %v7441_v33  ;;  %v7497_v51 = vadd.f32 %v5956_v11, %v2439_v50  ;;  %3015 = vmatprep.subr.bf16.mxu0 %v5554_v5  ;;  %2903 = vmatpush1.bf16.msra.mxu1 %v5549_v53  ;;  %v5555_v50 = vld [vmem:[%s6556_s8 + $0xa0] ss:$16 sps:$4 sm:$0xff]  }
 0xa1c   : > { %v5264_v45 = vpop.f32.mrf.mxu0  ;;  %3016 = vmatpush1.bf16.msra.mxu0 %v5552_v12  ;;  %v5561_v11 = vld [vmem:[%s6556_s8 + $0x80] ss:$16 sps:$4 sm:$0xff]  }
 0xa1d   : > { %v7492_v37 = vadd.f32 %v5955_v1, %v2431_v25  ;;  %v2442_v54 = vadd.f32 %v5264_v45, %v7441_v33  ;;  %v5557_v45 = vld [vmem:[%s6556_s8 + $0xa4] ss:$16 sps:$4 sm:$0xff]   ;;  %v5558_v1 = vld [vmem:[%s6556_s8 + $0xa8] ss:$16 sps:$4 sm:$0xff]   ;;  %3017 = vmatprep.subr.bf16.mxu0 %v5560_v44 }
 0xa1e   : > { %v2433_v40 = vpop.f32.mrf.mxu0  ;;  %2483 = vadd.xlane.f32.xlu1 %v7489_v10  ;;  %2904 = vmatprep.subr.bf16.mxu1 %v5557_v45 }
 0xa1f   : > { %v2434_v18 = vadd.f32 %v2433_v40, %v7441_v33  ;;  %2485 = vadd.xlane.f32.xlu0 %v7492_v37  ;;  %v7504_v0 = vadd.f32 %v5958_v30, %v2442_v54  ;;  %2905 = vmatpush1.bf16.msra.mxu1 %v5555_v50  ;;  %v5564_v54 = vld [vmem:[%s6556_s8 + $0x88] ss:$16 sps:$4 sm:$0xff]   ;;  %v5572_v30 = vld [vmem:[%s6556_s8 + $0x6c] ss:$16 sps:$4 sm:$0xff]  }
 0xa20   : > { %3018 = vmatpush1.bf16.msra.mxu0 %v5558_v1 }
 0xa21   : > { %v7500_v47 = vadd.f32 %v5957_v31, %v2434_v18  ;;  %v5566_v18 = vld [vmem:[%s6556_s8 + $0x8c] ss:$16 sps:$4 sm:$0xff]   ;;  %v5569_v31 = vld [vmem:[%s6556_s8 + $0x64] ss:$16 sps:$4 sm:$0xff]  }
 0xa22   : > { %3019 = vmatprep.subr.bf16.mxu0 %v5566_v18 }
 0xa23   : > { %2487 = vadd.xlane.f32.xlu1 %v7500_v47  ;;  %2489 = vadd.xlane.f32.xlu0 %v7497_v51 }
 0xa24   : > { %3020 = vmatpush1.bf16.msra.mxu0 %v5564_v54 }
 0xa25   : > { %3021 = vmatprep.subr.bf16.mxu0 %v5572_v30 }
 0xa27   : > { %2491 = vadd.xlane.f32.xlu1 %v7504_v0 }
 0xa28   : > { %3022 = vmatpush1.bf16.msra.mxu0 %v5570_v57 }
 0xa29   : > { %3023 = vmatprep.subr.bf16.mxu0 %v5578_v19 }
 0xa60   : > { %v2462_v33 = vpop.xlane.xlu0 %2461 }
 0xa61   : > { %v2494_v27 = vmul.f32 0.0078125, %v2462_v33  ;;  %v5573_v33 = vld [vmem:[%s6556_s8 + $0x40] ss:$16 sps:$4 sm:$0xff]  }
 0xa63   : > { %v7512_v56 = vsub.f32 %v7445_v43, %v2494_v27  ;;  %v5576_v27 = vld [vmem:[%s6556_s8 + $0x48] ss:$16 sps:$4 sm:$0xff]  }
 0xa64   : > { %v2464_v24 = vpop.xlane.xlu1 %2463  ;;  %v2466_v20 = vpop.xlane.xlu0 %2465  ;;  %3024 = vmatpush1.bf16.msra.mxu0 %v5576_v27 }
 0xa65   : > { %v2495_v42 = vmul.f32 0.0078125, %v2464_v24  ;;  %v2496_v48 = vmul.f32 0.0078125, %v2466_v20  ;;  %v2526_v36 = vmul.f32 %v7512_v56, %v7512_v56  ;;  %v5581_v24 = vld [vmem:[%s6556_s8 + $0x24] ss:$16 sps:$4 sm:$0xff]   ;;  %v5584_v20 = vld [vmem:[%s6556_s8 + $0x2c] ss:$16 sps:$4 sm:$0xff]  }
 0xa66   : > { %3025 = vmatprep.subr.bf16.mxu0 %v5584_v20 }
 0xa67   : > { %v7517_v63 = vsub.f32 %v7450_v52, %v2495_v42  ;;  %v7520_v38 = vsub.f32 %v7452_v14, %v2496_v48  ;;  %2542 = vadd.xlane.f32.xlu0 %v2526_v36  ;;  %v5579_v42 = vld [vmem:[%s6556_s8 + $0x20] ss:$16 sps:$4 sm:$0xff]   ;;  %v5582_v48 = vld [vmem:[%s6556_s8 + $0x28] ss:$16 sps:$4 sm:$0xff]   ;;  %v5587_v36 = vld [vmem:[%s6556_s8 + $0x4] ss:$16 sps:$4 sm:$0xff]  }
 0xa68   : > { %v2468_v2 = vpop.xlane.xlu0 %2467  ;;  %3026 = vmatpush1.bf16.msra.mxu0 %v5582_v48 }
 0xa69   : > { %v2497_v9 = vmul.f32 0.0078125, %v2468_v2  ;;  %v2527_v43 = vmul.f32 %v7517_v63, %v7517_v63  ;;  %v2528_v4 = vmul.f32 %v7520_v38, %v7520_v38  ;;  %v5585_v2 = vld [vmem:[%s6556_s8] ss:$16 sps:$4 sm:$0xff]  }
 0xa6b   : > { %v7527_v21 = vsub.f32 %v7456_v59, %v2497_v9  ;;  %2544 = vadd.xlane.f32.xlu1 %v2527_v43  ;;  %2546 = vadd.xlane.f32.xlu0 %v2528_v4  ;;  %v5588_v9 = vld [vmem:[%s6556_s8 + $0x8] ss:$16 sps:$4 sm:$0xff]   ;;  %v5590_v43 = vld [vmem:[%s6556_s8 + $0xc] ss:$16 sps:$4 sm:$0xff]  }
 0xa6c   : > { %v2470_v52 = vpop.xlane.xlu0 %2469  ;;  %3027 = vmatprep.subr.bf16.mxu0 %v5590_v43 }
 0xa6d   : > { %v2498_v14 = vmul.f32 0.0078125, %v2470_v52  ;;  %v2529_v49 = vmul.f32 %v7527_v21, %v7527_v21  ;;  %3028 = vmatpush1.bf16.msra.mxu0 %v5588_v9 }
 0xa6f   : > { %v7532_v6 = vsub.f32 %v7460_v29, %v2498_v14  ;;  %v2472_v35 = vpop.xlane.xlu1 %2471  ;;  %2548 = vadd.xlane.f32.xlu1 %v2529_v49 }
 0xa70   : > { %v2499_v58 = vmul.f32 0.0078125, %v2472_v35  ;;  %v2474_v60 = vpop.xlane.xlu0 %2473 }
 0xa71   : > { %v2500_v26 = vmul.f32 0.0078125, %v2474_v60  ;;  %v2530_v59 = vmul.f32 %v7532_v6, %v7532_v6 }
 0xa72   : > { %v7537_v46 = vsub.f32 %v7466_v15, %v2499_v58 }
 0xa73   : > { %v7542_v7 = vsub.f32 %v7468_v13, %v2500_v26  ;;  %v2476_v29 = vpop.xlane.xlu1 %2475  ;;  %2550 = vadd.xlane.f32.xlu0 %v2530_v59 }
 0xa74   : > { %v2501_v8 = vmul.f32 0.0078125, %v2476_v29  ;;  %v2531_v25 = vmul.f32 %v7537_v46, %v7537_v46 }
 0xa75   : > { %v2532_v15 = vmul.f32 %v7542_v7, %v7542_v7 }
 0xa76   : > { %v7551_v13 = vsub.f32 %v7472_v34, %v2501_v8  ;;  %2552 = vadd.xlane.f32.xlu1 %v2531_v25  ;;  %v5563_v34 = vld [vmem:[%s6556_s8 + $0x84] ss:$16 sps:$4 sm:$0xff]  }
 0xa77   : > { %2554 = vadd.xlane.f32.xlu0 %v2532_v15  ;;  %2906 = vmatprep.subr.bf16.mxu1 %v5563_v34 }
 0xa78   : > { %v2533_v40 = vmul.f32 %v7551_v13, %v7551_v13  ;;  %2907 = vmatpush1.bf16.msra.mxu1 %v5561_v11 }
 0xa79   : > { %2908 = vmatprep.subr.bf16.mxu1 %v5569_v31 }
 0xa7a   : > { %2556 = vadd.xlane.f32.xlu1 %v2533_v40 }
 0xa7c   : > { %2909 = vmatpush1.bf16.msra.mxu1 %v5567_v41 }
 0xa7d   : > { %2910 = vmatprep.subr.bf16.mxu1 %v5575_v3 }
 0xa80   : > { %2911 = vmatpush1.bf16.msra.mxu1 %v5573_v33 }
 0xa81   : > { %2912 = vmatprep.subr.bf16.mxu1 %v5581_v24 }
 0xa84   : > { %2913 = vmatpush1.bf16.msra.mxu1 %v5579_v42 }
 0xa85   : > { %2914 = vmatprep.subr.bf16.mxu1 %v5587_v36 }
 0xa88   : > { %2915 = vmatpush1.bf16.msra.mxu1 %v5585_v2 }
 0xa9f   : > { %v2478_v4 = vpop.xlane.xlu0 %2477 }
 0xaa0   : > { %v2502_v52 = vmul.f32 0.0078125, %v2478_v4 }
 0xaa2   : > { %v7580_v14 = vsub.f32 %v7477_v39, %v2502_v52 }
 0xaa3   : > { %v2480_v49 = vpop.xlane.xlu1 %2479  ;;  %v2482_v35 = vpop.xlane.xlu0 %2481 }
 0xaa4   : > { %v2503_v58 = vmul.f32 0.0078125, %v2480_v49  ;;  %v2504_v60 = vmul.f32 0.0078125, %v2482_v35  ;;  %v2534_v26 = vmul.f32 %v7580_v14, %v7580_v14  ;;  %v7621_v35 = vrot.slane %v7437_v61, %v6883_v23 }
 0xaa6   : > { %v7585_v59 = vsub.f32 %v7484_v22, %v2503_v58  ;;  %v7588_v28 = vsub.f32 %v7481_v55, %v2504_v60  ;;  %2558 = vadd.xlane.f32.xlu0 %v2534_v26 }
 0xaa7   : > { %v2484_v5 = vpop.xlane.xlu1 %2483 }
 0xaa8   : > { %v2486_v29 = vpop.xlane.xlu0 %2485  ;;  %v2505_v53 = vmul.f32 0.0078125, %v2484_v5  ;;  %v2535_v39 = vmul.f32 %v7585_v59, %v7585_v59  ;;  %v2536_v8 = vmul.f32 %v7588_v28, %v7588_v28 }
 0xaa9   : > { %v2506_v12 = vmul.f32 0.0078125, %v2486_v29 }
 0xaaa   : > { %v7595_v25 = vsub.f32 %v7489_v10, %v2505_v53  ;;  %2560 = vadd.xlane.f32.xlu1 %v2535_v39  ;;  %2562 = vadd.xlane.f32.xlu0 %v2536_v8 }
 0xaab   : > { %v7598_v22 = vsub.f32 %v7492_v37, %v2506_v12  ;;  %v7626_v12 = vrot.slane %v7437_v61, %v6855_v62 }
 0xaac   : > { %v2488_v55 = vpop.xlane.xlu1 %2487  ;;  %v2490_v15 = vpop.xlane.xlu0 %2489  ;;  %v2537_v50 = vmul.f32 %v7595_v25, %v7595_v25 }
 0xaad   : > { %v2507_v45 = vmul.f32 0.0078125, %v2488_v55  ;;  %v2508_v44 = vmul.f32 0.0078125, %v2490_v15  ;;  %v2538_v1 = vmul.f32 %v7598_v22, %v7598_v22 }
 0xaae   : > { %2564 = vadd.xlane.f32.xlu1 %v2537_v50 }
 0xaaf   : > { %v7605_v40 = vsub.f32 %v7500_v47, %v2507_v45  ;;  %v7608_v10 = vsub.f32 %v7497_v51, %v2508_v44  ;;  %2566 = vadd.xlane.f32.xlu0 %v2538_v1 }
 0xab0   : > { %v2492_v37 = vpop.xlane.xlu1 %2491 }
 0xab1   : > { %v2509_v34 = vmul.f32 0.0078125, %v2492_v37  ;;  %v2539_v18 = vmul.f32 %v7605_v40, %v7605_v40  ;;  %v2540_v11 = vmul.f32 %v7608_v10, %v7608_v10 }
 0xab3   : > { %v7615_v54 = vsub.f32 %v7504_v0, %v2509_v34  ;;  %2568 = vadd.xlane.f32.xlu1 %v2539_v18  ;;  %2570 = vadd.xlane.f32.xlu0 %v2540_v11 }
 0xab5   : > { %v2541_v47 = vmul.f32 %v7615_v54, %v7615_v54 }
 0xab7   : > { %2572 = vadd.xlane.f32.xlu1 %v2541_v47 }
 0xaf0   : > { %v2543_v51 = vpop.xlane.xlu0 %2542 }
 0xaf1   : > { %v2574_v31 = vmul.f32 0.0078125, %v2543_v51 }
 0xaf3   : > { %v2590_v30 = vadd.f32 1e-12, %v2574_v31 }
 0xaf4   : > { %v2545_v41 = vpop.xlane.xlu1 %2544  ;;  %v2547_v57 = vpop.xlane.xlu0 %2546 }
 0xaf5   : > { %5751 = vrsqrt.f32 %v2590_v30  ;;  %v2575_v3 = vmul.f32 0.0078125, %v2545_v41  ;;  %v2576_v19 = vmul.f32 0.0078125, %v2547_v57 }
 0xaf7   : > { %v2591_v33 = vadd.f32 1e-12, %v2575_v3  ;;  %v2592_v27 = vadd.f32 1e-12, %v2576_v19 }
 0xaf8   : > { %v2549_v24 = vpop.xlane.xlu1 %2548 }
 0xaf9   : > { %5753 = vrsqrt.f32 %v2591_v33  ;;  %v2577_v0 = vmul.f32 0.0078125, %v2549_v24 }
 0xafa   : > { %5755 = vrsqrt.f32 %v2592_v27 }
 0xafb   : > { %v2593_v20 = vadd.f32 1e-12, %v2577_v0 }
 0xafc   : > { %v2551_v42 = vpop.xlane.xlu0 %2550 }
 0xafd   : > { %5757 = vrsqrt.f32 %v2593_v20  ;;  %v2578_v48 = vmul.f32 0.0078125, %v2551_v42 }
 0xaff   : > { %v2594_v36 = vadd.f32 1e-12, %v2578_v48  ;;  %v2553_v2 = vpop.xlane.xlu1 %2552 }
 0xb00   : > { %v2579_v9 = vmul.f32 0.0078125, %v2553_v2  ;;  %v2555_v43 = vpop.xlane.xlu0 %2554 }
 0xb01   : > { %v2580_v49 = vmul.f32 0.0078125, %v2555_v43  ;;  %5759 = vrsqrt.f32 %v2594_v36 }
 0xb02   : > { %v5752_v4 = vpop.eup %5751  ;;  %v2595_v52 = vadd.f32 1e-12, %v2579_v9 }
 0xb03   : > { %v2622_v58 = vmul.f32 %v5752_v4, %v7512_v56  ;;  %v2557_v60 = vpop.xlane.xlu1 %2556  ;;  %v2596_v29 = vadd.f32 1e-12, %v2580_v49 }
 0xb04   : > { %5761 = vrsqrt.f32 %v2595_v52  ;;  %v2581_v26 = vmul.f32 0.0078125, %v2557_v60 }
 0xb05   : > { %v2642_v8 = vmul.f32 %v7621_v35, %v2622_v58 }
 0xb06   : > { %v5754_v5 = vpop.eup %5753  ;;  %v2597_v53 = vadd.f32 1e-12, %v2581_v26 }
 0xb07   : > { %v2623_v39 = vmul.f32 %v5754_v5, %v7517_v63  ;;  %v5756_v55 = vpop.eup %5755  ;;  %v7632_v45 = vadd.f32 %v7626_v12, %v2642_v8 }
 0xb08   : > { %5763 = vrsqrt.f32 %v2597_v53  ;;  %v2624_v50 = vmul.f32 %v5756_v55, %v7520_v38 }
 0xb09   : > { %v2643_v15 = vmul.f32 %v7621_v35, %v2623_v39  ;;  %5765 = vrsqrt.f32 %v2596_v29  ;;  %8882 = vst [vmem:[#allocation31_spill] sm:$0xff] %v7632_v45 }
 0xb0a   : > { %v5758_v56 = vpop.eup %5757  ;;  %v2644_v37 = vmul.f32 %v7621_v35, %v2624_v50 }
 0xb0b   : > { %v7635_v44 = vadd.f32 %v7626_v12, %v2643_v15  ;;  %v2625_v61 = vmul.f32 %v5758_v56, %v7527_v21 }
 0xb0c   : > { %v7650_v21 = vadd.f32 %v7626_v12, %v2644_v37 }
 0xb0d   : > { %8883 = vst [vmem:[#allocation32_spill] sm:$0xff] %v7635_v44  ;;  %v2678_v63 = vpack.c.bf16 %v7635_v44, %v7632_v45  ;;  %v2645_v1 = vmul.f32 %v7621_v35, %v2625_v61 }
 0xb0e   : > { %v5760_v34 = vpop.eup %5759  ;;  %8885 = vst [vmem:[#allocation34_spill] sm:$0xff] %v7650_v21 }
 0xb0f   : > { %2933 = vmatmul.mubr.bf16.vlgmr.msra.gmra.mxu1 %v2678_v63  ;;  %3046 = vmatmul.mubr.bf16.vlgmr.msra.gmra.mxu0 %v2678_v63  ;;  %v7646_v11 = vadd.f32 %v7626_v12, %v2645_v1  ;;  %v2626_v47 = vmul.f32 %v5760_v34, %v7532_v6 }
 0xb10   : > { %2942 = vmatprep.mubr.bf16.mxu1 %v6241_v32  ;;  %3055 = vmatprep.mubr.bf16.mxu0 %v6241_v32 }
 0xb11   : > { %v5762_v18 = vpop.eup %5761  ;;  %8884 = vst [vmem:[#allocation33_spill] sm:$0xff] %v7646_v11  ;;  %v2679_v51 = vpack.c.bf16 %v7646_v11, %v7650_v21  ;;  %v2646_v57 = vmul.f32 %v7621_v35, %v2626_v47 }
 0xb12   : > { %v2627_v38 = vmul.f32 %v5762_v18, %v7537_v46 }
 0xb13   : > { %v7664_v3 = vadd.f32 %v7626_v12, %v2646_v57 }
 0xb14   : > { %v2647_v31 = vmul.f32 %v7621_v35, %v2627_v38 }
 0xb15   : > { %v5764_v30 = vpop.eup %5763  ;;  %8887 = vst [vmem:[#allocation36_spill] sm:$0xff] %v7664_v3 }
 0xb16   : > { %v5766_v41 = vpop.eup %5765  ;;  %v7660_v46 = vadd.f32 %v7626_v12, %v2647_v31  ;;  %v2629_v6 = vmul.f32 %v5764_v30, %v7551_v13 }
 0xb17   : > { %2943 = vmatmul.mubr.bf16.gmra.mxu1 %v2679_v51  ;;  %3056 = vmatmul.mubr.bf16.gmra.mxu0 %v2679_v51  ;;  %v2628_v19 = vmul.f32 %v5766_v41, %v7542_v7 }
 0xb18   : > { %2952 = vmatprep.mubr.bf16.mxu1 %v6241_v32  ;;  %3065 = vmatprep.mubr.bf16.mxu0 %v6241_v32  ;;  %8886 = vst [vmem:[#allocation35_spill] sm:$0xff] %v7660_v46  ;;  %v2680_v33 = vpack.c.bf16 %v7660_v46, %v7664_v3  ;;  %v2649_v27 = vmul.f32 %v7621_v35, %v2629_v6 }
 0xb19   : > { %v2648_v24 = vmul.f32 %v7621_v35, %v2628_v19 }
 0xb1a   : > { %v7674_v13 = vadd.f32 %v7626_v12, %v2649_v27 }
 0xb1b   : > { %v7677_v0 = vadd.f32 %v7626_v12, %v2648_v24 }
 0xb1c   : > { %8888 = vst [vmem:[#allocation37_spill] sm:$0xff] %v7674_v13 }
 0xb1d   : > { %8889 = vst [vmem:[#allocation38_spill] sm:$0xff] %v7677_v0  ;;  %v2681_v7 = vpack.c.bf16 %v7674_v13, %v7677_v0 }
 0xb1f   : > { %2953 = vmatmul.mubr.bf16.gmra.mxu1 %v2680_v33  ;;  %3066 = vmatmul.mubr.bf16.gmra.mxu0 %v2680_v33 }
 0xb20   : > { %2962 = vmatprep.mubr.bf16.mxu1 %v6241_v32  ;;  %3075 = vmatprep.mubr.bf16.mxu0 %v6241_v32 }
 0xb27   : > { %2963 = vmatmul.mubr.bf16.gmra.mxu1 %v2681_v7  ;;  %3076 = vmatmul.mubr.bf16.gmra.mxu0 %v2681_v7 }
 0xb28   : > { %2972 = vmatprep.mubr.bf16.mxu1 %v6241_v32  ;;  %3085 = vmatprep.mubr.bf16.mxu0 %v6241_v32 }
 0xb2f   : > { %v2559_v20 = vpop.xlane.xlu0 %2558 }
 0xb30   : > { %v2582_v42 = vmul.f32 0.0078125, %v2559_v20 }
 0xb32   : > { %v2598_v48 = vadd.f32 1e-12, %v2582_v42 }
 0xb33   : > { %v2561_v36 = vpop.xlane.xlu1 %2560  ;;  %v2563_v2 = vpop.xlane.xlu0 %2562 }
 0xb34   : > { %5767 = vrsqrt.f32 %v2598_v48  ;;  %v2583_v9 = vmul.f32 0.0078125, %v2561_v36  ;;  %v2584_v43 = vmul.f32 0.0078125, %v2563_v2 }
 0xb36   : > { %v2599_v4 = vadd.f32 1e-12, %v2583_v9  ;;  %v2600_v52 = vadd.f32 1e-12, %v2584_v43 }
 0xb37   : > { %v2565_v49 = vpop.xlane.xlu1 %2564 }
 0xb38   : > { %v2567_v58 = vpop.xlane.xlu0 %2566  ;;  %5769 = vrsqrt.f32 %v2599_v4  ;;  %v2585_v60 = vmul.f32 0.0078125, %v2565_v49  ;;  %v5591_v49 = vld [vmem:[%s6587_s9 + $0x78] sm:$0xff]  }
 0xb39   : > { %5771 = vrsqrt.f32 %v2600_v52  ;;  %v2586_v5 = vmul.f32 0.0078125, %v2567_v58  ;;  %4945 = vmatprep.subr.bf16.mxu1 %v5591_v49 }
 0xb3a   : > { %v2601_v26 = vadd.f32 1e-12, %v2585_v60  ;;  %v5592_v60 = vld [vmem:[%s6587_s9 + $0x38] sm:$0xff]  }
 0xb3b   : > { %v2602_v39 = vadd.f32 1e-12, %v2586_v5  ;;  %4946 = vmatpush3.bf16.msra.mxu1 %v5592_v60  ;;  %v5595_v5 = vld [vmem:[%s6587_s9 + $0x70] sm:$0xff]  }
 0xb3c   : > { %v2569_v29 = vpop.xlane.xlu1 %2568  ;;  %5773 = vrsqrt.f32 %v2601_v26  ;;  %v2571_v55 = vpop.xlane.xlu0 %2570  ;;  %v7738_v26 = vld [vmem:[%s6587_s9 + $0xb8] sm:$0xff]   ;;  %4947 = vmatprep.subr.bf16.mxu1 %v5595_v5 }
 0xb3d   : > { %v2587_v53 = vmul.f32 0.0078125, %v2569_v29  ;;  %v2588_v61 = vmul.f32 0.0078125, %v2571_v55  ;;  %v7749_v29 = vld [vmem:[%s6587_s9 + $0xf0] sm:$0xff]   ;;  %v5601_v55 = vld [vmem:[%s6587_s9 + $0x28] sm:$0xff]  }
 0xb3f   : > { %v2603_v8 = vadd.f32 1e-12, %v2587_v53  ;;  %v2604_v34 = vadd.f32 1e-12, %v2588_v61  ;;  %v5597_v53 = vld [vmem:[%s6587_s9 + $0x30] sm:$0xff]   ;;  %v5605_v61 = vld [vmem:[%s6587_s9 + $0x20] sm:$0xff]  }
 0xb40   : > { %v2573_v15 = vpop.xlane.xlu1 %2572  ;;  %4948 = vmatpush3.bf16.msra.mxu1 %v5597_v53 }
 0xb41   : > { %5775 = vrsqrt.f32 %v2603_v8  ;;  %v2589_v56 = vmul.f32 0.0078125, %v2573_v15  ;;  %v5768_v50 = vpop.eup %5767  ;;  %v7759_v8 = vld [vmem:[%s6587_s9 + $0xe8] sm:$0xff]  }
 0xb42   : > { %5777 = vrsqrt.f32 %v2602_v39  ;;  %v2630_v63 = vmul.f32 %v5768_v50, %v7580_v14  ;;  %v7753_v39 = vld [vmem:[%s6587_s9 + $0xb0] sm:$0xff]   ;;  %v7763_v15 = vld [vmem:[%s6587_s9 + $0xa8] sm:$0xff]   ;;  %v7769_v50 = vld [vmem:[%s6587_s9 + $0xe0] sm:$0xff]  }
 0xb43   : > { %v2605_v1 = vadd.f32 1e-12, %v2589_v56  ;;  %8898 = vst [vmem:[#allocation47_spill] sm:$0xff] %v7763_v15  ;;  %v5603_v56 = vld [vmem:[%s6587_s9 + $0x60] sm:$0xff]   ;;  %8899 = vst [vmem:[#allocation48_spill] sm:$0xff] %v7769_v50 }
 0xb44   : > { %v2650_v38 = vmul.f32 %v7621_v35, %v2630_v63  ;;  %v7773_v63 = vld [vmem:[%s6587_s9 + $0xa0] sm:$0xff]  }
 0xb45   : > { %v5770_v37 = vpop.eup %5769  ;;  %5779 = vrsqrt.f32 %v2605_v1  ;;  %8900 = vst [vmem:[#allocation49_spill] sm:$0xff] %v7773_v63  ;;  %v5607_v1 = vld [vmem:[%s6587_s9 + $0x58] sm:$0xff]  }
 0xb46   : > { %v2631_v18 = vmul.f32 %v5770_v37, %v7585_v59  ;;  %v5772_v47 = vpop.eup %5771  ;;  %5781 = vrsqrt.f32 %v2604_v34  ;;  %v7688_v30 = vadd.f32 %v7626_v12, %v2650_v38  ;;  %v7779_v37 = vld [vmem:[%s6587_s9 + $0xd8] sm:$0xff]   ;;  %v5611_v38 = vld [vmem:[%s6587_s9 + $0x50] sm:$0xff]  }
 0xb47   : > { %v2632_v14 = vmul.f32 %v5772_v47, %v7588_v28  ;;  %8901 = vst [vmem:[#allocation50_spill] sm:$0xff] %v7779_v37  ;;  %v5609_v34 = vld [vmem:[%s6587_s9 + $0x18] sm:$0xff]   ;;  %v7789_v47 = vld [vmem:[%s6587_s9 + $0xd0] sm:$0xff]  }
 0xb48   : > { %v2651_v51 = vmul.f32 %v7621_v35, %v2631_v18  ;;  %8890 = vst [vmem:[#allocation39_spill] sm:$0xff] %v7688_v30  ;;  %v7783_v18 = vld [vmem:[%s6587_s9 + $0x98] sm:$0xff]   ;;  %8903 = vst [vmem:[#allocation52_spill] sm:$0xff] %v7789_v47 }
 0xb49   : > { %v5774_v31 = vpop.eup %5773  ;;  %v2652_v33 = vmul.f32 %v7621_v35, %v2632_v14  ;;  %8902 = vst [vmem:[#allocation51_spill] sm:$0xff] %v7783_v18  ;;  %v5615_v14 = vld [vmem:[%s6587_s9 + $0x48] sm:$0xff]  }
 0xb4a   : > { %v7691_v41 = vadd.f32 %v7626_v12, %v2651_v51  ;;  %v2633_v57 = vmul.f32 %v5774_v31, %v7595_v25  ;;  %v5613_v51 = vld [vmem:[%s6587_s9 + $0x10] sm:$0xff]  }
 0xb4b   : > { %v7706_v25 = vadd.f32 %v7626_v12, %v2652_v33  ;;  %v7793_v31 = vld [vmem:[%s6587_s9 + $0x90] sm:$0xff]   ;;  %v7809_v33 = vld [vmem:[%s6587_s9 + $0xc0] sm:$0xff]  }
 0xb4c   : > { %8891 = vst [vmem:[#allocation40_spill] sm:$0xff] %v7691_v41  ;;  %v2682_v59 = vpack.c.bf16 %v7691_v41, %v7688_v30  ;;  %v2653_v6 = vmul.f32 %v7621_v35, %v2633_v57  ;;  %8904 = vst [vmem:[#allocation53_spill] sm:$0xff] %v7793_v31  ;;  %v7799_v57 = vld [vmem:[%s6587_s9 + $0xc8] sm:$0xff]  }
 0xb4d   : > { %8893 = vst [vmem:[#allocation42_spill] sm:$0xff] %v7706_v25  ;;  %8905 = vst [vmem:[#allocation54_spill] sm:$0xff] %v7799_v57 }
 0xb4e   : > { %v5776_v19 = vpop.eup %5775  ;;  %2973 = vmatmul.mubr.bf16.gmra.mxu1 %v2682_v59  ;;  %3086 = vmatmul.mubr.bf16.gmra.mxu0 %v2682_v59  ;;  %v7702_v24 = vadd.f32 %v7626_v12, %v2653_v6  ;;  %v5617_v59 = vld [vmem:[%s6587_s9 + $0x8] sm:$0xff]   ;;  %8907 = vst [vmem:[#allocation56_spill] sm:$0xff] %v7809_v33 }
 0xb4f   : > { %v5778_v27 = vpop.eup %5777  ;;  %2982 = vmatprep.mubr.bf16.mxu1 %v6241_v32  ;;  %3095 = vmatprep.mubr.bf16.mxu0 %v6241_v32  ;;  %v2635_v28 = vmul.f32 %v5776_v19, %v7605_v40  ;;  %v7803_v6 = vld [vmem:[%s6587_s9 + $0x88] sm:$0xff]   ;;  %v5619_v19 = vld [vmem:[%s6587_s9 + $0x40] sm:$0xff]  }
 0xb50   : > { %8892 = vst [vmem:[#allocation41_spill] sm:$0xff] %v7702_v24  ;;  %v2634_v7 = vmul.f32 %v5778_v27, %v7598_v22  ;;  %v2683_v20 = vpack.c.bf16 %v7702_v24, %v7706_v25  ;;  %8906 = vst [vmem:[#allocation55_spill] sm:$0xff] %v7803_v6  ;;  %v5621_v27 = vld [vmem:[%s6587_s9] sm:$0xff]  }
 0xb51   : > { %v2655_v42 = vmul.f32 %v7621_v35, %v2635_v28  ;;  %v7813_v28 = vld [vmem:[%s6587_s9 + $0x80] sm:$0xff]  }
 0xb52   : > { %v5780_v48 = vpop.eup %5779  ;;  %v2654_v2 = vmul.f32 %v7621_v35, %v2634_v7  ;;  %8908 = vst [vmem:[#allocation57_spill] sm:$0xff] %v7813_v28  ;;  %v2718_v7 = vld [vmem:[%s6575_s19] sm:$0xf] }
 0xb53   : > { %v5782_v36 = vpop.eup %5781  ;;  %v7716_v22 = vadd.f32 %v7626_v12, %v2655_v42  ;;  %v2637_v40 = vmul.f32 %v5780_v48, %v7615_v54  ;;  %v7731_v54 = vld [vmem:[%s6587_s9 + $0xf8] sm:$0xff]   ;;  %v7821_v42 = vrot.slane %v2718_v7, %v6796_v17  ;;  %v7824_v48 = vrot.slane %v2718_v7, %v6855_v62 }
 0xb54   : > { %v7720_v9 = vadd.f32 %v7626_v12, %v2654_v2  ;;  %v2636_v43 = vmul.f32 %v5782_v36, %v7608_v10  ;;  %5009 = vmatprep.subr.bf16.mxu0 %v7731_v54  ;;  %v7827_v36 = vrot.slane %v2718_v7, %v6883_v23 }
 0xb55   : > { %8894 = vst [vmem:[#allocation43_spill] sm:$0xff] %v7716_v22  ;;  %v2657_v52 = vmul.f32 %v7621_v35, %v2637_v40  ;;  %5010 = vmatpush3.bf16.msra.mxu0 %v7738_v26  ;;  %8909 = vst [vmem:[#allocation58_spill] sm:$0xff] %v7821_v42 }
 0xb56   : > { %2983 = vmatmul.mubr.bf16.gmra.mxu1 %v2683_v20  ;;  %3096 = vmatmul.mubr.bf16.gmra.mxu0 %v2683_v20  ;;  %8895 = vst [vmem:[#allocation44_spill] sm:$0xff] %v7720_v9  ;;  %v2684_v4 = vpack.c.bf16 %v7716_v22, %v7720_v9  ;;  %v2656_v58 = vmul.f32 %v7621_v35, %v2636_v43  ;;  %v8782_v20 = vsub.s32 3, %v6793_v16  ;;  %8910 = vst [vmem:[#allocation59_spill] sm:$0xff] %v7824_v48 }
 0xb57   : > { %2992 = vmatprep.mubr.bf16.mxu1 %v6241_v32  ;;  %3105 = vmatprep.mubr.bf16.mxu0 %v6241_v32  ;;  %v7734_v10 = vadd.f32 %v7626_v12, %v2657_v52  ;;  %8911 = vst [vmem:[#allocation60_spill] sm:$0xff] %v7827_v36 }
 0xb58   : > { %v7742_v35 = vadd.f32 %v7626_v12, %v2656_v58  ;;  %5011 = vmatprep.subr.bf16.mxu0 %v7749_v29  ;;  %v5599_v12 = vld [vmem:[%s6587_s9 + $0x68] sm:$0xff]   ;;  %v7831_v2 = vrot.slane %v2718_v7, %v8782_v20 }
 0xb59   : > { %8896 = vst [vmem:[#allocation45_spill] sm:$0xff] %v7734_v10  ;;  %5012 = vmatpush3.bf16.msra.mxu0 %v7753_v39  ;;  %4949 = vmatprep.subr.bf16.mxu1 %v5599_v12 }
 0xb5a   : > { %8897 = vst [vmem:[#allocation46_spill] sm:$0xff] %v7742_v35  ;;  %5013 = vmatprep.subr.bf16.mxu0 %v7759_v8  ;;  %4950 = vmatpush3.bf16.msra.mxu1 %v5601_v55 }
 0xb5b   : > { %4951 = vmatprep.subr.bf16.mxu1 %v5603_v56 }
 0xb5d   : > { %5014 = vmatpush3.bf16.msra.mxu0 %v7763_v15 }
 0xb5e   : > { %2993 = vmatmul.mubr.bf16.gmra.mxu1 %v2684_v4  ;;  %3106 = vmatmul.mubr.bf16.gmra.mxu0 %v2684_v4 }
 0xb5f   : > { %3002 = vmatprep.mubr.bf16.mxu1 %v6241_v32  ;;  %3115 = vmatprep.mubr.bf16.mxu0 %v6241_v32  ;;  %v2685_v32 = vpack.c.bf16 %v7734_v10, %v7742_v35 }
 0xb60   : > { %5015 = vmatprep.subr.bf16.mxu0 %v7769_v50  ;;  %4952 = vmatpush3.bf16.msra.mxu1 %v5605_v61 }
 0xb61   : > { %5016 = vmatpush3.bf16.msra.mxu0 %v7773_v63  ;;  %4953 = vmatprep.subr.bf16.mxu1 %v5607_v1 }
 0xb62   : > { %5017 = vmatprep.subr.bf16.mxu0 %v7779_v37 }
 0xb64   : > { %4954 = vmatpush3.bf16.msra.mxu1 %v5609_v34 }
 0xb65   : > { %5018 = vmatpush3.bf16.msra.mxu0 %v7783_v18  ;;  %4955 = vmatprep.subr.bf16.mxu1 %v5611_v38 }
 0xb66   : > { %3003 = vmatmul.mubr.bf16.gmra.mxu1 %v2685_v32  ;;  %3116 = vmatmul.mubr.bf16.gmra.mxu0 %v2685_v32 }
 0xb67   : > { %5019 = vmatprep.subr.bf16.mxu0 %v7789_v47 }
 0xb68   : > { %4956 = vmatpush3.bf16.msra.mxu1 %v5613_v51 }
 0xb69   : > { %5020 = vmatpush3.bf16.msra.mxu0 %v7793_v31  ;;  %4957 = vmatprep.subr.bf16.mxu1 %v5615_v14 }
 0xb6a   : > { %5021 = vmatprep.subr.bf16.mxu0 %v7799_v57 }
 0xb6c   : > { %4958 = vmatpush3.bf16.msra.mxu1 %v5617_v59 }
 0xb6d   : > { %5022 = vmatpush3.bf16.msra.mxu0 %v7803_v6  ;;  %4959 = vmatprep.subr.bf16.mxu1 %v5619_v19 }
 0xb6e   : > { %5023 = vmatprep.subr.bf16.mxu0 %v7809_v33 }
 0xb70   : > { %4960 = vmatpush3.bf16.msra.mxu1 %v5621_v27 }
 0xb71   : > { %5024 = vmatpush3.bf16.msra.mxu0 %v7813_v28  ;;  %5265 = vmatprep.subr.bf16.mxu1 %v7731_v54 }
 0xbcf   : > { %v2934_v40 = vpop.f32.mrf.mxu1  ;;  %v3047_v43 = vpop.f32.mrf.mxu0 }
 0xbd0   : > { %v7834_v4 = vadd.f32 %v2934_v40, %v7821_v42  ;;  %v7837_v52 = vadd.f32 %v3047_v43, %v7824_v48 }
 0xbd1   : > { %v2936_v17 = vpop.f32.mrf.mxu1  ;;  %v3049_v49 = vpop.f32.mrf.mxu0 }
 0xbd2   : > { %v3126_v62 = vmul.f32 %v7834_v4, %v7834_v4  ;;  %v3128_v23 = vmul.f32 %v7837_v52, %v7837_v52  ;;  %v7844_v58 = vadd.f32 %v2936_v17, %v7827_v36  ;;  %v7847_v54 = vadd.f32 %v3049_v49, %v7831_v2 }
 0xbd3   : > { %v2938_v60 = vpop.f32.mrf.mxu1  ;;  %v3051_v32 = vpop.f32.mrf.mxu0 }
 0xbd4   : > { %v3190_v5 = vmul.f32 %v3126_v62, %v7834_v4  ;;  %v3192_v53 = vmul.f32 %v3128_v23, %v7837_v52  ;;  %v3127_v12 = vmul.f32 %v7844_v58, %v7844_v58  ;;  %v3129_v55 = vmul.f32 %v7847_v54, %v7847_v54 }
 0xbd5   : > { %v7856_v56 = vadd.f32 %v2938_v60, %v7821_v42  ;;  %v7859_v61 = vadd.f32 %v3051_v32, %v7824_v48  ;;  %v2940_v1 = vpop.f32.mrf.mxu1  ;;  %v3053_v34 = vpop.f32.mrf.mxu0 }
 0xbd6   : > { %v3254_v38 = vmul.f32 0.044715, %v3190_v5  ;;  %v3256_v51 = vmul.f32 0.044715, %v3192_v53  ;;  %v3191_v14 = vmul.f32 %v3127_v12, %v7844_v58  ;;  %v3193_v59 = vmul.f32 %v3129_v55, %v7847_v54 }
 0xbd7   : > { %v3130_v19 = vmul.f32 %v7856_v56, %v7856_v56  ;;  %v3132_v27 = vmul.f32 %v7859_v61, %v7859_v61  ;;  %v7868_v7 = vadd.f32 %v2940_v1, %v7827_v36  ;;  %v7871_v40 = vadd.f32 %v3053_v34, %v7831_v2  ;;  %v2944_v43 = vpop.f32.mrf.mxu1  ;;  %v3057_v17 = vpop.f32.mrf.mxu0 }
 0xbd8   : > { %v3318_v49 = vadd.f32 %v3254_v38, %v7834_v4  ;;  %v3320_v62 = vadd.f32 %v3256_v51, %v7837_v52  ;;  %v3255_v23 = vmul.f32 0.044715, %v3191_v14  ;;  %v3257_v60 = vmul.f32 0.044715, %v3193_v59 }
 0xbd9   : > { %v3194_v32 = vmul.f32 %v3130_v19, %v7856_v56  ;;  %v3196_v5 = vmul.f32 %v3132_v27, %v7859_v61  ;;  %v3131_v53 = vmul.f32 %v7868_v7, %v7868_v7  ;;  %v3133_v12 = vmul.f32 %v7871_v40, %v7871_v40  ;;  %v2946_v34 = vpop.f32.mrf.mxu1  ;;  %v3059_v14 = vpop.f32.mrf.mxu0 }
 0xbda   : > { %v3382_v55 = vmul.f32 0.7978846, %v3318_v49  ;;  %v3384_v1 = vmul.f32 0.7978846, %v3320_v62  ;;  %v3319_v59 = vadd.f32 %v3255_v23, %v7844_v58  ;;  %v7885_v19 = vadd.f32 %v2944_v43, %v7821_v42 }
 0xbdb   : > { %v3258_v20 = vmul.f32 0.044715, %v3194_v32  ;;  %v3260_v10 = vmul.f32 0.044715, %v3196_v5  ;;  %v3195_v38 = vmul.f32 %v3131_v53, %v7868_v7  ;;  %v3197_v51 = vmul.f32 %v3133_v12, %v7871_v40  ;;  %v2948_v12 = vpop.f32.mrf.mxu1  ;;  %v3061_v35 = vpop.f32.mrf.mxu0 }
 0xbdc   : > { %5783 = vtanh.f32 %v3382_v55  ;;  %v3321_v27 = vadd.f32 %v3257_v60, %v7847_v54  ;;  %v3134_v5 = vmul.f32 %v7885_v19, %v7885_v19  ;;  %v7893_v53 = vadd.f32 %v3057_v17, %v7824_v48 }
 0xbdd   : > { %5785 = vtanh.f32 %v3384_v1  ;;  %v3322_v49 = vadd.f32 %v3258_v20, %v7856_v56  ;;  %v3324_v62 = vadd.f32 %v3260_v10, %v7859_v61  ;;  %v3259_v32 = vmul.f32 0.044715, %v3195_v38 }
 0xbde   : > { %v3261_v23 = vmul.f32 0.044715, %v3197_v51  ;;  %v3198_v1 = vmul.f32 %v3134_v5, %v7885_v19  ;;  %v3136_v60 = vmul.f32 %v7893_v53, %v7893_v53  ;;  %v7899_v20 = vadd.f32 %v2946_v34, %v7827_v36  ;;  %v2950_v5 = vpop.f32.mrf.mxu1 }
 0xbdf   : > { %v3386_v55 = vmul.f32 0.7978846, %v3322_v49  ;;  %v3388_v43 = vmul.f32 0.7978846, %v3324_v62  ;;  %v3383_v10 = vmul.f32 0.7978846, %v3319_v59  ;;  %v7902_v22 = vadd.f32 %v3059_v14, %v7831_v2 }
 0xbe0   : > { %v3385_v38 = vmul.f32 0.7978846, %v3321_v27  ;;  %v7905_v17 = vadd.f32 %v2948_v12, %v7821_v42  ;;  %v3323_v51 = vadd.f32 %v3259_v32, %v7868_v7  ;;  %v3262_v49 = vmul.f32 0.044715, %v3198_v1  ;;  %v3063_v27 = vpop.f32.mrf.mxu0 }
 0xbe1   : > { %5787 = vtanh.f32 %v3386_v55  ;;  %v3200_v62 = vmul.f32 %v3136_v60, %v7893_v53  ;;  %v3325_v9 = vadd.f32 %v3261_v23, %v7871_v40  ;;  %v3135_v34 = vmul.f32 %v7899_v20, %v7899_v20 }
 0xbe2   : > { %v3137_v59 = vmul.f32 %v7902_v22, %v7902_v22  ;;  %v3138_v14 = vmul.f32 %v7905_v17, %v7905_v17  ;;  %5789 = vtanh.f32 %v3388_v43  ;;  %v3326_v12 = vadd.f32 %v3262_v49, %v7885_v19 }
 0xbe3   : > { %v3264_v32 = vmul.f32 0.044715, %v3200_v62  ;;  %v7918_v55 = vadd.f32 %v3061_v35, %v7824_v48  ;;  %v3199_v1 = vmul.f32 %v3135_v34, %v7899_v20  ;;  %v7924_v24 = vadd.f32 %v2950_v5, %v7827_v36  ;;  %v2954_v35 = vpop.f32.mrf.mxu1 }
 0xbe4   : > { %v3201_v23 = vmul.f32 %v3137_v59, %v7902_v22  ;;  %v3202_v60 = vmul.f32 %v3138_v14, %v7905_v17  ;;  %5791 = vtanh.f32 %v3383_v10  ;;  %v7930_v49 = vadd.f32 %v3063_v27, %v7831_v2 }
 0xbe5   : > { %v3328_v25 = vadd.f32 %v3264_v32, %v7893_v53  ;;  %v3140_v43 = vmul.f32 %v7918_v55, %v7918_v55  ;;  %v3263_v62 = vmul.f32 0.044715, %v3199_v1  ;;  %v3139_v59 = vmul.f32 %v7924_v24, %v7924_v24 }
 0xbe6   : > { %v3265_v41 = vmul.f32 0.044715, %v3201_v23  ;;  %v3266_v34 = vmul.f32 0.044715, %v3202_v60  ;;  %v3387_v14 = vmul.f32 0.7978846, %v3323_v51  ;;  %v3141_v10 = vmul.f32 %v7930_v49, %v7930_v49  ;;  %v3067_v23 = vpop.f32.mrf.mxu0 }
 0xbe7   : > { %v3389_v30 = vmul.f32 0.7978846, %v3325_v9  ;;  %v3204_v5 = vmul.f32 %v3140_v43, %v7918_v55  ;;  %v3390_v13 = vmul.f32 0.7978846, %v3326_v12  ;;  %v3327_v0 = vadd.f32 %v3263_v62, %v7899_v20  ;;  %v2956_v9 = vpop.f32.mrf.mxu1 }
 0xbe8   : > { %v3329_v27 = vadd.f32 %v3265_v41, %v7902_v22  ;;  %v3203_v1 = vmul.f32 %v3139_v59, %v7924_v24  ;;  %5793 = vtanh.f32 %v3385_v38  ;;  %v3392_v3 = vmul.f32 0.7978846, %v3328_v25  ;;  %v3069_v38 = vpop.f32.mrf.mxu0 }
 0xbe9   : > { %v5784_v32 = vpop.eup %5783  ;;  %v3268_v51 = vmul.f32 0.044715, %v3204_v5  ;;  %v3330_v43 = vadd.f32 %v3266_v34, %v7905_v17  ;;  %v3205_v21 = vmul.f32 %v3141_v10, %v7930_v49  ;;  %v7943_v12 = vadd.f32 %v2954_v35, %v7821_v42  ;;  %v2958_v34 = vpop.f32.mrf.mxu1 }
 0xbea   : > { %v5786_v60 = vpop.eup %5785  ;;  %v3510_v46 = vadd.f32 1.0, %v5784_v32  ;;  %5795 = vtanh.f32 %v3387_v14  ;;  %v3391_v41 = vmul.f32 0.7978846, %v3327_v0  ;;  %v3393_v44 = vmul.f32 0.7978846, %v3329_v27 }
 0xbeb   : > { %v3512_v11 = vadd.f32 1.0, %v5786_v60  ;;  %8912 = vst [vmem:[#allocation61_spill] sm:$0xff] %v7943_v12  ;;  %v3332_v59 = vadd.f32 %v3268_v51, %v7918_v55  ;;  %5797 = vtanh.f32 %v3389_v30  ;;  %v3267_v32 = vmul.f32 0.044715, %v3203_v1 }
 0xbec   : > { %v3574_v62 = vmul.f32 0.5, %v3510_v46  ;;  %v3142_v25 = vmul.f32 %v7943_v12, %v7943_v12  ;;  %5799 = vtanh.f32 %v3390_v13  ;;  %v3394_v10 = vmul.f32 0.7978846, %v3330_v43  ;;  %v2960_v43 = vpop.f32.mrf.mxu1 }
 0xbed   : > { %v3576_v5 = vmul.f32 0.5, %v3512_v11  ;;  %5801 = vtanh.f32 %v3392_v3  ;;  %v3269_v35 = vmul.f32 0.044715, %v3205_v21  ;;  %v3396_v0 = vmul.f32 0.7978846, %v3332_v59  ;;  %v3071_v3 = vpop.f32.mrf.mxu0 }
 0xbee   : > { %v5788_v60 = vpop.eup %5787  ;;  %v7949_v46 = vmul.f32 %v3574_v62, %v7834_v4  ;;  %5803 = vtanh.f32 %v3391_v41  ;;  %v3206_v30 = vmul.f32 %v3142_v25, %v7943_v12  ;;  %v3331_v27 = vadd.f32 %v3267_v32, %v7924_v24 }
 0xbef   : > { %v5790_v14 = vpop.eup %5789  ;;  %5805 = vtanh.f32 %v3393_v44  ;;  %v7954_v1 = vadd.f32 %v3067_v23, %v7824_v48  ;;  %v7957_v11 = vadd.f32 %v2956_v9, %v7827_v36  ;;  %v7960_v21 = vmul.f32 %v3576_v5, %v7837_v52 }
 0xbf0   : > { %v3514_v13 = vadd.f32 1.0, %v5788_v60  ;;  %v3270_v4 = vmul.f32 0.044715, %v3206_v30  ;;  %v7963_v51 = vadd.f32 %v3069_v38, %v7831_v2  ;;  %5807 = vtanh.f32 %v3394_v10  ;;  %v3073_v60 = vpop.f32.mrf.mxu0 }
 0xbf1   : > { %8913 = vst [vmem:[#allocation62_spill] sm:$0xff] %v7954_v1  ;;  %v7965_v62 = vpop.eup %5791  ;;  %v3333_v44 = vadd.f32 %v3269_v35, %v7930_v49  ;;  %v3144_v23 = vmul.f32 %v7954_v1, %v7954_v1  ;;  %v3143_v9 = vmul.f32 %v7957_v11, %v7957_v11  ;;  %v3516_v41 = vadd.f32 1.0, %v5790_v14  ;;  %v2964_v14 = vpop.f32.mrf.mxu1 }
 0xbf2   : > { %5809 = vtanh.f32 %v3396_v0  ;;  %v3145_v52 = vmul.f32 %v7963_v51, %v7963_v51  ;;  %v7975_v59 = vadd.f32 %v2958_v34, %v7821_v42  ;;  %v3395_v32 = vmul.f32 0.7978846, %v3331_v27  ;;  %v3077_v6 = vpop.f32.mrf.mxu0 }
 0xbf3   : > { %v3208_v25 = vmul.f32 %v3144_v23, %v7954_v1  ;;  %v3207_v38 = vmul.f32 %v3143_v9, %v7957_v11  ;;  %v7980_v5 = vadd.f32 %v3071_v3, %v7824_v48  ;;  %v3578_v10 = vmul.f32 0.5, %v3514_v13 }
 0xbf4   : > { %8914 = vst [vmem:[#allocation63_spill] sm:$0xff] %v7975_v59  ;;  %v3334_v35 = vadd.f32 %v3270_v4, %v7943_v12  ;;  %v3209_v0 = vmul.f32 %v3145_v52, %v7963_v51  ;;  %v3146_v30 = vmul.f32 %v7975_v59, %v7975_v59  ;;  %v7991_v3 = vadd.f32 %v2960_v43, %v7827_v36 }
 0xbf5   : > { %8915 = vst [vmem:[#allocation64_spill] sm:$0xff] %v7980_v5  ;;  %v7986_v34 = vpop.eup %5793  ;;  %v3272_v27 = vmul.f32 0.044715, %v3208_v25  ;;  %v3271_v45 = vmul.f32 0.044715, %v3207_v38  ;;  %v3148_v23 = vmul.f32 %v7980_v5, %v7980_v5  ;;  %v3580_v9 = vmul.f32 0.5, %v3516_v41 }
 0xbf6   : > { %v3397_v13 = vmul.f32 0.7978846, %v3333_v44  ;;  %v3273_v16 = vmul.f32 0.044715, %v3209_v0  ;;  %v3210_v4 = vmul.f32 %v3146_v30, %v7975_v59  ;;  %v3147_v38 = vmul.f32 %v7991_v3, %v7991_v3  ;;  %v2966_v30 = vpop.f32.mrf.mxu1 }
 0xbf7   : > { %v7994_v52 = vpop.eup %5795  ;;  %v3336_v28 = vadd.f32 %v3272_v27, %v7954_v1  ;;  %v3335_v33 = vadd.f32 %v3271_v45, %v7957_v11  ;;  %v3212_v25 = vmul.f32 %v3148_v23, %v7980_v5  ;;  %v8004_v43 = vmul.f32 %v3578_v10, %v7856_v56 }
 0xbf8   : > { %v8001_v57 = vpop.eup %5797  ;;  %v3337_v44 = vadd.f32 %v3273_v16, %v7963_v51  ;;  %v3274_v41 = vmul.f32 0.044715, %v3210_v4  ;;  %v8008_v0 = vadd.f32 %v3073_v60, %v7831_v2  ;;  %5811 = vtanh.f32 %v3395_v32  ;;  %v2968_v63 = vpop.f32.mrf.mxu1 }
 0xbf9   : > { %v8010_v27 = vpop.eup %5799  ;;  %v3398_v45 = vmul.f32 0.7978846, %v3334_v35  ;;  %v3276_v23 = vmul.f32 0.044715, %v3212_v25  ;;  %v3211_v31 = vmul.f32 %v3147_v38, %v7991_v3  ;;  %5813 = vtanh.f32 %v3397_v13  ;;  %v3079_v35 = vpop.f32.mrf.mxu0 }
 0xbfa   : > { %v5802_v47 = vpop.eup %5801  ;;  %v3400_v18 = vmul.f32 0.7978846, %v3336_v28  ;;  %v3399_v37 = vmul.f32 0.7978846, %v3335_v33  ;;  %v3149_v56 = vmul.f32 %v8008_v0, %v8008_v0  ;;  %v3338_v60 = vadd.f32 %v3274_v41, %v7975_v59 }
 0xbfb   : > { %v8015_v16 = vpop.eup %5803  ;;  %v3340_v10 = vadd.f32 %v3276_v23, %v7980_v5  ;;  %v3275_v4 = vmul.f32 0.044715, %v3211_v31  ;;  %v8020_v32 = vadd.f32 %v2964_v14, %v7821_v42  ;;  %v8027_v33 = vmul.f32 %v3580_v9, %v7859_v61 }
 0xbfc   : > { %v8022_v25 = vpop.eup %5805  ;;  %v3401_v13 = vmul.f32 0.7978846, %v3337_v44  ;;  %v3213_v38 = vmul.f32 %v3149_v56, %v8008_v0  ;;  %v8030_v41 = vadd.f32 1.0, %v5802_v47  ;;  %5815 = vtanh.f32 %v3398_v45  ;;  %v3081_v56 = vpop.f32.mrf.mxu0 }
 0xbfd   : > { %8916 = vst [vmem:[#allocation65_spill] sm:$0xff] %v8020_v32  ;;  %v3339_v31 = vadd.f32 %v3275_v4, %v7991_v3  ;;  %v3150_v14 = vmul.f32 %v8020_v32, %v8020_v32  ;;  %v8035_v23 = vpop.eup %5807  ;;  %5817 = vtanh.f32 %v3400_v18  ;;  %v3404_v50 = vmul.f32 0.7978846, %v3340_v10  ;;  %v2970_v10 = vpop.f32.mrf.mxu1 }
 0xbfe   : > { %v3277_v28 = vmul.f32 0.044715, %v3213_v38  ;;  %v8038_v61 = vadd.f32 %v3077_v6, %v7824_v48  ;;  %5819 = vtanh.f32 %v3399_v37  ;;  %v3402_v44 = vmul.f32 0.7978846, %v3338_v60 }
 0xbff   : > { %v5810_v9 = vpop.eup %5809  ;;  %v3214_v47 = vmul.f32 %v3150_v14, %v8020_v32  ;;  %v8042_v45 = vadd.f32 %v2966_v30, %v7827_v36  ;;  %5821 = vtanh.f32 %v3401_v13  ;;  %v3403_v4 = vmul.f32 0.7978846, %v3339_v31 }
 0xc00   : > { %8917 = vst [vmem:[#allocation66_spill] sm:$0xff] %v8038_v61  ;;  %v3152_v12 = vmul.f32 %v8038_v61, %v8038_v61  ;;  %v8047_v18 = vadd.f32 %v3079_v35, %v7831_v2  ;;  %v3341_v6 = vadd.f32 %v3277_v28, %v8008_v0  ;;  %v8053_v60 = vadd.f32 %v2968_v63, %v7821_v42  ;;  %v3083_v63 = vpop.f32.mrf.mxu0 }
 0xc01   : > { %v3278_v38 = vmul.f32 0.044715, %v3214_v47  ;;  %v3151_v37 = vmul.f32 %v8042_v45, %v8042_v45  ;;  %5823 = vtanh.f32 %v3404_v50  ;;  %v8059_v31 = vadd.f32 %v3081_v56, %v7824_v48 }
 0xc02   : > { %8918 = vst [vmem:[#allocation67_spill] sm:$0xff] %v8053_v60  ;;  %v3216_v30 = vmul.f32 %v3152_v12, %v8038_v61  ;;  %v3153_v13 = vmul.f32 %v8047_v18, %v8047_v18  ;;  %v3154_v14 = vmul.f32 %v8053_v60, %v8053_v60  ;;  %v8066_v47 = vadd.f32 %v2970_v10, %v7827_v36 }
 0xc03   : > { %v3342_v35 = vadd.f32 %v3278_v38, %v8020_v32  ;;  %v3215_v28 = vmul.f32 %v3151_v37, %v8042_v45  ;;  %5825 = vtanh.f32 %v3403_v4  ;;  %v3156_v15 = vmul.f32 %v8059_v31, %v8059_v31 }
 0xc04   : > { %v3280_v50 = vmul.f32 0.044715, %v3216_v30  ;;  %v3217_v12 = vmul.f32 %v3153_v13, %v8047_v18  ;;  %v3405_v56 = vmul.f32 0.7978846, %v3341_v6  ;;  %v3218_v38 = vmul.f32 %v3154_v14, %v8053_v60 }
 0xc05   : > { %v3279_v5 = vmul.f32 0.044715, %v3215_v28  ;;  %v3155_v37 = vmul.f32 %v8066_v47, %v8066_v47  ;;  %v5812_v32 = vpop.eup %5811  ;;  %v3220_v36 = vmul.f32 %v3156_v15, %v8059_v31  ;;  %v8077_v4 = vadd.f32 %v3083_v63, %v7831_v2 }
 0xc06   : > { %v3344_v1 = vadd.f32 %v3280_v50, %v8038_v61  ;;  %v3281_v10 = vmul.f32 0.044715, %v3217_v12  ;;  %v5814_v30 = vpop.eup %5813  ;;  %v3406_v13 = vmul.f32 0.7978846, %v3342_v35  ;;  %v3282_v6 = vmul.f32 0.044715, %v3218_v38 }
 0xc07   : > { %v3343_v59 = vadd.f32 %v3279_v5, %v8042_v45  ;;  %v3219_v28 = vmul.f32 %v3155_v37, %v8066_v47  ;;  %v3284_v48 = vmul.f32 0.044715, %v3220_v36  ;;  %v3157_v50 = vmul.f32 %v8077_v4, %v8077_v4 }
 0xc08   : > { %v3408_v14 = vmul.f32 0.7978846, %v3344_v1  ;;  %v3345_v42 = vadd.f32 %v3281_v10, %v8047_v18  ;;  %v3524_v12 = vadd.f32 1.0, %v5810_v9  ;;  %5827 = vtanh.f32 %v3405_v56 }
 0xc09   : > { %v3407_v15 = vmul.f32 0.7978846, %v3343_v59  ;;  %v3283_v61 = vmul.f32 0.044715, %v3219_v28  ;;  %v8084_v63 = vpop.eup %5815  ;;  %5829 = vtanh.f32 %v3402_v44  ;;  %v3348_v5 = vadd.f32 %v3284_v48, %v8059_v31 }
 0xc0a   : > { %v3409_v35 = vmul.f32 0.7978846, %v3345_v42  ;;  %v3221_v38 = vmul.f32 %v3157_v50, %v8077_v4  ;;  %v5818_v37 = vpop.eup %5817  ;;  %5831 = vtanh.f32 %v3406_v13  ;;  %v3346_v36 = vadd.f32 %v3282_v6, %v8053_v60 }
 0xc0b   : > { %v3347_v9 = vadd.f32 %v3283_v61, %v8066_v47  ;;  %v5820_v56 = vpop.eup %5819  ;;  %5833 = vtanh.f32 %v3408_v14  ;;  %v3412_v59 = vmul.f32 0.7978846, %v3348_v5  ;;  %v3511_v44 = vadd.f32 1.0, %v7965_v62 }
 0xc0c   : > { %v3285_v10 = vmul.f32 0.044715, %v3221_v38  ;;  %v5822_v42 = vpop.eup %5821  ;;  %v8094_v48 = vmul.f32 0.5, %v8030_v41  ;;  %v8096_v28 = vmul.f32 0.5, %v3524_v12  ;;  %5835 = vtanh.f32 %v3407_v15 }
 0xc0d   : > { %v3411_v50 = vmul.f32 0.7978846, %v3347_v9  ;;  %5837 = vtanh.f32 %v3409_v35  ;;  %v3515_v6 = vadd.f32 1.0, %v7994_v52  ;;  %v3575_v61 = vmul.f32 0.5, %v3511_v44 }
 0xc0e   : > { %v3349_v13 = vadd.f32 %v3285_v10, %v8077_v4  ;;  %v5824_v1 = vpop.eup %5823  ;;  %v3410_v14 = vmul.f32 0.7978846, %v3346_v36  ;;  %5839 = vtanh.f32 %v3412_v59  ;;  %v3513_v5 = vadd.f32 1.0, %v7986_v34 }
 0xc0f   : > { %v3517_v62 = vadd.f32 1.0, %v8001_v57  ;;  %5841 = vtanh.f32 %v3411_v50  ;;  %v3579_v38 = vmul.f32 0.5, %v3515_v6  ;;  %v3519_v12 = vadd.f32 1.0, %v8015_v16 }
 0xc10   : > { %v3413_v41 = vmul.f32 0.7978846, %v3349_v13  ;;  %v5826_v15 = vpop.eup %5825  ;;  %v3639_v35 = vmul.f32 %v3575_v61, %v7844_v58  ;;  %v3577_v9 = vmul.f32 0.5, %v3513_v5  ;;  %v3523_v60 = vadd.f32 1.0, %v5812_v32 }
 0xc11   : > { %v3581_v10 = vmul.f32 0.5, %v3517_v62  ;;  %v3643_v52 = vmul.f32 %v3579_v38, %v7868_v7  ;;  %v3583_v36 = vmul.f32 0.5, %v3519_v12  ;;  %v3521_v59 = vadd.f32 1.0, %v8022_v25  ;;  %v2974_v12 = vpop.f32.mrf.mxu1 }
 0xc12   : > { %5843 = vtanh.f32 %v3413_v41  ;;  %v3641_v34 = vmul.f32 %v3577_v9, %v7847_v54  ;;  %v3587_v44 = vmul.f32 0.5, %v3523_v60  ;;  %v3525_v50 = vadd.f32 1.0, %v5814_v30  ;;  %v3087_v9 = vpop.f32.mrf.mxu0 }
 0xc13   : > { %v3645_v57 = vmul.f32 %v3581_v10, %v7871_v40  ;;  %v3703_v13 = vpack.c.bf16 %v3643_v52, %v3639_v35  ;;  %v3647_v16 = vmul.f32 %v3583_v36, %v7899_v20  ;;  %v3585_v6 = vmul.f32 0.5, %v3521_v59 }
 0xc14   : > { %v3518_v58 = vadd.f32 1.0, %v8010_v27  ;;  %v3651_v32 = vmul.f32 %v3587_v44, %v7924_v24  ;;  %v3589_v5 = vmul.f32 0.5, %v3525_v50  ;;  %v3522_v7 = vadd.f32 1.0, %v8035_v23 }
 0xc15   : > { %v3705_v61 = vpack.c.bf16 %v3645_v57, %v3641_v34  ;;  %v5828_v62 = vpop.eup %5827  ;;  %v3528_v25 = vadd.f32 1.0, %v5818_v37  ;;  %4026 = vmatprep.mubr.bf16.mxu1 %v3703_v13  ;;  %v3649_v54 = vmul.f32 %v3585_v6, %v7902_v22  ;;  %v3527_v60 = vadd.f32 1.0, %v5820_v56  ;;  %v2976_v34 = vpop.f32.mrf.mxu1 }
 0xc16   : > { %v3582_v40 = vmul.f32 0.5, %v3518_v58  ;;  %v5830_v30 = vpop.eup %5829  ;;  %v8919_v20 = vpack.c.bf16 %v8004_v43, %v7949_v46  ;;  %v3707_v27 = vpack.c.bf16 %v3651_v32, %v3647_v16  ;;  %v3653_v41 = vmul.f32 %v3589_v5, %v7930_v49  ;;  %v8921_v58 = vld [vmem:[#allocation59_spill] sm:$0xff]  ;;  %v8922_v5 = vld [vmem:[#allocation58_spill] sm:$0xff] }
 0xc17   : > { %4123 = vmatprep.mubr.bf16.mxu0 %v3705_v61  ;;  %v3586_v24 = vmul.f32 0.5, %v3522_v7  ;;  %v3531_v38 = vadd.f32 1.0, %v5826_v15  ;;  %v8117_v23 = vpop.eup %5831  ;;  %v3532_v37 = vadd.f32 1.0, %v5824_v1  ;;  %5845 = vtanh.f32 %v3410_v14  ;;  %v2978_v7 = vpop.f32.mrf.mxu1 }
 0xc18   : > { %4027 = vmatmul.mubr.bf16.vlgmr.msra.gmra.mxu1 %v8919_v20  ;;  %v8920_v22 = vpack.c.bf16 %v8027_v33, %v7960_v21  ;;  %v3591_v56 = vmul.f32 0.5, %v3527_v60  ;;  %v3529_v35 = vadd.f32 1.0, %v5822_v42  ;;  %v5834_v46 = vpop.eup %5833  ;;  %v3709_v43 = vpack.c.bf16 %v3653_v41, %v3649_v54  ;;  %v8925_v60 = vld [vmem:[#allocation62_spill] sm:$0xff]  ;;  %v8926_v20 = vld [vmem:[#allocation64_spill] sm:$0xff] }
 0xc19   : > { %5273 = vmatpush3.bf16.msra.mxu1 %v7738_v26  ;;  %4034 = vmatprep.mubr.bf16.mxu1 %v3707_v27  ;;  %v3650_v49 = vmul.f32 %v3586_v24, %v7905_v17  ;;  %v3595_v15 = vmul.f32 0.5, %v3531_v38  ;;  %v3533_v10 = vadd.f32 1.0, %v5828_v62  ;;  %v5836_v1 = vpop.eup %5835  ;;  %v3652_v14 = vmul.f32 %v8096_v28, %v7918_v55  ;;  %v8924_v62 = vld [vmem:[#allocation60_spill] sm:$0xff]  ;;  %v8927_v38 = vld [vmem:[#allocation47_spill] sm:$0xff] }
 0xc1a   : > { %4124 = vmatmul.mubr.bf16.vlgmr.msra.gmra.mxu0 %v8920_v22  ;;  %5266 = vmatprep.subr.bf16.mxu1 %v7749_v29  ;;  %v3646_v21 = vmul.f32 %v3582_v40, %v7885_v19  ;;  %v3593_v33 = vmul.f32 0.5, %v3529_v35  ;;  %v3526_v42 = vadd.f32 1.0, %v8084_v63  ;;  %v5838_v52 = vpop.eup %5837  ;;  %v3655_v26 = vmul.f32 %v3591_v56, %v7957_v11  ;;  %v3089_v19 = vpop.f32.mrf.mxu0 }
 0xc1b   : > { %4131 = vmatprep.mubr.bf16.mxu0 %v3709_v43  ;;  %v3659_v36 = vmul.f32 %v3595_v15, %v7991_v3  ;;  %v3597_v17 = vmul.f32 0.5, %v3533_v10  ;;  %v3530_v59 = vadd.f32 1.0, %v5830_v30  ;;  %v5840_v57 = vpop.eup %5839  ;;  %v3648_v29 = vmul.f32 %v8094_v48, %v7893_v53 }
 0xc1c   : > { %v3592_v44 = vmul.f32 0.5, %v3528_v25  ;;  %v3596_v55 = vmul.f32 0.5, %v3532_v37  ;;  %v3706_v28 = vpack.c.bf16 %v3650_v49, %v3646_v21  ;;  %v5842_v63 = vpop.eup %5841  ;;  %v3657_v13 = vmul.f32 %v3593_v33, %v7963_v51  ;;  %v8923_v51 = vld [vmem:[#allocation63_spill] sm:$0xff]  ;;  %v3091_v40 = vpop.f32.mrf.mxu0 }
 0xc1d   : > { %5274 = vmatpush3.bf16.msra.mxu1 %v7753_v39  ;;  %v3711_v50 = vpack.c.bf16 %v3659_v36, %v3655_v26  ;;  %v3661_v11 = vmul.f32 %v3597_v17, %v8008_v0  ;;  %v3594_v3 = vmul.f32 0.5, %v3530_v59  ;;  %v3708_v16 = vpack.c.bf16 %v3652_v14, %v3648_v29 }
 0xc1e   : > { %5267 = vmatprep.subr.bf16.mxu1 %v7759_v8  ;;  %v3590_v6 = vmul.f32 0.5, %v3526_v42  ;;  %v8138_v61 = vadd.f32 %v3087_v9, %v8921_v58  ;;  %v3540_v48 = vadd.f32 1.0, %v5840_v57  ;;  %v8141_v39 = vadd.f32 %v2974_v12, %v8922_v5  ;;  %v8928_v12 = vld [vmem:[#allocation61_spill] sm:$0xff]  ;;  %v8929_v9 = vld [vmem:[#allocation48_spill] sm:$0xff]  ;;  %v3093_v42 = vpop.f32.mrf.mxu0 }
 0xc1f   : > { %v5844_v53 = vpop.eup %5843  ;;  %v3713_v32 = vpack.c.bf16 %v3661_v11, %v3657_v13  ;;  %v3658_v0 = vmul.f32 %v3594_v3, %v8923_v51  ;;  %v8147_v25 = vadd.f32 %v2976_v34, %v8924_v62  ;;  %v3535_v54 = vadd.f32 1.0, %v5836_v1  ;;  %v2980_v1 = vpop.f32.mrf.mxu1  ;;  %v8930_v34 = vld [vmem:[#allocation49_spill] sm:$0xff] }
 0xc20   : > { %4035 = vmatmul.mubr.bf16.gmra.mxu1 %v3706_v28  ;;  %v3160_v8 = vmul.f32 %v8138_v61, %v8138_v61  ;;  %v3656_v30 = vmul.f32 %v3592_v44, %v8925_v60  ;;  %v3660_v27 = vmul.f32 %v3596_v55, %v8926_v20  ;;  %v3536_v41 = vadd.f32 1.0, %v5834_v46  ;;  %v8931_v55 = vld [vmem:[#allocation50_spill] sm:$0xff] }
 0xc21   : > { %4042 = vmatprep.mubr.bf16.mxu1 %v3711_v50  ;;  %v3539_v24 = vadd.f32 1.0, %v5842_v63  ;;  %5275 = vmatpush3.bf16.msra.mxu1 %v8927_v38  ;;  %v3654_v37 = vmul.f32 %v3590_v6, %v8928_v12  ;;  %v3599_v56 = vmul.f32 0.5, %v3535_v54  ;;  %v3537_v35 = vadd.f32 1.0, %v5838_v52  ;;  %v2984_v50 = vpop.f32.mrf.mxu1 }
 0xc22   : > { %4132 = vmatmul.mubr.bf16.gmra.mxu0 %v3708_v16  ;;  %v3224_v22 = vmul.f32 %v3160_v8, %v8138_v61  ;;  %5268 = vmatprep.subr.bf16.mxu1 %v8929_v9  ;;  %v3604_v43 = vmul.f32 0.5, %v3540_v48  ;;  %v8156_v49 = vadd.f32 %v3089_v19, %v7831_v2  ;;  %v3541_v10 = vadd.f32 1.0, %v5844_v53  ;;  %v8932_v48 = vld [vmem:[#allocation51_spill] sm:$0xff] }
 0xc23   : > { %4139 = vmatprep.mubr.bf16.mxu0 %v3713_v32  ;;  %v3603_v15 = vmul.f32 0.5, %v3539_v24  ;;  %v3710_v46 = vpack.c.bf16 %v3658_v0, %v3654_v37  ;;  %v3158_v14 = vmul.f32 %v8141_v39, %v8141_v39  ;;  %v3159_v21 = vmul.f32 %v8147_v25, %v8147_v25  ;;  %v8934_v0 = vld [vmem:[#allocation52_spill] sm:$0xff]  ;;  %v8936_v24 = vld [vmem:[#allocation67_spill] sm:$0xff] }
 0xc24   : > { %v3601_v33 = vmul.f32 0.5, %v3537_v35  ;;  %v5846_v26 = vpop.eup %5845  ;;  %v3288_v52 = vmul.f32 0.044715, %v3224_v22  ;;  %v3663_v36 = vmul.f32 %v3599_v56, %v8042_v45  ;;  %v3605_v59 = vmul.f32 0.5, %v3541_v10  ;;  %v8937_v35 = vld [vmem:[#allocation53_spill] sm:$0xff] }
 0xc25   : > { %v3667_v17 = vmul.f32 %v3603_v15, %v8066_v47  ;;  %5276 = vmatpush3.bf16.msra.mxu1 %v8930_v34  ;;  %v3600_v57 = vmul.f32 0.5, %v3536_v41  ;;  %v3712_v29 = vpack.c.bf16 %v3660_v27, %v3656_v30  ;;  %v3534_v44 = vadd.f32 1.0, %v8117_v23  ;;  %v3097_v23 = vpop.f32.mrf.mxu0  ;;  %v2986_v30 = vpop.f32.mrf.mxu1  ;;  %v8935_v41 = vld [vmem:[#allocation65_spill] sm:$0xff] }
 0xc26   : > { %5269 = vmatprep.subr.bf16.mxu1 %v8931_v55  ;;  %v3161_v28 = vmul.f32 %v8156_v49, %v8156_v49  ;;  %v3665_v63 = vmul.f32 %v3601_v33, %v8047_v18  ;;  %v3669_v45 = vmul.f32 %v3605_v59, %v8077_v4  ;;  %v3222_v47 = vmul.f32 %v3158_v14, %v8141_v39  ;;  %v8933_v18 = vld [vmem:[#allocation66_spill] sm:$0xff] }
 0xc27   : > { %v3715_v19 = vpack.c.bf16 %v3667_v17, %v3663_v36  ;;  %v3223_v13 = vmul.f32 %v3159_v21, %v8147_v25  ;;  %v3538_v11 = vadd.f32 1.0, %v5846_v26  ;;  %v3598_v3 = vmul.f32 0.5, %v3534_v44  ;;  %v3099_v12 = vpop.f32.mrf.mxu0  ;;  %v2988_v33 = vpop.f32.mrf.mxu1 }
 0xc28   : > { %4043 = vmatmul.mubr.bf16.gmra.mxu1 %v3710_v46  ;;  %v3668_v16 = vmul.f32 %v3604_v43, %v8059_v31  ;;  %v3352_v6 = vadd.f32 %v3288_v52, %v8138_v61  ;;  %v3717_v53 = vpack.c.bf16 %v3669_v45, %v3665_v63  ;;  %v3664_v32 = vmul.f32 %v3600_v57, %v8933_v18  ;;  %v8939_v57 = vld [vmem:[#allocation55_spill] sm:$0xff] }
 0xc29   : > { %4050 = vmatprep.mubr.bf16.mxu1 %v3715_v19  ;;  %5277 = vmatpush3.bf16.msra.mxu1 %v8932_v48  ;;  %v3602_v4 = vmul.f32 0.5, %v3538_v11  ;;  %v8178_v51 = vadd.f32 %v2978_v7, %v8922_v5  ;;  %v3225_v8 = vmul.f32 %v3161_v28, %v8156_v49  ;;  %v8183_v54 = vadd.f32 %v3091_v40, %v8921_v58  ;;  %v3101_v36 = vpop.f32.mrf.mxu0  ;;  %v8940_v19 = vld [vmem:[#allocation56_spill] sm:$0xff]  ;;  %v8941_v48 = vld [vmem:[#allocation57_spill] sm:$0xff] }
 0xc2a   : > { %4140 = vmatmul.mubr.bf16.gmra.mxu0 %v3712_v29  ;;  %5270 = vmatprep.subr.bf16.mxu1 %v8934_v0  ;;  %v8186_v31 = vadd.f32 %v2980_v1, %v8924_v62  ;;  %v8189_v60 = vadd.f32 %v3093_v42, %v7831_v2  ;;  %v3286_v20 = vmul.f32 0.044715, %v3222_v47  ;;  %v3287_v27 = vmul.f32 0.044715, %v3223_v13  ;;  %v8938_v1 = vld [vmem:[#allocation54_spill] sm:$0xff] }
 0xc2b   : > { %4147 = vmatprep.mubr.bf16.mxu0 %v3717_v53  ;;  %v3662_v7 = vmul.f32 %v3598_v3, %v8935_v41  ;;  %v3666_v38 = vmul.f32 %v3602_v4, %v8936_v24  ;;  %v3416_v37 = vmul.f32 0.7978846, %v3352_v6  ;;  %v3716_v22 = vpack.c.bf16 %v3668_v16, %v3664_v32  ;;  %v3103_v3 = vpop.f32.mrf.mxu0 }
 0xc2c   : > { %v3162_v40 = vmul.f32 %v8178_v51, %v8178_v51  ;;  %v3164_v56 = vmul.f32 %v8183_v54, %v8183_v54  ;;  %v3163_v43 = vmul.f32 %v8186_v31, %v8186_v31  ;;  %v8201_v15 = vadd.f32 %v2984_v50, %v8922_v5  ;;  %v2990_v50 = vpop.f32.mrf.mxu1 }
 0xc2d   : > { %5278 = vmatpush3.bf16.msra.mxu1 %v8937_v35  ;;  %v3714_v9 = vpack.c.bf16 %v3666_v38, %v3662_v7  ;;  %v8204_v10 = vadd.f32 %v3097_v23, %v8921_v58  ;;  %v3165_v14 = vmul.f32 %v8189_v60, %v8189_v60  ;;  %v8211_v21 = vadd.f32 %v2986_v30, %v8924_v62  ;;  %v3107_v38 = vpop.f32.mrf.mxu0 }
 0xc2e   : > { %5271 = vmatprep.subr.bf16.mxu1 %v8938_v1  ;;  %v3228_v46 = vmul.f32 %v3164_v56, %v8183_v54  ;;  %v3350_v42 = vadd.f32 %v3286_v20, %v8141_v39  ;;  %v3289_v26 = vmul.f32 0.044715, %v3225_v8  ;;  %5847 = vtanh.f32 %v3416_v37 }
 0xc2f   : > { %v3168_v52 = vmul.f32 %v8204_v10, %v8204_v10  ;;  %v3226_v17 = vmul.f32 %v3162_v40, %v8178_v51  ;;  %v8218_v34 = vadd.f32 %v3099_v12, %v7831_v2  ;;  %v3351_v29 = vadd.f32 %v3287_v27, %v8147_v25  ;;  %v2994_v27 = vpop.f32.mrf.mxu1 }
 0xc30   : > { %4051 = vmatmul.mubr.bf16.gmra.mxu1 %v3714_v9  ;;  %v3292_v59 = vmul.f32 0.044715, %v3228_v46  ;;  %v3227_v44 = vmul.f32 %v3163_v43, %v8186_v31  ;;  %v3166_v55 = vmul.f32 %v8201_v15, %v8201_v15  ;;  %v3229_v63 = vmul.f32 %v3165_v14, %v8189_v60 }
 0xc31   : > { %5279 = vmatpush3.bf16.msra.mxu1 %v8939_v57  ;;  %v3232_v28 = vmul.f32 %v3168_v52, %v8204_v10  ;;  %v3167_v45 = vmul.f32 %v8211_v21, %v8211_v21  ;;  %v3353_v47 = vadd.f32 %v3289_v26, %v8156_v49  ;;  %v3414_v23 = vmul.f32 0.7978846, %v3350_v42  ;;  %v2996_v14 = vpop.f32.mrf.mxu1  ;;  %v3109_v52 = vpop.f32.mrf.mxu0 }
 0xc32   : > { %4148 = vmatmul.mubr.bf16.gmra.mxu0 %v3716_v22  ;;  %5272 = vmatprep.subr.bf16.mxu1 %v8940_v19  ;;  %v3356_v13 = vadd.f32 %v3292_v59, %v8183_v54  ;;  %v3290_v16 = vmul.f32 0.044715, %v3226_v17  ;;  %v3169_v6 = vmul.f32 %v8218_v34, %v8218_v34  ;;  %v8235_v53 = vadd.f32 %v2988_v33, %v8922_v5 }
 0xc33   : > { %v3296_v11 = vmul.f32 0.044715, %v3232_v28  ;;  %v3415_v18 = vmul.f32 0.7978846, %v3351_v29  ;;  %v3291_v32 = vmul.f32 0.044715, %v3227_v44  ;;  %v3230_v4 = vmul.f32 %v3166_v55, %v8201_v15 }
 0xc34   : > { %v3293_v0 = vmul.f32 0.044715, %v3229_v63  ;;  %v3231_v30 = vmul.f32 %v3167_v45, %v8211_v21  ;;  %v8242_v20 = vadd.f32 %v3101_v36, %v8921_v58  ;;  %v3420_v41 = vmul.f32 0.7978846, %v3356_v13 }
 0xc35   : > { %5280 = vmatpush3.bf16.msra.mxu1 %v8941_v48  ;;  %v3360_v8 = vadd.f32 %v3296_v11, %v8204_v10  ;;  %v3170_v7 = vmul.f32 %v8235_v53, %v8235_v53  ;;  %v8247_v24 = vadd.f32 %v2990_v50, %v8924_v62  ;;  %5849 = vtanh.f32 %v3414_v23  ;;  %v2998_v50 = vpop.f32.mrf.mxu1  ;;  %v3111_v48 = vpop.f32.mrf.mxu0 }
 0xc36   : > { %v3417_v12 = vmul.f32 0.7978846, %v3353_v47  ;;  %v3354_v37 = vadd.f32 %v3290_v16, %v8178_v51  ;;  %v3233_v22 = vmul.f32 %v3169_v6, %v8218_v34  ;;  %v3355_v40 = vadd.f32 %v3291_v32, %v8186_v31 }
 0xc37   : > { %v3294_v56 = vmul.f32 0.044715, %v3230_v4  ;;  %v3172_v35 = vmul.f32 %v8242_v20, %v8242_v20  ;;  %v3171_v9 = vmul.f32 %v8247_v24, %v8247_v24  ;;  %5851 = vtanh.f32 %v3415_v18 }
 0xc38   : > { %v3357_v43 = vadd.f32 %v3293_v0, %v8189_v60  ;;  %v3424_v1 = vmul.f32 0.7978846, %v3360_v8  ;;  %v3295_v46 = vmul.f32 0.044715, %v3231_v30  ;;  %5853 = vtanh.f32 %v3420_v41  ;;  %v3000_v41 = vpop.f32.mrf.mxu1 }
 0xc39   : > { %v3234_v33 = vmul.f32 %v3170_v7, %v8235_v53  ;;  %v3236_v42 = vmul.f32 %v3172_v35, %v8242_v20  ;;  %v8260_v26 = vadd.f32 %v3103_v3, %v7831_v2  ;;  %5855 = vtanh.f32 %v3417_v12 }
 0xc3a   : > { %v3418_v36 = vmul.f32 0.7978846, %v3354_v37  ;;  %v3297_v17 = vmul.f32 0.044715, %v3233_v22  ;;  %v8263_v59 = vadd.f32 %v2994_v27, %v8922_v5  ;;  %v3419_v29 = vmul.f32 0.7978846, %v3355_v40 }
 0xc3b   : > { %v5848_v57 = vpop.eup %5847  ;;  %v3358_v44 = vadd.f32 %v3294_v56, %v8201_v15  ;;  %v3300_v55 = vmul.f32 0.044715, %v3236_v42  ;;  %v3235_v28 = vmul.f32 %v3171_v9, %v8247_v24  ;;  %5857 = vtanh.f32 %v3424_v1 }
 0xc3c   : > { %v3173_v19 = vmul.f32 %v8260_v26, %v8260_v26  ;;  %v8270_v63 = vadd.f32 %v2996_v14, %v8924_v62  ;;  %v8273_v45 = vadd.f32 %v3109_v52, %v7831_v2  ;;  %v3421_v47 = vmul.f32 0.7978846, %v3357_v43  ;;  %v3113_v52 = vpop.f32.mrf.mxu0 }
 0xc3d   : > { %v3359_v13 = vadd.f32 %v3295_v46, %v8211_v21  ;;  %v3298_v11 = vmul.f32 0.044715, %v3234_v33  ;;  %v8277_v3 = vadd.f32 %v3107_v38, %v8921_v58  ;;  %v3544_v23 = vadd.f32 1.0, %v5848_v57 }
 0xc3e   : > { %8942 = vst [vmem:[#allocation59_spill] sm:$0xff] %v8273_v45  ;;  %5859 = vtanh.f32 %v3418_v36  ;;  %v3361_v16 = vadd.f32 %v3297_v17, %v8218_v34  ;;  %v3174_v6 = vmul.f32 %v8263_v59, %v8263_v59  ;;  %v3422_v18 = vmul.f32 0.7978846, %v3358_v44  ;;  %v3004_v36 = vpop.f32.mrf.mxu1 }
 0xc3f   : > { %8943 = vst [vmem:[#allocation58_spill] sm:$0xff] %v8277_v3  ;;  %v3364_v32 = vadd.f32 %v3300_v55, %v8242_v20  ;;  %v3299_v4 = vmul.f32 0.044715, %v3235_v28  ;;  %v3175_v0 = vmul.f32 %v8270_v63, %v8270_v63  ;;  %5861 = vtanh.f32 %v3419_v29 }
 0xc40   : > { %v3237_v8 = vmul.f32 %v3173_v19, %v8260_v26  ;;  %v3177_v30 = vmul.f32 %v8273_v45, %v8273_v45  ;;  %v8289_v27 = vadd.f32 %v2998_v50, %v8922_v5  ;;  %v3423_v7 = vmul.f32 0.7978846, %v3359_v13 }
 0xc41   : > { %v3362_v38 = vadd.f32 %v3298_v11, %v8235_v53  ;;  %v3176_v12 = vmul.f32 %v8277_v3, %v8277_v3  ;;  %v8295_v37 = vadd.f32 %v3111_v48, %v8921_v58  ;;  %v3608_v22 = vmul.f32 0.5, %v3544_v23  ;;  %v3117_v48 = vpop.f32.mrf.mxu0 }
 0xc42   : > { %5863 = vtanh.f32 %v3421_v47  ;;  %v3425_v40 = vmul.f32 0.7978846, %v3361_v16  ;;  %v3238_v56 = vmul.f32 %v3174_v6, %v8263_v59  ;;  %v8298_v35 = vpop.eup %5849  ;;  %v3428_v9 = vmul.f32 0.7978846, %v3364_v32 }
 0xc43   : > { %8944 = vst [vmem:[#allocation63_spill] sm:$0xff] %v8295_v37  ;;  %v3363_v43 = vadd.f32 %v3299_v4, %v8247_v24  ;;  %v3239_v1 = vmul.f32 %v3175_v0, %v8270_v63  ;;  %v3178_v46 = vmul.f32 %v8289_v27, %v8289_v27  ;;  %5865 = vtanh.f32 %v3422_v18  ;;  %v3006_v18 = vpop.f32.mrf.mxu1 }
 0xc44   : > { %v3301_v14 = vmul.f32 0.044715, %v3237_v8  ;;  %v3241_v33 = vmul.f32 %v3177_v30, %v8273_v45  ;;  %v3180_v42 = vmul.f32 %v8295_v37, %v8295_v37  ;;  %v8307_v17 = vpop.eup %5851  ;;  %5867 = vtanh.f32 %v3423_v7 }
 0xc45   : > { %v3426_v57 = vmul.f32 0.7978846, %v3362_v38  ;;  %v3240_v29 = vmul.f32 %v3176_v12, %v8277_v3  ;;  %v5854_v44 = vpop.eup %5853  ;;  %v8311_v55 = vmul.f32 %v3608_v22, %v8138_v61  ;;  %5869 = vtanh.f32 %v3425_v40 }
 0xc46   : > { %v3302_v28 = vmul.f32 0.044715, %v3238_v56  ;;  %v3242_v19 = vmul.f32 %v3178_v46, %v8289_v27  ;;  %v8314_v50 = vpop.eup %5855  ;;  %5871 = vtanh.f32 %v3428_v9  ;;  %v3427_v47 = vmul.f32 0.7978846, %v3363_v43 }
 0xc47   : > { %v3303_v13 = vmul.f32 0.044715, %v3239_v1  ;;  %v3244_v11 = vmul.f32 %v3180_v42, %v8295_v37  ;;  %v3365_v23 = vadd.f32 %v3301_v14, %v8260_v26  ;;  %v3305_v16 = vmul.f32 0.044715, %v3241_v33  ;;  %v3119_v14 = vpop.f32.mrf.mxu0 }
 0xc48   : > { %v8319_v6 = vadd.f32 %v3000_v41, %v8924_v62  ;;  %v8322_v61 = vadd.f32 %v3113_v52, %v7831_v2  ;;  %v5858_v32 = vpop.eup %5857  ;;  %v3548_v4 = vadd.f32 1.0, %v5854_v44  ;;  %5873 = vtanh.f32 %v3426_v57 }
 0xc49   : > { %v3304_v0 = vmul.f32 0.044715, %v3240_v29  ;;  %v8325_v8 = vadd.f32 %v3004_v36, %v8922_v5  ;;  %v3366_v30 = vadd.f32 %v3302_v28, %v8263_v59  ;;  %v3306_v7 = vmul.f32 0.044715, %v3242_v19 }
 0xc4a   : > { %v3179_v38 = vmul.f32 %v8319_v6, %v8319_v6  ;;  %v3181_v41 = vmul.f32 %v8322_v61, %v8322_v61  ;;  %5875 = vtanh.f32 %v3427_v47  ;;  %v3367_v22 = vadd.f32 %v3303_v13, %v8270_v63  ;;  %v3008_v47 = vpop.f32.mrf.mxu1 }
 0xc4b   : > { %v8332_v12 = vpop.eup %5859  ;;  %v3308_v40 = vmul.f32 0.044715, %v3244_v11  ;;  %v8336_v56 = vadd.f32 %v3006_v18, %v8924_v62  ;;  %v3552_v9 = vadd.f32 1.0, %v5858_v32  ;;  %v3429_v43 = vmul.f32 0.7978846, %v3365_v23 }
 0xc4c   : > { %v3369_v1 = vadd.f32 %v3305_v16, %v8273_v45  ;;  %v3243_v46 = vmul.f32 %v3179_v38, %v8319_v6  ;;  %v8340_v33 = vpop.eup %5861  ;;  %v3368_v42 = vadd.f32 %v3304_v0, %v8277_v3  ;;  %v3245_v52 = vmul.f32 %v3181_v41, %v8322_v61 }
 0xc4d   : > { %v3182_v36 = vmul.f32 %v8325_v8, %v8325_v8  ;;  %v3183_v57 = vmul.f32 %v8336_v56, %v8336_v56  ;;  %v3430_v29 = vmul.f32 0.7978846, %v3366_v30  ;;  %v3370_v44 = vadd.f32 %v3306_v7, %v8289_v27  ;;  %v3121_v30 = vpop.f32.mrf.mxu0 }
 0xc4e   : > { %v3307_v28 = vmul.f32 0.044715, %v3243_v46  ;;  %v8350_v19 = vadd.f32 %v3117_v48, %v8921_v58  ;;  %v3612_v11 = vmul.f32 0.5, %v3548_v4  ;;  %v3431_v23 = vmul.f32 0.7978846, %v3367_v22 }
 0xc4f   : > { %v5864_v13 = vpop.eup %5863  ;;  %v3372_v16 = vadd.f32 %v3308_v40, %v8295_v37  ;;  %v3247_v18 = vmul.f32 %v3183_v57, %v8336_v56  ;;  %v3616_v32 = vmul.f32 0.5, %v3552_v9  ;;  %5877 = vtanh.f32 %v3429_v43 }
 0xc50   : > { %v3433_v0 = vmul.f32 0.7978846, %v3369_v1  ;;  %v8355_v38 = vadd.f32 %v3119_v14, %v7831_v2  ;;  %v8357_v7 = vpop.eup %5865  ;;  %v3309_v41 = vmul.f32 0.044715, %v3245_v52  ;;  %v3246_v48 = vmul.f32 %v3182_v36, %v8325_v8 }
 0xc51   : > { %v3311_v46 = vmul.f32 0.044715, %v3247_v18  ;;  %v8361_v4 = vadd.f32 %v3008_v47, %v8922_v5  ;;  %v8363_v22 = vpop.eup %5867  ;;  %5879 = vtanh.f32 %v3430_v29  ;;  %v3434_v40 = vmul.f32 0.7978846, %v3370_v44  ;;  %v3010_v5 = vpop.f32.mrf.mxu1 }
 0xc52   : > { %v3371_v9 = vadd.f32 %v3307_v28, %v8319_v6  ;;  %v3184_v43 = vmul.f32 %v8350_v19, %v8350_v19  ;;  %v8368_v1 = vpop.eup %5869  ;;  %v8370_v14 = vmul.f32 0.7978846, %v3368_v42  ;;  %5881 = vtanh.f32 %v3431_v23  ;;  %v3123_v28 = vpop.f32.mrf.mxu0 }
 0xc53   : > { %v3436_v52 = vmul.f32 0.7978846, %v3372_v16  ;;  %v3186_v36 = vmul.f32 %v8361_v4, %v8361_v4  ;;  %v5872_v57 = vpop.eup %5871  ;;  %v8375_v47 = vmul.f32 %v3612_v11, %v8183_v54  ;;  %5883 = vtanh.f32 %v3433_v0 }
 0xc54   : > { %v3375_v29 = vadd.f32 %v3311_v46, %v8336_v56  ;;  %v3185_v44 = vmul.f32 %v8355_v38, %v8355_v38  ;;  %v8381_v42 = vmul.f32 %v3616_v32, %v8204_v10  ;;  %v3373_v23 = vadd.f32 %v3309_v41, %v8322_v61 }
 0xc55   : > { %v3310_v16 = vmul.f32 0.044715, %v3246_v48  ;;  %v3250_v18 = vmul.f32 %v3186_v36, %v8361_v4  ;;  %v8385_v3 = vpop.eup %5873  ;;  %5885 = vtanh.f32 %v3434_v40  ;;  %v3435_v54 = vmul.f32 0.7978846, %v3371_v9 }
 0xc56   : > { %v8388_v11 = vmul.f32 %v3184_v43, %v8350_v19  ;;  %v8391_v0 = vadd.f32 %v3010_v5, %v8924_v62  ;;  %v3556_v46 = vadd.f32 1.0, %v5872_v57  ;;  %5887 = vtanh.f32 %v3436_v52 }
 0xc57   : > { %v3314_v37 = vmul.f32 0.044715, %v3250_v18  ;;  %v8394_v10 = vadd.f32 %v3123_v28, %v7831_v2  ;;  %v5876_v32 = vpop.eup %5875  ;;  %v3439_v41 = vmul.f32 0.7978846, %v3375_v29  ;;  %v3249_v48 = vmul.f32 %v3185_v44, %v8355_v38 }
 0xc58   : > { %v3187_v40 = vmul.f32 %v8391_v0, %v8391_v0  ;;  %v3543_v9 = vadd.f32 1.0, %v8307_v17  ;;  %v3437_v43 = vmul.f32 0.7978846, %v3373_v23  ;;  %v3374_v36 = vadd.f32 %v3310_v16, %v8325_v8 }
 0xc59   : > { %v8402_v62 = vadd.f32 %v3121_v30, %v8921_v58  ;;  %v3189_v52 = vmul.f32 %v8394_v10, %v8394_v10  ;;  %5889 = vtanh.f32 %v3435_v54  ;;  %v3547_v5 = vadd.f32 1.0, %v8340_v33 }
 0xc5a   : > { %v3251_v2 = vmul.f32 %v3187_v40, %v8391_v0  ;;  %v3607_v57 = vmul.f32 0.5, %v3543_v9  ;;  %v3378_v29 = vadd.f32 %v3314_v37, %v8361_v4  ;;  %v3545_v17 = vadd.f32 1.0, %v8314_v50 }
 0xc5b   : > { %v3253_v44 = vmul.f32 %v3189_v52, %v8394_v10  ;;  %v3549_v28 = vadd.f32 1.0, %v5864_v13  ;;  %v3620_v23 = vmul.f32 0.5, %v3556_v46  ;;  %5891 = vtanh.f32 %v3439_v41 }
 0xc5c   : > { %v3315_v58 = vmul.f32 0.044715, %v3251_v2  ;;  %v3611_v30 = vmul.f32 0.5, %v3547_v5  ;;  %v5878_v16 = vpop.eup %5877  ;;  %v3438_v18 = vmul.f32 0.7978846, %v3374_v36  ;;  %v3188_v54 = vmul.f32 %v8402_v62, %v8402_v62 }
 0xc5d   : > { %v3313_v45 = vmul.f32 0.044715, %v3249_v48  ;;  %v3609_v40 = vmul.f32 0.5, %v3545_v17  ;;  %v3671_v37 = vmul.f32 %v3607_v57, %v8147_v25  ;;  %v3613_v52 = vmul.f32 0.5, %v3549_v28 }
 0xc5e   : > { %v3379_v33 = vadd.f32 %v3315_v58, %v8391_v0  ;;  %v3675_v9 = vmul.f32 %v3611_v30, %v8186_v31  ;;  %v8416_v50 = vpop.eup %5879  ;;  %5893 = vtanh.f32 %v3437_v43  ;;  %v3442_v13 = vmul.f32 0.7978846, %v3378_v29 }
 0xc5f   : > { %v3317_v46 = vmul.f32 0.044715, %v3253_v44  ;;  %v3542_v41 = vadd.f32 1.0, %v8298_v35  ;;  %v5882_v36 = vpop.eup %5881  ;;  %v3673_v5 = vmul.f32 %v3609_v40, %v8156_v49  ;;  %v3677_v17 = vmul.f32 %v3613_v52, %v8189_v60 }
 0xc60   : > { %v3443_v48 = vmul.f32 0.7978846, %v3379_v33  ;;  %v3719_v2 = vpack.c.bf16 %v3675_v9, %v3671_v37  ;;  %v8421_v58 = vpop.eup %5883  ;;  %5895 = vtanh.f32 %v3438_v18  ;;  %v3377_v25 = vadd.f32 %v3313_v45, %v8355_v38 }
 0xc61   : > { %v3546_v31 = vadd.f32 1.0, %v8332_v12  ;;  %v3606_v57 = vmul.f32 0.5, %v3542_v41  ;;  %v3252_v43 = vmul.f32 %v3188_v54, %v8402_v62  ;;  %v3721_v35 = vpack.c.bf16 %v3677_v17, %v3673_v5 }
 0xc62   : > { %5897 = vtanh.f32 %v3443_v48  ;;  %4058 = vmatprep.mubr.bf16.mxu1 %v3719_v2  ;;  %v3551_v29 = vadd.f32 1.0, %v8363_v22  ;;  %v5886_v44 = vpop.eup %5885  ;;  %v3381_v49 = vadd.f32 %v3317_v46, %v8394_v10  ;;  %v3720_v28 = vpack.c.bf16 %v8375_v47, %v8311_v55 }
 0xc63   : > { %5899 = vtanh.f32 %v3442_v13  ;;  %v3610_v60 = vmul.f32 0.5, %v3546_v31  ;;  %v8430_v30 = vpop.eup %5887  ;;  %4155 = vmatprep.mubr.bf16.mxu0 %v3721_v35  ;;  %v3555_v45 = vadd.f32 1.0, %v5876_v32  ;;  %v3553_v18 = vadd.f32 1.0, %v8368_v1 }
 0xc64   : > { %v3615_v12 = vmul.f32 0.5, %v3551_v29  ;;  %v3557_v54 = vadd.f32 1.0, %v5878_v16  ;;  %v3670_v40 = vmul.f32 %v3606_v57, %v8141_v39  ;;  %4156 = vmatmul.mubr.bf16.gmra.mxu0 %v3720_v28  ;;  %v3550_v33 = vadd.f32 1.0, %v8357_v7 }
 0xc65   : > { %v3674_v22 = vmul.f32 %v3610_v60, %v8178_v51  ;;  %v3554_v37 = vadd.f32 1.0, %v8385_v3  ;;  %v3316_v9 = vmul.f32 0.044715, %v3252_v43  ;;  %v3619_v52 = vmul.f32 0.5, %v3555_v45 }
 0xc66   : > { %v3617_v55 = vmul.f32 0.5, %v3553_v18  ;;  %v3621_v47 = vmul.f32 0.5, %v3557_v54  ;;  %v5890_v13 = vpop.eup %5889  ;;  %v3684_v32 = vmul.f32 %v3620_v23, %v8242_v20  ;;  %v3445_v46 = vmul.f32 0.7978846, %v3381_v49 }
 0xc67   : > { %v3718_v41 = vpack.c.bf16 %v3674_v22, %v3670_v40  ;;  %v3618_v1 = vmul.f32 0.5, %v3554_v37  ;;  %v3679_v16 = vmul.f32 %v3615_v12, %v8211_v21  ;;  %v3683_v39 = vmul.f32 %v3619_v52, %v8247_v24 }
 0xc68   : > { %v3681_v51 = vmul.f32 %v3617_v55, %v8218_v34  ;;  %v3685_v7 = vmul.f32 %v3621_v47, %v8260_v26  ;;  %v5892_v48 = vpop.eup %5891  ;;  %v3312_v3 = vmul.f32 0.044715, %v8388_v11  ;;  %v3441_v2 = vmul.f32 0.7978846, %v3377_v25 }
 0xc69   : > { %4059 = vmatmul.mubr.bf16.gmra.mxu1 %v3718_v41  ;;  %v3614_v5 = vmul.f32 0.5, %v3550_v33  ;;  %v3559_v17 = vadd.f32 1.0, %v5882_v36  ;;  %v3380_v20 = vadd.f32 %v3316_v9, %v8402_v62  ;;  %v3723_v23 = vpack.c.bf16 %v3683_v39, %v3679_v16 }
 0xc6a   : > { %v3725_v31 = vpack.c.bf16 %v3685_v7, %v3681_v51  ;;  %v3563_v57 = vadd.f32 1.0, %v5890_v13  ;;  %v3682_v21 = vmul.f32 %v3618_v1, %v8235_v53  ;;  %v3724_v24 = vpack.c.bf16 %v3684_v32, %v8381_v42 }
 0xc6b   : > { %v3623_v43 = vmul.f32 0.5, %v3559_v17  ;;  %v3562_v34 = vadd.f32 1.0, %v5886_v44  ;;  %v5894_v35 = vpop.eup %5893  ;;  %5901 = vtanh.f32 %v3445_v46  ;;  %4066 = vmatprep.mubr.bf16.mxu1 %v3723_v23  ;;  %v3567_v11 = vadd.f32 1.0, %v5892_v48  ;;  %v8945_v48 = vld [vmem:[#allocation59_spill] sm:$0xff] }
 0xc6c   : > { %4163 = vmatprep.mubr.bf16.mxu0 %v3725_v31  ;;  %v3627_v26 = vmul.f32 0.5, %v3563_v57  ;;  %5903 = vtanh.f32 %v8370_v14  ;;  %v3376_v36 = vadd.f32 %v3312_v3, %v8350_v19  ;;  %v3678_v25 = vmul.f32 %v3614_v5, %v8201_v15 }
 0xc6d   : > { %4164 = vmatmul.mubr.bf16.gmra.mxu0 %v3724_v24  ;;  %v3558_v29 = vadd.f32 1.0, %v8416_v50  ;;  %v5896_v53 = vpop.eup %5895  ;;  %5905 = vtanh.f32 %v3441_v2  ;;  %v3687_v42 = vmul.f32 %v3623_v43, %v8270_v63  ;;  %v3444_v60 = vmul.f32 0.7978846, %v3380_v20 }
 0xc6e   : > { %v3691_v44 = vmul.f32 %v3627_v26, %v8319_v6  ;;  %v3722_v28 = vpack.c.bf16 %v3682_v21, %v3678_v25  ;;  %v3626_v45 = vmul.f32 0.5, %v3562_v34  ;;  %v3631_v54 = vmul.f32 0.5, %v3567_v11  ;;  %v8947_v34 = vld [vmem:[#allocation58_spill] sm:$0xff] }
 0xc6f   : > { %v5898_v49 = vpop.eup %5897  ;;  %v3440_v40 = vmul.f32 0.7978846, %v3376_v36  ;;  %v3622_v15 = vmul.f32 0.5, %v3558_v29  ;;  %5907 = vtanh.f32 %v3444_v60  ;;  %v3565_v37 = vadd.f32 1.0, %v5894_v35  ;;  %v8469_v60 = vld [vmem:[%s6585_s17] sm:$0x3f] }
 0xc70   : > { %v5900_v12 = vpop.eup %5899  ;;  %v3727_v18 = vpack.c.bf16 %v3691_v44, %v3687_v42  ;;  %v3571_v14 = vadd.f32 1.0, %v5898_v49  ;;  %v3690_v50 = vmul.f32 %v3626_v45, %v8289_v27  ;;  %v3695_v63 = vmul.f32 %v3631_v54, %v8336_v56  ;;  %s8966_s17 = sld [smem:[#allocation21_spill]] }
 0xc71   : > { %4067 = vmatmul.mubr.bf16.gmra.mxu1 %v3722_v28  ;;  %v3570_v33 = vadd.f32 1.0, %v5900_v12  ;;  %5909 = vtanh.f32 %v3440_v40  ;;  %v3686_v9 = vmul.f32 %v3622_v15, %v8263_v59  ;;  %v3566_v52 = vadd.f32 1.0, %v5896_v53  ;;  %v8948_v28 = vld [vmem:[#allocation30_spill] sm:$0xff] }
 0xc72   : > { %4074 = vmatprep.mubr.bf16.mxu1 %v3727_v18  ;;  %v3635_v22 = vmul.f32 0.5, %v3571_v14  ;;  %v3561_v47 = vadd.f32 1.0, %v8421_v58  ;;  %v3629_v46 = vmul.f32 0.5, %v3565_v37  ;;  %v8949_v45 = vsub.s32 3, %v8948_v28 }
 0xc73   : > { %v3726_v13 = vpack.c.bf16 %v3690_v50, %v3686_v9  ;;  %v3634_v32 = vmul.f32 0.5, %v3570_v33  ;;  %v3630_v1 = vmul.f32 0.5, %v3566_v52  ;;  %v8950_v52 = vld [vmem:[#allocation31_spill] sm:$0xff] }
 0xc74   : > { %v3699_v6 = vmul.f32 %v3635_v22, %v8391_v0  ;;  %v3625_v16 = vmul.f32 0.5, %v3561_v47  ;;  %v3564_v0 = vadd.f32 1.0, %v8430_v30  ;;  %v3693_v59 = vmul.f32 %v3629_v46, %v8322_v61 }
 0xc75   : > { %v3698_v39 = vmul.f32 %v3634_v32, %v8361_v4  ;;  %v3694_v58 = vmul.f32 %v3630_v1, %v8325_v8  ;;  %v8946_v4 = vld [vmem:[#allocation63_spill] sm:$0xff] }
 0xc76   : > { %v3731_v55 = vpack.c.bf16 %v3699_v6, %v3695_v63  ;;  %v3689_v3 = vmul.f32 %v3625_v16, %v8945_v48  ;;  %v3628_v5 = vmul.f32 0.5, %v3564_v0  ;;  %p4802_p9 = scmp.ne.s32.totalorder %s8966_s17, 1 }
 0xc77   : > { %v3730_v17 = vpack.c.bf16 %v3698_v39, %v3694_v58 }
 0xc78   : > { %v5902_v41 = vpop.eup %5901  ;;  %v3729_v23 = vpack.c.bf16 %v3693_v59, %v3689_v3  ;;  %v3692_v24 = vmul.f32 %v3628_v5, %v8946_v4  ;;  %v8952_v5 = vld [vmem:[#allocation34_spill] sm:$0xff] }
 0xc79   : > { %4075 = vmatmul.mubr.bf16.gmra.mxu1 %v3726_v13  ;;  %v5904_v27 = vpop.eup %5903  ;;  %v3573_v51 = vadd.f32 1.0, %v5902_v41 }
 0xc7a   : > { %4082 = vmatprep.mubr.bf16.mxu1 %v3731_v55  ;;  %v5906_v56 = vpop.eup %5905  ;;  %v3560_v7 = vadd.f32 1.0, %v5904_v27 }
 0xc7b   : > { %v3569_v2 = vadd.f32 1.0, %v5906_v56  ;;  %v3637_v31 = vmul.f32 0.5, %v3573_v51  ;;  %v8951_v56 = vld [vmem:[#allocation32_spill] sm:$0xff] }
 0xc7c   : > { %v5908_v20 = vpop.eup %5907  ;;  %v3624_v57 = vmul.f32 0.5, %v3560_v7 }
 0xc7d   : > { %v3633_v30 = vmul.f32 0.5, %v3569_v2  ;;  %v3572_v61 = vadd.f32 1.0, %v5908_v20  ;;  %v3701_v43 = vmul.f32 %v3637_v31, %v8394_v10 }
 0xc7e   : > { %v5910_v21 = vpop.eup %5909  ;;  %v3688_v8 = vmul.f32 %v3624_v57, %v8947_v34 }
 0xc7f   : > { %v3568_v35 = vadd.f32 1.0, %v5910_v21  ;;  %v3697_v26 = vmul.f32 %v3633_v30, %v8355_v38  ;;  %v3636_v36 = vmul.f32 0.5, %v3572_v61  ;;  %v8474_v38 = vrot.slane %v8469_v60, %v8949_v45  ;;  %v8953_v61 = vld [vmem:[#allocation33_spill] sm:$0xff] }
 0xc80   : > { %v3728_v11 = vpack.c.bf16 %v3692_v24, %v3688_v8 }
 0xc81   : > { %4083 = vmatmul.mubr.bf16.gmra.mxu1 %v3730_v17  ;;  %v3733_v25 = vpack.c.bf16 %v3701_v43, %v3697_v26  ;;  %v3632_v29 = vmul.f32 0.5, %v3568_v35  ;;  %v3700_v53 = vmul.f32 %v3636_v36, %v8402_v62 }
 0xc82   : > { %4171 = vmatprep.mubr.bf16.mxu1 %v3729_v23 }
 0xc83   : > { %v3696_v42 = vmul.f32 %v3632_v29, %v8350_v19 }
 0xc85   : > { %v3732_v44 = vpack.c.bf16 %v3700_v53, %v3696_v42  ;;  %v8954_v53 = vld [vmem:[#allocation36_spill] sm:$0xff] }
 0xc89   : > { %4172 = vmatmul.mubr.bf16.vlgmr.msra.gmra.mxu1 %v3728_v11 }
 0xc8a   : > { %4179 = vmatprep.mubr.bf16.mxu1 %v3733_v25 }
 0xc91   : > { %4180 = vmatmul.mubr.bf16.gmra.mxu1 %v3732_v44 }
 0xcd8   : > { %v4961_v49 = vpop.f32.mrf.mxu1 }
 0xcda   : > { %v5025_v10 = vpop.f32.mrf.mxu0  ;;  %v4962_v12 = vpop.f32.mrf.mxu1 }
 0xcdb   : > { %v4963_v18 = vadd.f32 %v4962_v12, %v4961_v49 }
 0xcdc   : > { %v5026_v14 = vpop.f32.mrf.mxu0  ;;  %v4964_v54 = vpop.f32.mrf.mxu1 }
 0xcdd   : > { %v4029_v40 = vadd.f32 %v4963_v18, %v8474_v38  ;;  %v5027_v62 = vadd.f32 %v5026_v14, %v5025_v10  ;;  %v8955_v14 = vld [vmem:[#allocation35_spill] sm:$0xff] }
 0xcde   : > { %v5028_v15 = vpop.f32.mrf.mxu0  ;;  %v4965_v19 = vpop.f32.mrf.mxu1 }
 0xcdf   : > { %v4126_v22 = vadd.f32 %v5027_v62, %v4029_v40  ;;  %v4966_v50 = vadd.f32 %v4965_v19, %v4964_v54 }
 0xce0   : > { %v5029_v33 = vpop.f32.mrf.mxu0  ;;  %v4967_v63 = vpop.f32.mrf.mxu1 }
 0xce1   : > { %v4032_v6 = vadd.f32 %v4966_v50, %v8474_v38  ;;  %v5030_v37 = vadd.f32 %v5029_v33, %v5028_v15  ;;  %v8479_v55 = vadd.f32 %v4126_v22, %v8950_v52  ;;  %v8957_v52 = vld [vmem:[#allocation37_spill] sm:$0xff] }
 0xce2   : > { %v5031_v9 = vpop.f32.mrf.mxu0  ;;  %v4968_v47 = vpop.f32.mrf.mxu1 }
 0xce3   : > { %v4129_v13 = vadd.f32 %v5030_v37, %v4032_v6  ;;  %v4969_v32 = vadd.f32 %v4968_v47, %v4967_v63  ;;  %4204 = vadd.xlane.f32.xlu0 %v8479_v55  ;;  %v8956_v6 = vld [vmem:[#allocation38_spill] sm:$0xff] }
 0xce4   : > { %v5032_v46 = vpop.f32.mrf.mxu0  ;;  %v4970_v41 = vpop.f32.mrf.mxu1 }
 0xce5   : > { %v4037_v1 = vadd.f32 %v4969_v32, %v8474_v38  ;;  %v5033_v27 = vadd.f32 %v5032_v46, %v5031_v9  ;;  %v8484_v0 = vadd.f32 %v4129_v13, %v8951_v56 }
 0xce6   : > { %v5034_v16 = vpop.f32.mrf.mxu0  ;;  %v4971_v39 = vpop.f32.mrf.mxu1 }
 0xce7   : > { %v4134_v59 = vadd.f32 %v5033_v27, %v4037_v1  ;;  %v4972_v51 = vadd.f32 %v4971_v39, %v4970_v41  ;;  %4206 = vadd.xlane.f32.xlu1 %v8484_v0 }
 0xce8   : > { %v5035_v7 = vpop.f32.mrf.mxu0  ;;  %v4973_v58 = vpop.f32.mrf.mxu1 }
 0xce9   : > { %v4040_v48 = vadd.f32 %v4972_v51, %v8474_v38  ;;  %v5036_v3 = vadd.f32 %v5035_v7, %v5034_v16  ;;  %v8489_v17 = vadd.f32 %v4134_v59, %v8952_v5 }
 0xcea   : > { %v5037_v2 = vpop.f32.mrf.mxu0  ;;  %v4974_v20 = vpop.f32.mrf.mxu1 }
 0xceb   : > { %v4137_v23 = vadd.f32 %v5036_v3, %v4040_v48  ;;  %v4975_v31 = vadd.f32 %v4974_v20, %v4973_v58  ;;  %4208 = vadd.xlane.f32.xlu0 %v8489_v17 }
 0xcec   : > { %v5038_v57 = vpop.f32.mrf.mxu0  ;;  %v4976_v21 = vpop.f32.mrf.mxu1 }
 0xced   : > { %v4045_v30 = vadd.f32 %v4975_v31, %v8474_v38  ;;  %v5039_v4 = vadd.f32 %v5038_v57, %v5037_v2  ;;  %v8494_v43 = vadd.f32 %v4137_v23, %v8953_v61  ;;  %v8958_v23 = vld [vmem:[#allocation39_spill] sm:$0xff] }
 0xcee   : > { %v5040_v24 = vpop.f32.mrf.mxu0  ;;  %v4977_v34 = vpop.f32.mrf.mxu1 }
 0xcef   : > { %v4142_v8 = vadd.f32 %v5039_v4, %v4045_v30  ;;  %v4978_v35 = vadd.f32 %v4977_v34, %v4976_v21  ;;  %4210 = vadd.xlane.f32.xlu1 %v8494_v43 }
 0xcf0   : > { %v5041_v26 = vpop.f32.mrf.mxu0  ;;  %v4979_v25 = vpop.f32.mrf.mxu1 }
 0xcf1   : > { %v4048_v11 = vadd.f32 %v4978_v35, %v8474_v38  ;;  %v5042_v36 = vadd.f32 %v5041_v26, %v5040_v24  ;;  %v8499_v42 = vadd.f32 %v4142_v8, %v8954_v53  ;;  %v8959_v8 = vld [vmem:[#allocation40_spill] sm:$0xff] }
 0xcf2   : > { %v5043_v29 = vpop.f32.mrf.mxu0  ;;  %v4980_v49 = vpop.f32.mrf.mxu1 }
 0xcf3   : > { %v4145_v44 = vadd.f32 %v5042_v36, %v4048_v11  ;;  %4212 = vadd.xlane.f32.xlu0 %v8499_v42  ;;  %v4981_v45 = vadd.f32 %v4980_v49, %v4979_v25  ;;  %v8960_v49 = vld [vmem:[#allocation42_spill] sm:$0xff] }
 0xcf4   : > { %v5044_v10 = vpop.f32.mrf.mxu0  ;;  %v4982_v12 = vpop.f32.mrf.mxu1 }
 0xcf5   : > { %v8503_v54 = vadd.f32 %v4145_v44, %v8955_v14  ;;  %v4053_v40 = vadd.f32 %v4981_v45, %v8474_v38  ;;  %v5045_v62 = vadd.f32 %v5044_v10, %v5043_v29  ;;  %v8961_v14 = vld [vmem:[#allocation41_spill] sm:$0xff] }
 0xcf6   : > { %v5046_v18 = vpop.f32.mrf.mxu0  ;;  %v4983_v15 = vpop.f32.mrf.mxu1 }
 0xcf7   : > { %4214 = vadd.xlane.f32.xlu1 %v8503_v54  ;;  %v4150_v22 = vadd.f32 %v5045_v62, %v4053_v40  ;;  %v4984_v50 = vadd.f32 %v4983_v15, %v4982_v12 }
 0xcf8   : > { %v5047_v19 = vpop.f32.mrf.mxu0 }
 0xcf9   : > { %v4056_v33 = vadd.f32 %v4984_v50, %v8474_v38  ;;  %v5048_v63 = vadd.f32 %v5047_v19, %v5046_v18  ;;  %v8509_v37 = vadd.f32 %v4150_v22, %v8956_v6 }
 0xcfb   : > { %v4153_v9 = vadd.f32 %v5048_v63, %v4056_v33  ;;  %4216 = vadd.xlane.f32.xlu0 %v8509_v37 }
 0xcfd   : > { %v8513_v47 = vadd.f32 %v4153_v9, %v8957_v52 }
 0xcff   : > { %4218 = vadd.xlane.f32.xlu1 %v8513_v47 }
 0xd24   : > { %v5049_v13 = vpop.f32.mrf.mxu0 }
 0xd26   : > { %v5050_v32 = vpop.f32.mrf.mxu0 }
 0xd27   : > { %v5051_v51 = vadd.f32 %v5050_v32, %v5049_v13 }
 0xd28   : > { %v5052_v41 = vpop.f32.mrf.mxu0 }
 0xd29   : > { %v4985_v46 = vpop.f32.mrf.mxu1 }
 0xd2a   : > { %v5053_v27 = vpop.f32.mrf.mxu0 }
 0xd2b   : > { %v4986_v1 = vpop.f32.mrf.mxu1  ;;  %v5054_v20 = vadd.f32 %v5053_v27, %v5052_v41 }
 0xd2c   : > { %v4987_v16 = vadd.f32 %v4986_v1, %v4985_v46 }
 0xd2d   : > { %v4988_v56 = vpop.f32.mrf.mxu1  ;;  %v5055_v39 = vpop.f32.mrf.mxu0 }
 0xd2e   : > { %v4061_v59 = vadd.f32 %v4987_v16, %v8474_v38 }
 0xd2f   : > { %v4989_v7 = vpop.f32.mrf.mxu1  ;;  %v5056_v58 = vpop.f32.mrf.mxu0 }
 0xd30   : > { %v4158_v48 = vadd.f32 %v5051_v51, %v4061_v59  ;;  %v4990_v3 = vadd.f32 %v4989_v7, %v4988_v56  ;;  %v5057_v34 = vadd.f32 %v5056_v58, %v5055_v39  ;;  %v8962_v56 = vld [vmem:[#allocation44_spill] sm:$0xff] }
 0xd31   : > { %v4991_v2 = vpop.f32.mrf.mxu1  ;;  %v5058_v21 = vpop.f32.mrf.mxu0 }
 0xd32   : > { %v4064_v5 = vadd.f32 %v4990_v3, %v8474_v38  ;;  %v8519_v31 = vadd.f32 %v4158_v48, %v8958_v23 }
 0xd33   : > { %v4992_v57 = vpop.f32.mrf.mxu1  ;;  %v5059_v11 = vpop.f32.mrf.mxu0 }
 0xd34   : > { %v4161_v30 = vadd.f32 %v5054_v20, %v4064_v5  ;;  %v4993_v4 = vadd.f32 %v4992_v57, %v4991_v2  ;;  %4220 = vadd.xlane.f32.xlu0 %v8519_v31  ;;  %v5060_v44 = vadd.f32 %v5059_v11, %v5058_v21  ;;  %v8963_v2 = vld [vmem:[#allocation43_spill] sm:$0xff] }
 0xd35   : > { %v4994_v24 = vpop.f32.mrf.mxu1 }
 0xd36   : > { %v4069_v61 = vadd.f32 %v4993_v4, %v8474_v38  ;;  %v8524_v35 = vadd.f32 %v4161_v30, %v8959_v8  ;;  %v8964_v4 = vld [vmem:[#allocation46_spill] sm:$0xff] }
 0xd37   : > { %v4995_v26 = vpop.f32.mrf.mxu1 }
 0xd38   : > { %v4166_v36 = vadd.f32 %v5057_v34, %v4069_v61  ;;  %v4996_v25 = vadd.f32 %v4995_v26, %v4994_v24  ;;  %4222 = vadd.xlane.f32.xlu1 %v8524_v35  ;;  %v8965_v34 = vld [vmem:[#allocation45_spill] sm:$0xff] }
 0xd39   : > { %v4997_v29 = vpop.f32.mrf.mxu1 }
 0xd3a   : > { %v4072_v53 = vadd.f32 %v4996_v25, %v8474_v38  ;;  %v8529_v10 = vadd.f32 %v4166_v36, %v8960_v49 }
 0xd3b   : > { %v4998_v45 = vpop.f32.mrf.mxu1 }
 0xd3c   : > { %v4169_v12 = vadd.f32 %v5060_v44, %v4072_v53  ;;  %4224 = vadd.xlane.f32.xlu0 %v8529_v10  ;;  %v4999_v33 = vadd.f32 %v4998_v45, %v4997_v29 }
 0xd3d   : > { %v5000_v18 = vpop.f32.mrf.mxu1 }
 0xd3e   : > { %v8533_v40 = vadd.f32 %v4169_v12, %v8961_v14  ;;  %v4077_v9 = vadd.f32 %v4999_v33, %v8474_v38 }
 0xd3f   : > { %v5001_v62 = vpop.f32.mrf.mxu1 }
 0xd40   : > { %4226 = vadd.xlane.f32.xlu1 %v8533_v40  ;;  %v5002_v52 = vadd.f32 %v5001_v62, %v5000_v18 }
 0xd41   : > { %v5003_v15 = vpop.f32.mrf.mxu1 }
 0xd42   : > { %v4080_v1 = vadd.f32 %v5002_v52, %v8474_v38 }
 0xd43   : > { %v5004_v19 = vpop.f32.mrf.mxu1 }
 0xd44   : > { %v5005_v27 = vadd.f32 %v5004_v19, %v5003_v15 }
 0xd45   : > { %v5006_v22 = vpop.f32.mrf.mxu1 }
 0xd46   : > { %v4085_v58 = vadd.f32 %v5005_v27, %v8474_v38 }
 0xd47   : > { %v5007_v50 = vpop.f32.mrf.mxu1 }
 0xd48   : > { %v5008_v48 = vadd.f32 %v5007_v50, %v5006_v22 }
 0xd49   : > { %v5061_v63 = vpop.f32.mrf.mxu1 }
 0xd4a   : > { %v4088_v21 = vadd.f32 %v5008_v48, %v8474_v38 }
 0xd4b   : > { %v5062_v6 = vpop.f32.mrf.mxu1 }
 0xd4c   : > { %v5063_v13 = vadd.f32 %v5062_v6, %v5061_v63 }
 0xd4d   : > { %v5064_v32 = vpop.f32.mrf.mxu1 }
 0xd4e   : > { %v4174_v46 = vadd.f32 %v5063_v13, %v4077_v9 }
 0xd4f   : > { %v5065_v41 = vpop.f32.mrf.mxu1 }
 0xd50   : > { %v5066_v16 = vadd.f32 %v5065_v41, %v5064_v32  ;;  %v8539_v39 = vadd.f32 %v4174_v46, %v8962_v56 }
 0xd51   : > { %v5067_v59 = vpop.f32.mrf.mxu1 }
 0xd52   : > { %v4177_v51 = vadd.f32 %v5066_v16, %v4080_v1  ;;  %4228 = vadd.xlane.f32.xlu0 %v8539_v39 }
 0xd53   : > { %v5068_v7 = vpop.f32.mrf.mxu1 }
 0xd54   : > { %v5069_v3 = vadd.f32 %v5068_v7, %v5067_v59  ;;  %v8544_v5 = vadd.f32 %v4177_v51, %v8963_v2 }
 0xd55   : > { %v5070_v20 = vpop.f32.mrf.mxu1 }
 0xd56   : > { %v4182_v23 = vadd.f32 %v5069_v3, %v4085_v58  ;;  %4230 = vadd.xlane.f32.xlu1 %v8544_v5 }
 0xd57   : > { %v5071_v57 = vpop.f32.mrf.mxu1 }
 0xd58   : > { %v5072_v30 = vadd.f32 %v5071_v57, %v5070_v20  ;;  %v8549_v24 = vadd.f32 %v4182_v23, %v8964_v4 }
 0xd5a   : > { %v4185_v61 = vadd.f32 %v5072_v30, %v4088_v21  ;;  %4232 = vadd.xlane.f32.xlu0 %v8549_v24 }
 0xd5c   : > { %v8553_v8 = vadd.f32 %v4185_v61, %v8965_v34 }
 0xd5e   : > { %4234 = vadd.xlane.f32.xlu1 %v8553_v8 }
 0xd6c   : > { %v4205_v26 = vpop.xlane.xlu0 %4204 }
 0xd6d   : > { %v4236_v11 = vmul.f32 0.0078125, %v4205_v26 }
 0xd6f   : > { %v8557_v36 = vsub.f32 %v8479_v55, %v4236_v11 }
 0xd70   : > { %v4207_v25 = vpop.xlane.xlu1 %4206 }
 0xd71   : > { %v4237_v29 = vmul.f32 0.0078125, %v4207_v25  ;;  %v4268_v38 = vmul.f32 %v8557_v36, %v8557_v36 }
 0xd73   : > { %v8562_v53 = vsub.f32 %v8484_v0, %v4237_v29  ;;  %4284 = vadd.xlane.f32.xlu0 %v4268_v38 }
 0xd74   : > { %v4209_v44 = vpop.xlane.xlu0 %4208 }
 0xd75   : > { %v4238_v49 = vmul.f32 0.0078125, %v4209_v44  ;;  %v4269_v45 = vmul.f32 %v8562_v53, %v8562_v53 }
 0xd77   : > { %v8567_v12 = vsub.f32 %v8489_v17, %v4238_v49  ;;  %4286 = vadd.xlane.f32.xlu1 %v4269_v45 }
 0xd78   : > { %v4211_v55 = vpop.xlane.xlu1 %4210 }
 0xd79   : > { %v4239_v18 = vmul.f32 0.0078125, %v4211_v55  ;;  %v4270_v14 = vmul.f32 %v8567_v12, %v8567_v12 }
 0xd7b   : > { %v8572_v62 = vsub.f32 %v8494_v43, %v4239_v18  ;;  %4288 = vadd.xlane.f32.xlu0 %v4270_v14 }
 0xd7c   : > { %v4213_v0 = vpop.xlane.xlu0 %4212 }
 0xd7d   : > { %v4240_v15 = vmul.f32 0.0078125, %v4213_v0  ;;  %v4271_v19 = vmul.f32 %v8572_v62, %v8572_v62 }
 0xd7f   : > { %v8577_v22 = vsub.f32 %v8499_v42, %v4240_v15  ;;  %4290 = vadd.xlane.f32.xlu1 %v4271_v19 }
 0xd80   : > { %v4215_v17 = vpop.xlane.xlu1 %4214 }
 0xd81   : > { %v4241_v50 = vmul.f32 0.0078125, %v4215_v17  ;;  %v4272_v33 = vmul.f32 %v8577_v22, %v8577_v22  ;;  %v4402_v17 = vsub.s32 5, %v8948_v28 }
 0xd83   : > { %v8582_v63 = vsub.f32 %v8503_v54, %v4241_v50  ;;  %4292 = vadd.xlane.f32.xlu0 %v4272_v33 }
 0xd84   : > { %v4217_v43 = vpop.xlane.xlu0 %4216 }
 0xd85   : > { %v4273_v6 = vmul.f32 %v8582_v63, %v8582_v63  ;;  %v4242_v9 = vmul.f32 0.0078125, %v4217_v43 }
 0xd87   : > { %4294 = vadd.xlane.f32.xlu1 %v4273_v6  ;;  %v8587_v52 = vsub.f32 %v8509_v37, %v4242_v9 }
 0xd88   : > { %v4219_v42 = vpop.xlane.xlu1 %4218 }
 0xd89   : > { %v4243_v13 = vmul.f32 0.0078125, %v4219_v42  ;;  %v4274_v32 = vmul.f32 %v8587_v52, %v8587_v52  ;;  %v8642_v42 = vrot.slane %v8469_v60, %v4402_v17 }
 0xd8b   : > { %v8592_v46 = vsub.f32 %v8513_v47, %v4243_v13  ;;  %4296 = vadd.xlane.f32.xlu0 %v4274_v32 }
 0xd8d   : > { %v4275_v54 = vmul.f32 %v8592_v46, %v8592_v46 }
 0xd8f   : > { %4298 = vadd.xlane.f32.xlu1 %v4275_v54 }
 0xdbd   : > { %v4221_v41 = vpop.xlane.xlu0 %4220 }
 0xdbe   : > { %v4244_v1 = vmul.f32 0.0078125, %v4221_v41 }
 0xdc0   : > { %v8597_v27 = vsub.f32 %v8519_v31, %v4244_v1 }
 0xdc1   : > { %v4223_v37 = vpop.xlane.xlu1 %4222 }
 0xdc2   : > { %v4245_v16 = vmul.f32 0.0078125, %v4223_v37  ;;  %v4276_v56 = vmul.f32 %v8597_v27, %v8597_v27 }
 0xdc4   : > { %v8602_v59 = vsub.f32 %v8524_v35, %v4245_v16  ;;  %4300 = vadd.xlane.f32.xlu0 %v4276_v56 }
 0xdc5   : > { %v4225_v47 = vpop.xlane.xlu0 %4224 }
 0xdc6   : > { %v4246_v51 = vmul.f32 0.0078125, %v4225_v47  ;;  %v4277_v7 = vmul.f32 %v8602_v59, %v8602_v59 }
 0xdc8   : > { %v8607_v58 = vsub.f32 %v8529_v10, %v4246_v51  ;;  %4302 = vadd.xlane.f32.xlu1 %v4277_v7 }
 0xdc9   : > { %v4227_v31 = vpop.xlane.xlu1 %4226 }
 0xdca   : > { %v4247_v48 = vmul.f32 0.0078125, %v4227_v31  ;;  %v4278_v3 = vmul.f32 %v8607_v58, %v8607_v58 }
 0xdcc   : > { %v8612_v2 = vsub.f32 %v8533_v40, %v4247_v48  ;;  %4304 = vadd.xlane.f32.xlu0 %v4278_v3 }
 0xdce   : > { %v4279_v35 = vmul.f32 %v8612_v2, %v8612_v2 }
 0xdd0   : > { %4306 = vadd.xlane.f32.xlu1 %v4279_v35 }
 0xddb   : > { %v4229_v20 = vpop.xlane.xlu0 %4228 }
 0xddc   : > { %v4248_v23 = vmul.f32 0.0078125, %v4229_v20 }
 0xdde   : > { %v8617_v57 = vsub.f32 %v8539_v39, %v4248_v23 }
 0xddf   : > { %v4231_v10 = vpop.xlane.xlu1 %4230 }
 0xde0   : > { %v4249_v21 = vmul.f32 0.0078125, %v4231_v10  ;;  %v4280_v30 = vmul.f32 %v8617_v57, %v8617_v57 }
 0xde2   : > { %v8622_v4 = vsub.f32 %v8544_v5, %v4249_v21  ;;  %4308 = vadd.xlane.f32.xlu0 %v4280_v30 }
 0xde3   : > { %v4233_v40 = vpop.xlane.xlu0 %4232 }
 0xde4   : > { %v4250_v61 = vmul.f32 0.0078125, %v4233_v40  ;;  %v4281_v34 = vmul.f32 %v8622_v4, %v8622_v4 }
 0xde6   : > { %v8627_v26 = vsub.f32 %v8549_v24, %v4250_v61  ;;  %4310 = vadd.xlane.f32.xlu1 %v4281_v34 }
 0xde7   : > { %v4235_v39 = vpop.xlane.xlu1 %4234 }
 0xde8   : > { %v4251_v11 = vmul.f32 0.0078125, %v4235_v39  ;;  %v4282_v25 = vmul.f32 %v8627_v26, %v8627_v26 }
 0xdea   : > { %v8632_v29 = vsub.f32 %v8553_v8, %v4251_v11  ;;  %4312 = vadd.xlane.f32.xlu0 %v4282_v25  ;;  %v4382_v8 = vsub.s32 4, %v8948_v28 }
 0xdec   : > { %v4283_v5 = vmul.f32 %v8632_v29, %v8632_v29  ;;  %v8639_v43 = vrot.slane %v8469_v60, %v4382_v8 }
 0xdee   : > { %4314 = vadd.xlane.f32.xlu1 %v4283_v5 }
 0xdfc   : > { %v4285_v38 = vpop.xlane.xlu0 %4284 }
 0xdfd   : > { %v4316_v44 = vmul.f32 0.0078125, %v4285_v38 }
 0xdff   : > { %v4332_v49 = vadd.f32 1e-12, %v4316_v44 }
 0xe00   : > { %v4287_v45 = vpop.xlane.xlu1 %4286 }
 0xe01   : > { %5911 = vrsqrt.f32 %v4332_v49  ;;  %v4317_v24 = vmul.f32 0.0078125, %v4287_v45 }
 0xe03   : > { %v4333_v55 = vadd.f32 1e-12, %v4317_v24 }
 0xe04   : > { %v4289_v18 = vpop.xlane.xlu0 %4288 }
 0xe05   : > { %5913 = vrsqrt.f32 %v4333_v55  ;;  %v4318_v14 = vmul.f32 0.0078125, %v4289_v18 }
 0xe07   : > { %v4334_v0 = vadd.f32 1e-12, %v4318_v14 }
 0xe08   : > { %v4291_v15 = vpop.xlane.xlu1 %4290 }
 0xe09   : > { %5915 = vrsqrt.f32 %v4334_v0  ;;  %v4319_v19 = vmul.f32 0.0078125, %v4291_v15 }
 0xe0b   : > { %v4335_v50 = vadd.f32 1e-12, %v4319_v19 }
 0xe0c   : > { %v4293_v33 = vpop.xlane.xlu0 %4292 }
 0xe0d   : > { %5917 = vrsqrt.f32 %v4335_v50  ;;  %v4320_v6 = vmul.f32 0.0078125, %v4293_v33 }
 0xe0e   : > { %v5912_v9 = vpop.eup %5911 }
 0xe0f   : > { %v4364_v13 = vmul.f32 %v5912_v9, %v8557_v36  ;;  %v4336_v32 = vadd.f32 1e-12, %v4320_v6 }
 0xe10   : > { %v4295_v54 = vpop.xlane.xlu1 %4294 }
 0xe11   : > { %v4384_v41 = vmul.f32 %v8639_v43, %v4364_v13  ;;  %5919 = vrsqrt.f32 %v4336_v32  ;;  %v4321_v1 = vmul.f32 0.0078125, %v4295_v54 }
 0xe12   : > { %v5914_v28 = vpop.eup %5913 }
 0xe13   : > { %v8647_v37 = vadd.f32 %v8642_v42, %v4384_v41  ;;  %v4365_v16 = vmul.f32 %v5914_v28, %v8562_v53  ;;  %v4337_v56 = vadd.f32 1e-12, %v4321_v1 }
 0xe14   : > { %v4297_v47 = vpop.xlane.xlu0 %4296 }
 0xe15   : > { %4420 = vst [vmem:[#allocation2 + $0x30] sm:$0xff] %v8647_v37  ;;  %v4385_v60 = vmul.f32 %v8639_v43, %v4365_v16  ;;  %5921 = vrsqrt.f32 %v4337_v56  ;;  %v4322_v51 = vmul.f32 0.0078125, %v4297_v47 }
 0xe16   : > { %v5916_v36 = vpop.eup %5915 }
 0xe17   : > { %v4405_v7 = vadd.f32 %v8642_v42, %v4385_v60  ;;  %v4366_v31 = vmul.f32 %v5916_v36, %v8567_v12  ;;  %v4338_v48 = vadd.f32 1e-12, %v4322_v51 }
 0xe18   : > { %v4299_v35 = vpop.xlane.xlu1 %4298 }
 0xe19   : > { %4421 = vst [vmem:[#allocation2] sm:$0xff] %v4405_v7  ;;  %v4386_v3 = vmul.f32 %v8639_v43, %v4366_v31  ;;  %5923 = vrsqrt.f32 %v4338_v48  ;;  %v4323_v53 = vmul.f32 0.0078125, %v4299_v35 }
 0xe1a   : > { %v5918_v20 = vpop.eup %5917 }
 0xe1b   : > { %v4406_v23 = vadd.f32 %v8642_v42, %v4386_v3  ;;  %v4367_v10 = vmul.f32 %v5918_v20, %v8572_v62  ;;  %v4339_v21 = vadd.f32 1e-12, %v4323_v53 }
 0xe1d   : > { %4422 = vst [vmem:[#allocation2 + $0x58] sm:$0xff] %v4406_v23  ;;  %v4387_v30 = vmul.f32 %v8639_v43, %v4367_v10  ;;  %5925 = vrsqrt.f32 %v4339_v21 }
 0xe1e   : > { %v5920_v40 = vpop.eup %5919 }
 0xe1f   : > { %v4407_v12 = vadd.f32 %v8642_v42, %v4387_v30  ;;  %v4368_v61 = vmul.f32 %v5920_v40, %v8577_v22 }
 0xe21   : > { %4423 = vst [vmem:[#allocation2 + $0x18] sm:$0xff] %v4407_v12  ;;  %v4388_v34 = vmul.f32 %v8639_v43, %v4368_v61 }
 0xe22   : > { %v5922_v39 = vpop.eup %5921 }
 0xe23   : > { %v4408_v11 = vadd.f32 %v8642_v42, %v4388_v34  ;;  %v4369_v25 = vmul.f32 %v5922_v39, %v8582_v63 }
 0xe25   : > { %4424 = vst [vmem:[#allocation2 + $0x50] sm:$0xff] %v4408_v11  ;;  %v4389_v62 = vmul.f32 %v8639_v43, %v4369_v25 }
 0xe26   : > { %v5924_v5 = vpop.eup %5923 }
 0xe27   : > { %v4409_v38 = vadd.f32 %v8642_v42, %v4389_v62  ;;  %v4370_v44 = vmul.f32 %v5924_v5, %v8587_v52 }
 0xe29   : > { %4425 = vst [vmem:[#allocation2 + $0x68] sm:$0xff] %v4409_v38  ;;  %v4390_v49 = vmul.f32 %v8639_v43, %v4370_v44 }
 0xe2a   : > { %v5926_v22 = vpop.eup %5925 }
 0xe2b   : > { %v4410_v45 = vadd.f32 %v8642_v42, %v4390_v49  ;;  %v4371_v24 = vmul.f32 %v5926_v22, %v8592_v46 }
 0xe2d   : > { %4426 = vst [vmem:[#allocation2 + $0x8] sm:$0xff] %v4410_v45  ;;  %v4391_v55 = vmul.f32 %v8639_v43, %v4371_v24 }
 0xe2f   : > { %v4411_v63 = vadd.f32 %v8642_v42, %v4391_v55 }
 0xe31   : > { %4427 = vst [vmem:[#allocation2 + $0x48] sm:$0xff] %v4411_v63 }
 0xe4d   : > { %v4301_v18 = vpop.xlane.xlu0 %4300 }
 0xe4e   : > { %v4324_v14 = vmul.f32 0.0078125, %v4301_v18 }
 0xe50   : > { %v4340_v0 = vadd.f32 1e-12, %v4324_v14 }
 0xe51   : > { %v4303_v15 = vpop.xlane.xlu1 %4302 }
 0xe52   : > { %5927 = vrsqrt.f32 %v4340_v0  ;;  %v4325_v52 = vmul.f32 0.0078125, %v4303_v15 }
 0xe54   : > { %v4341_v8 = vadd.f32 1e-12, %v4325_v52 }
 0xe55   : > { %v4305_v19 = vpop.xlane.xlu0 %4304 }
 0xe56   : > { %5929 = vrsqrt.f32 %v4341_v8  ;;  %v4326_v17 = vmul.f32 0.0078125, %v4305_v19 }
 0xe58   : > { %v4342_v50 = vadd.f32 1e-12, %v4326_v17 }
 0xe59   : > { %v4307_v33 = vpop.xlane.xlu1 %4306 }
 0xe5a   : > { %5931 = vrsqrt.f32 %v4342_v50  ;;  %v4327_v46 = vmul.f32 0.0078125, %v4307_v33 }
 0xe5c   : > { %v4343_v6 = vadd.f32 1e-12, %v4327_v46 }
 0xe5e   : > { %5933 = vrsqrt.f32 %v4343_v6 }
 0xe5f   : > { %v5928_v9 = vpop.eup %5927 }
 0xe60   : > { %v4372_v13 = vmul.f32 %v5928_v9, %v8597_v27 }
 0xe62   : > { %v4392_v32 = vmul.f32 %v8639_v43, %v4372_v13 }
 0xe63   : > { %v5930_v54 = vpop.eup %5929 }
 0xe64   : > { %v4412_v41 = vadd.f32 %v8642_v42, %v4392_v32  ;;  %v4373_v1 = vmul.f32 %v5930_v54, %v8602_v59 }
 0xe66   : > { %4428 = vst [vmem:[#allocation2 + $0x40] sm:$0xff] %v4412_v41  ;;  %v4393_v28 = vmul.f32 %v8639_v43, %v4373_v1 }
 0xe67   : > { %v5932_v16 = vpop.eup %5931 }
 0xe68   : > { %v4413_v56 = vadd.f32 %v8642_v42, %v4393_v28  ;;  %v4374_v60 = vmul.f32 %v5932_v16, %v8607_v58 }
 0xe6a   : > { %4429 = vst [vmem:[#allocation2 + $0x20] sm:$0xff] %v4413_v56  ;;  %v4394_v47 = vmul.f32 %v8639_v43, %v4374_v60 }
 0xe6b   : > { %v5934_v36 = vpop.eup %5933  ;;  %v4309_v27 = vpop.xlane.xlu0 %4308 }
 0xe6c   : > { %v4414_v51 = vadd.f32 %v8642_v42, %v4394_v47  ;;  %v4375_v7 = vmul.f32 %v5934_v36, %v8612_v2  ;;  %v4328_v31 = vmul.f32 0.0078125, %v4309_v27 }
 0xe6e   : > { %4430 = vst [vmem:[#allocation2 + $0x10] sm:$0xff] %v4414_v51  ;;  %v4395_v59 = vmul.f32 %v8639_v43, %v4375_v7  ;;  %v4344_v48 = vadd.f32 1e-12, %v4328_v31 }
 0xe6f   : > { %v4311_v3 = vpop.xlane.xlu1 %4310 }
 0xe70   : > { %v4415_v35 = vadd.f32 %v8642_v42, %v4395_v59  ;;  %5935 = vrsqrt.f32 %v4344_v48  ;;  %v4329_v20 = vmul.f32 0.0078125, %v4311_v3 }
 0xe72   : > { %4431 = vst [vmem:[#allocation2 + $0x38] sm:$0xff] %v4415_v35  ;;  %v4345_v58 = vadd.f32 1e-12, %v4329_v20 }
 0xe73   : > { %v4313_v53 = vpop.xlane.xlu0 %4312 }
 0xe74   : > { %5937 = vrsqrt.f32 %v4345_v58  ;;  %v4330_v23 = vmul.f32 0.0078125, %v4313_v53 }
 0xe76   : > { %v4346_v10 = vadd.f32 1e-12, %v4330_v23 }
 0xe77   : > { %v4315_v21 = vpop.xlane.xlu1 %4314 }
 0xe78   : > { %5939 = vrsqrt.f32 %v4346_v10  ;;  %v4331_v30 = vmul.f32 0.0078125, %v4315_v21 }
 0xe7a   : > { %v4347_v2 = vadd.f32 1e-12, %v4331_v30 }
 0xe7c   : > { %5941 = vrsqrt.f32 %v4347_v2 }
 0xe7d   : > { %v5936_v40 = vpop.eup %5935 }
 0xe7e   : > { %v4376_v12 = vmul.f32 %v5936_v40, %v8617_v57 }
 0xe80   : > { %v4396_v61 = vmul.f32 %v8639_v43, %v4376_v12 }
 0xe81   : > { %v5938_v34 = vpop.eup %5937 }
 0xe82   : > { %v4416_v39 = vadd.f32 %v8642_v42, %v4396_v61  ;;  %v4377_v11 = vmul.f32 %v5938_v34, %v8622_v4 }
 0xe84   : > { %4432 = vst [vmem:[#allocation2 + $0x60] sm:$0xff] %v4416_v39  ;;  %v4397_v25 = vmul.f32 %v8639_v43, %v4377_v11 }
 0xe85   : > { %v5940_v62 = vpop.eup %5939 }
 0xe86   : > { %v4417_v5 = vadd.f32 %v8642_v42, %v4397_v25  ;;  %v4378_v38 = vmul.f32 %v5940_v62, %v8627_v26 }
 0xe88   : > { %4433 = vst [vmem:[#allocation2 + $0x70] sm:$0xff] %v4417_v5  ;;  %v4398_v44 = vmul.f32 %v8639_v43, %v4378_v38 }
 0xe89   : > { %v5942_v49 = vpop.eup %5941 }
 0xe8a   : > { %v4418_v57 = vadd.f32 %v8642_v42, %v4398_v44  ;;  %v4379_v22 = vmul.f32 %v5942_v49, %v8632_v29 }
 0xe8c   : > { %4434 = vst [vmem:[#allocation2 + $0x78] sm:$0xff] %v4418_v57  ;;  %v4399_v45 = vmul.f32 %v8639_v43, %v4379_v22  ;;  %4439 = sbr.rel (%p4802_p9) target bundleno = 3730 (0xe92), region = 88 }
 0xe8e   : > { %v4419_v4 = vadd.f32 %v8642_v42, %v4399_v45 }
 0xe90   : > { %4435 = vst [vmem:[#allocation2 + $0x28] sm:$0xff] %v4419_v4 }
 0xe91   : > { %4440 = vst [vmem:[%s592_s3] sm:$0x1] %v8647_v37 }
 0xe92 PF: > { %s8967_s2 = sld [smem:[#allocation22_spill]]  ;;  %s4454_s19 = sshll.u32 %s592_s3, 4  ;;  %s4455_s19 = int_to_ptr.vmem [resolvable:$true] %s4454_s19 }
 0xe93   : > { %s8969_s10 = sld [smem:[#allocation78_spill]]  ;;  %s4442_s12 = scalar_lea.sflag [#allocation5], %s6536_s7 }
 0xe94   : > { %s6100_s1 = scalar_lea.vmem %s4455_s19, 16  ;;  %s6243_s11 = smov [#allocation12]  }
 0xe95   : > { %p6101_p13 = scmp.ne.s32.totalorder %s4455_s19, %s6100_s1  ;;  %s6104_s24 = sshll.u32 %s6243_s11, 4  ;;  %s6105_s24 = int_to_ptr.vmem [resolvable:$false] %s6104_s24 }
 0xe96   : > { %s6106_s29 = scalar_lea.vmem %s6105_s24, 32  ;;  %p6107_p8 = scmp.lt.s32.totalorder %s4455_s19, %s6105_s24 }
 0xe97   : > { %p6102_p3 = pnand %p6101_p13, %p6471_p0  ;;  %p6108_p12 = scmp.lt.s32.totalorder %s6106_s29, %s6100_s1 }
 0xe98   : > { %s4803_s28 = sshll.u32 %s8967_s2, 4 }
 0xe99   : > { %s4452_s4 = scalar_lea.hbm %s8969_s10, %s4803_s28  ;;  %p6103_p5 = pneg %p6102_p3 }
 0xe9a   : > { %p6109_p2 = por %p6108_p12, %p6107_p8 }
 0xe9c   : > { %p6110_p6 = pnand %p6109_p2, %p6103_p5 }
 0xe9e   : > { %6113 = shalt.err (!%p6110_p6)
}
 0xe9f   : > { %s6114_s25 = scalar_lea.hbm %s4452_s4, 16  ;;  %s6118_s3 = scalar_lea.hbm %s8969_s10, 32 }
 0xea0   : > { %p6115_p11 = scmp.ne.s32.totalorder %s4452_s4, %s6114_s25  ;;  %p6119_p10 = scmp.lt.s32.totalorder %s4452_s4, %s8969_s10 }
 0xea1   : > { %p6120_p1 = scmp.lt.s32.totalorder %s6118_s3, %s6114_s25 }
 0xea2   : > { %p6116_p4 = pnand %p6115_p11, %p6471_p0 }
 0xea3   : > { %p6121_p9 = por %p6120_p1, %p6119_p10 }
 0xea4   : > { %p6117_p7 = pneg %p6116_p4 }
 0xea6   : > { %p6122_p13 = pnand %p6121_p9, %p6117_p7 }
 0xea8   : > { %6125 = shalt.err (!%p6122_p13)
}
 0xea9   : > { %5311 = dma.vmem_to_hbm [thread:$0]  (%p6471_p0), %s4455_s19, 16, %s4452_s4, %s4442_s12  }
 0xeaa PF: > { %p5334_p3 = scmp.ge.s32.totalorder %s6228_s23, 2  ;;  %s4466_s20 = sand.u32 1, %s6200_s16  }
 0xeab   : > { %p8970_p5 = scmp.ne.s32.totalorder %s8864_s6, 0  ;;  %s4467_s13 = scalar_lea.sflag [#allocation5], %s4466_s20 }
 0xead   : > { %p5330_p8 = pnand %p5334_p3, %p8970_p5 }
 0xeaf   : > { %p5331_p12 = pneg %p5330_p8 }
 0xeb1   : > { %6183 = dma.done.wait (%p5331_p12), %s4467_s13, 16  }
 0xeb2   : > { %6185 = vsyncadd (%p5331_p12), %s4467_s13, 4294967280  ;;  %s32_s23 = sadd.s32 1, %s6228_s23   ;;  %s8971_s13 = sld [smem:[#allocation17_spill]] }
 0xeb3   : > { %p29_p2 = scmp.ge.s32.totalorder %s32_s23, 6   ;;  %s8972_s14 = sld [smem:[#allocation18_spill]] }
 0xeb4   : > { %s8973_s15 = sld [smem:[#allocation26_spill]] }
 0xeb5   : > { %s8974_s16 = sld [smem:[#allocation19_spill]] }
 0xeb6   : > { %s8975_s17 = sld [smem:[#allocation20_spill]] }
 0xeb7   : > { %s8976_s18 = sld [smem:[#allocation29_spill]]  ;;  %31 = sbr.rel (!%p29_p2) target bundleno = 25 (0x19), region = 173 }
 0xeb8   : > { %s8977_s19 = sld [smem:[#allocation23_spill]] }
 0xeb9   : > { %s8978_s20 = sld [smem:[#allocation24_spill]] }
 0xeba   : > { %s8979_s21 = sld [smem:[#allocation25_spill]] }
 0xebb   : > { %s8980_s22 = sld [smem:[#allocation27_spill]] }
 0xebc   :  { %4471 = vsyncpa [#allocation4], 1 }
 0xebd   :  { %4473 = vsyncpa [#allocation4 + $0x1], 1 }
 0xebe   :  { %4474 = vsyncpa [#allocation7], 1 }
 0xebf   :  { %4476 = vsyncpa [#allocation7 + $0x1], 1 }
 0xec0   :  { %4477 = vsyncpa [#allocation10], 1 }
 0xec1   :  { %4479 = vsyncpa [#allocation10 + $0x1], 1 }
 0xec2   :  { %4480 = vsyncpa [#allocation5], 1 }
 0xec3   :  { %4482 = vsyncpa [#allocation5 + $0x1], 1 }

</bundles_post_ra>
